<compile_context>
chip_gen: v7x
topology: tpu7x:2x2x1
jax: 0.10.0
libtpu: 0.0.40
codegen_flags: <defaults>
</compile_context>

<pallas_src>
import functools
import math

import jax
import jax.numpy as jnp
from jax.experimental import pallas as pl
from jax.experimental.pallas import tpu as pltpu


# ----------------------------- helpers --------------------------------------

def _layer_norm(x, g, b, eps=1e-5):
    mu = jnp.mean(x, axis=-1, keepdims=True)
    xc = x - mu
    var = jnp.mean(xc * xc, axis=-1, keepdims=True)
    return xc * jax.lax.rsqrt(var + eps) * g + b


# ----------------------------- fused kernel ---------------------------------

def fused_forward_kernel(
        x_ref, emb_w_ref, emb_b_ref, pe_ref,
        ln1_g_ref, ln1_b_ref, wqkv_ref, bqkv_ref, wo_ref, bo_ref,
        ln2_g_ref, ln2_b_ref, w1_ref, b1_ref, w2_ref, b2_ref,
        fc_w_ref, fc_b_ref,
        o_ref,
        *, num_layers, nh):
    B, S, Din = x_ref.shape
    H = emb_w_ref.shape[1]
    M = B * S
    hd = H // nh
    scale = 1.0 / math.sqrt(hd)

    # ---- embedding + positional encoding (activation stays SSA) -----------
    h = jnp.dot(x_ref[...].reshape(M, Din), emb_w_ref[...],
                preferred_element_type=jnp.float32) + emb_b_ref[...]
    # Original PositionalEncoding quirk on a batch-first tensor: pe indexed by
    # *batch* index and broadcast over the sequence.
    pe = pe_ref[0:B, :].reshape(B, 1, H)
    h = (h.reshape(B, S, H) + pe).reshape(M, H)

    # Small L: fully unrolled, all layer weights resident in VMEM.
    for l in range(num_layers):
        # ---- pre-norm self-attention (fused QKV, single out-proj) ---------
        n1 = _layer_norm(h, ln1_g_ref[l], ln1_b_ref[l])
        qkv = jnp.dot(n1.astype(jnp.bfloat16), wqkv_ref[l],
                      preferred_element_type=jnp.float32) + bqkv_ref[l]
        heads = []
        for hh in range(nh):                      # tiny per-head softmax core
            off = hh * hd
            qh = qkv[:, off:off + hd].reshape(B, S, hd)
            kh = qkv[:, H + off:H + off + hd].reshape(B, S, hd)
            vh = qkv[:, 2 * H + off:2 * H + off + hd].reshape(B, S, hd)
            s = jnp.einsum('bqd,bkd->bqk', qh, kh,
                           preferred_element_type=jnp.float32) * scale
            s = s - jnp.max(s, axis=-1, keepdims=True)
            p = jnp.exp(s)
            p = p / jnp.sum(p, axis=-1, keepdims=True)   # exact softmax
            oh = jnp.einsum('bqk,bkd->bqd', p, vh,
                            preferred_element_type=jnp.float32)
            heads.append(oh.reshape(M, hd))
        attn = jnp.concatenate(heads, axis=-1)           # single merge, no VMEM
        h = h + jnp.dot(attn.astype(jnp.bfloat16), wo_ref[l],
                        preferred_element_type=jnp.float32) + bo_ref[l]

        # ---- pre-norm feed-forward (bf16 MXU operands, f32 accumulation) --
        n2 = _layer_norm(h, ln2_g_ref[l], ln2_b_ref[l])
        ff = jnp.dot(n2.astype(jnp.bfloat16), w1_ref[l],
                     preferred_element_type=jnp.float32) + b1_ref[l]
        ff = jnp.maximum(ff, 0.0)
        ff = jnp.dot(ff.astype(jnp.bfloat16), w2_ref[l],
                     preferred_element_type=jnp.float32) + b2_ref[l]
        h = h + ff

    # ---- fc + ReLU head: single lane-dense (M, O) write --------------------
    y = jnp.dot(h, fc_w_ref[...],
                preferred_element_type=jnp.float32) + fc_b_ref[...]
    o_ref[...] = jnp.maximum(y, 0.0)


# ----------------------------- parameters -----------------------------------

def make_positional_encoding(max_len, d_model):
    position = jnp.arange(max_len, dtype=jnp.float32)[:, None]
    div_term = jnp.exp(jnp.arange(0, d_model, 2, dtype=jnp.float32)
                       * (-math.log(10000.0) / d_model))
    pe = jnp.zeros((max_len, d_model), jnp.float32)
    pe = pe.at[:, 0::2].set(jnp.sin(position * div_term))
    pe = pe.at[:, 1::2].set(jnp.cos(position * div_term))
    return pe  # (max_len, d_model)


def init_params(key, input_dim, hidden, num_layer, out_dim,
                nhead=8, dim_ff=2048, max_len=64):
    initrange = 0.1
    keys = jax.random.split(key, 2 + num_layer)

    def stacked(idx, shape, scale):
        return jnp.stack(
            [scale * jax.random.normal(jax.random.split(keys[2 + l], 8)[idx],
                                       shape, jnp.float32)
             for l in range(num_layer)], axis=0)

    return dict(
        hidden=hidden, nhead=nhead,
        emb_w=jax.random.uniform(keys[0], (input_dim, hidden), jnp.float32,
                                 -initrange, initrange),
        emb_b=jnp.zeros((1, hidden), jnp.float32),
        fc_w=jax.random.uniform(keys[1], (hidden, out_dim), jnp.float32,
                                -initrange, initrange),
        fc_b=jnp.zeros((1, out_dim), jnp.float32),
        pe=make_positional_encoding(max_len, hidden),
        ln1_g=jnp.ones((num_layer, 1, hidden), jnp.float32),
        ln1_b=jnp.zeros((num_layer, 1, hidden), jnp.float32),
        ln2_g=jnp.ones((num_layer, 1, hidden), jnp.float32),
        ln2_b=jnp.zeros((num_layer, 1, hidden), jnp.float32),
        # Matmul weights stored bf16 (native MXU operand dtype); biases f32.
        wqkv=stacked(0, (hidden, 3 * hidden), 0.05).astype(jnp.bfloat16),
        bqkv=stacked(1, (1, 3 * hidden), 0.01),
        wo=stacked(2, (hidden, hidden), 0.05).astype(jnp.bfloat16),
        bo=stacked(3, (1, hidden), 0.01),
        w1=stacked(4, (hidden, dim_ff), 0.05).astype(jnp.bfloat16),
        b1=stacked(5, (1, dim_ff), 0.01),
        w2=stacked(6, (dim_ff, hidden), 0.05).astype(jnp.bfloat16),
        b2=stacked(7, (1, hidden), 0.01),
    )


# ----------------------------- forward ---------------------------------------

def transformer_encoder_forward(x, params):
    B, S, _ = x.shape
    O = params['fc_w'].shape[1]
    L = params['wqkv'].shape[0]
    nh = params['nhead']
    M = B * S

    inputs = [x, params['emb_w'], params['emb_b'], params['pe'],
              params['ln1_g'], params['ln1_b'], params['wqkv'], params['bqkv'],
              params['wo'], params['bo'],
              params['ln2_g'], params['ln2_b'], params['w1'], params['b1'],
              params['w2'], params['b2'],
              params['fc_w'], params['fc_b']]

    out2d = pl.pallas_call(
        functools.partial(fused_forward_kernel, num_layers=L, nh=nh),
        in_specs=[pl.BlockSpec(memory_space=pltpu.MemorySpace.VMEM)
                  for _ in inputs],
        out_specs=pl.BlockSpec(memory_space=pltpu.MemorySpace.VMEM),
        out_shape=jax.ShapeDtypeStruct((M, O), jnp.float32),
    )(*inputs)
    return out2d.reshape(B, S, O)
    # TODO(synk): shaper.model_tec_drop and criterion are external project deps
    # (reshape head / loss); treated as identity here and loss is not computed.


# ----------------------------- reference (pure JAX) --------------------------

def reference_forward(x, params):
    H = params['hidden']; nh = params['nhead']; hd = H // nh
    B, S, _ = x.shape
    L = params['wqkv'].shape[0]
    scale = 1.0 / math.sqrt(hd)

    def ln(z, g, b):
        mu = z.mean(-1, keepdims=True)
        var = ((z - mu) ** 2).mean(-1, keepdims=True)
        return (z - mu) / jnp.sqrt(var + 1e-5) * g + b

    def bdot(a, w):   # bf16 operands, f32 accumulation — mirrors the kernel
        return jnp.dot(a.astype(jnp.bfloat16), w,
                       preferred_element_type=jnp.float32)

    h = x @ params['emb_w'] + params['emb_b'] + params['pe'][:B][:, None, :]
    for l in range(L):
        n1 = ln(h, params['ln1_g'][l], params['ln1_b'][l])
        qkv = bdot(n1, params['wqkv'][l]) + params['bqkv'][l]
        q, k, v = jnp.split(qkv, 3, axis=-1)
        q = q.reshape(B, S, nh, hd).transpose(0, 2, 1, 3)
        k = k.reshape(B, S, nh, hd).transpose(0, 2, 1, 3)
        v = v.reshape(B, S, nh, hd).transpose(0, 2, 1, 3)
        s = jnp.einsum('bhqd,bhkd->bhqk', q, k) * scale
        p = jax.nn.softmax(s, axis=-1)
        o = jnp.einsum('bhqk,bhkd->bhqd', p, v).transpose(0, 2, 1, 3).reshape(B, S, H)
        h = h + bdot(o, params['wo'][l]) + params['bo'][l]
        n2 = ln(h, params['ln2_g'][l], params['ln2_b'][l])
        ff = jax.nn.relu(bdot(n2, params['w1'][l]) + params['b1'][l])
        ff = bdot(ff, params['w2'][l]) + params['b2'][l]
        h = h + ff
    return jax.nn.relu(h @ params['fc_w'] + params['fc_b'])


# ----------------------------- main ------------------------------------------

if __name__ == "__main__":
    key = jax.random.PRNGKey(0)
    B, S = 2, 8                 # batch, input_time_step
    input_dim = 16              # shaper.get_input_dim()
    hidden = 32                 # hidden_size (nhead=8 -> head_dim=4)
    num_layer = 2
    out_dim = 16                # shaper.get_tec_output_dim()

    pkey, xkey = jax.random.split(key)
    params = init_params(pkey, input_dim, hidden, num_layer, out_dim)
    x = jax.random.normal(xkey, (B, S, input_dim), jnp.float32)

    out = transformer_encoder_forward(x, params)
    out = jax.block_until_ready(out)

    ref = reference_forward(x, params)
    err = float(jnp.max(jnp.abs(out - ref)))
    assert jnp.allclose(out, ref, atol=5e-2, rtol=5e-2), f"max abs err={err}"

    print("KERNEL_OK")
</pallas_src>

<mosaic_0001>
module attributes {stable_mosaic.version = 11 : i64} {
  func.func @fused_forward_kernel(%arg0: memref<2x8x16xf32, #tpu.memory_space<vmem>>, %arg1: memref<16x32xf32, #tpu.memory_space<vmem>>, %arg2: memref<1x32xf32, #tpu.memory_space<vmem>>, %arg3: memref<64x32xf32, #tpu.memory_space<vmem>>, %arg4: memref<2x1x32xf32, #tpu.memory_space<vmem>>, %arg5: memref<2x1x32xf32, #tpu.memory_space<vmem>>, %arg6: memref<2x32x96xbf16, #tpu.memory_space<vmem>>, %arg7: memref<2x1x96xf32, #tpu.memory_space<vmem>>, %arg8: memref<2x32x32xbf16, #tpu.memory_space<vmem>>, %arg9: memref<2x1x32xf32, #tpu.memory_space<vmem>>, %arg10: memref<2x1x32xf32, #tpu.memory_space<vmem>>, %arg11: memref<2x1x32xf32, #tpu.memory_space<vmem>>, %arg12: memref<2x32x2048xbf16, #tpu.memory_space<vmem>>, %arg13: memref<2x1x2048xf32, #tpu.memory_space<vmem>>, %arg14: memref<2x2048x32xbf16, #tpu.memory_space<vmem>>, %arg15: memref<2x1x32xf32, #tpu.memory_space<vmem>>, %arg16: memref<32x16xf32, #tpu.memory_space<vmem>>, %arg17: memref<1x16xf32, #tpu.memory_space<vmem>>, %arg18: memref<16x16xf32, #tpu.memory_space<vmem>>) attributes {dimension_semantics = [], scalar_prefetch = 0 : i64, scratch_operands = 0 : i64, tpu.core_type = #tpu.core_type<tc>} {
    %c0 = arith.constant 0 : index
    %c0_0 = arith.constant 0 : index
    %c0_1 = arith.constant 0 : index
    %0 = vector.load %arg0[%c0, %c0_0, %c0_1] : memref<2x8x16xf32, #tpu.memory_space<vmem>>, vector<2x8x16xf32>
    %1 = vector.shape_cast %0 : vector<2x8x16xf32> to vector<16x16xf32>
    %c0_2 = arith.constant 0 : index
    %c0_3 = arith.constant 0 : index
    %2 = vector.load %arg1[%c0_2, %c0_3] : memref<16x32xf32, #tpu.memory_space<vmem>>, vector<16x32xf32>
    %cst = arith.constant dense<0.000000e+00> : vector<16x32xf32>
    %3 = tpu.matmul %1, %2, %cst {dimension_numbers = #tpu.dot_dimension_numbers<[1], [0], [0], [1], [0, 0, 1, 1], [], []>} : vector<16x16xf32>, vector<16x32xf32>, vector<16x32xf32> -> vector<16x32xf32>
    %c0_4 = arith.constant 0 : index
    %c0_5 = arith.constant 0 : index
    %4 = vector.load %arg2[%c0_4, %c0_5] : memref<1x32xf32, #tpu.memory_space<vmem>>, vector<1x32xf32>
    %5 = vector.broadcast %4 : vector<1x32xf32> to vector<16x32xf32>
    %6 = arith.addf %3, %5 : vector<16x32xf32>
    %c0_6 = arith.constant 0 : index
    %c0_7 = arith.constant 0 : index
    %7 = vector.load %arg3[%c0_6, %c0_7] : memref<64x32xf32, #tpu.memory_space<vmem>>, vector<2x32xf32>
    %8 = vector.shape_cast %7 : vector<2x32xf32> to vector<2x1x32xf32>
    %9 = vector.shape_cast %6 : vector<16x32xf32> to vector<2x8x32xf32>
    %10 = vector.broadcast %8 : vector<2x1x32xf32> to vector<2x8x32xf32>
    %11 = arith.addf %9, %10 : vector<2x8x32xf32>
    %12 = vector.shape_cast %11 : vector<2x8x32xf32> to vector<16x32xf32>
    %c0_8 = arith.constant 0 : index
    %c0_9 = arith.constant 0 : index
    %c0_10 = arith.constant 0 : index
    %13 = vector.load %arg4[%c0_8, %c0_9, %c0_10] : memref<2x1x32xf32, #tpu.memory_space<vmem>>, vector<1x1x32xf32>
    %14 = vector.shape_cast %13 : vector<1x1x32xf32> to vector<1x32xf32>
    %c0_11 = arith.constant 0 : index
    %c0_12 = arith.constant 0 : index
    %c0_13 = arith.constant 0 : index
    %15 = vector.load %arg5[%c0_11, %c0_12, %c0_13] : memref<2x1x32xf32, #tpu.memory_space<vmem>>, vector<1x1x32xf32>
    %16 = vector.shape_cast %15 : vector<1x1x32xf32> to vector<1x32xf32>
    %cst_14 = arith.constant dense<0.000000e+00> : vector<16xf32>
    %17 = vector.multi_reduction <add>, %12, %cst_14 [1] : vector<16x32xf32> to vector<16xf32>
    %18 = vector.shape_cast %17 : vector<16xf32> to vector<16x1xf32>
    %cst_15 = arith.constant 3.200000e+01 : f32
    %19 = vector.broadcast %cst_15 : f32 to vector<16x1xf32>
    %20 = arith.divf %18, %19 : vector<16x1xf32>
    %21 = vector.broadcast %20 : vector<16x1xf32> to vector<16x32xf32>
    %22 = arith.subf %12, %21 : vector<16x32xf32>
    %23 = arith.mulf %22, %22 : vector<16x32xf32>
    %cst_16 = arith.constant dense<0.000000e+00> : vector<16xf32>
    %24 = vector.multi_reduction <add>, %23, %cst_16 [1] : vector<16x32xf32> to vector<16xf32>
    %25 = vector.shape_cast %24 : vector<16xf32> to vector<16x1xf32>
    %cst_17 = arith.constant 3.200000e+01 : f32
    %26 = vector.broadcast %cst_17 : f32 to vector<16x1xf32>
    %27 = arith.divf %25, %26 : vector<16x1xf32>
    %cst_18 = arith.constant 9.99999974E-6 : f32
    %28 = vector.broadcast %cst_18 : f32 to vector<16x1xf32>
    %29 = arith.addf %27, %28 : vector<16x1xf32>
    %30 = math.rsqrt %29 : vector<16x1xf32>
    %31 = vector.broadcast %30 : vector<16x1xf32> to vector<16x32xf32>
    %32 = arith.mulf %22, %31 : vector<16x32xf32>
    %33 = vector.broadcast %14 : vector<1x32xf32> to vector<16x32xf32>
    %34 = arith.mulf %32, %33 : vector<16x32xf32>
    %35 = vector.broadcast %16 : vector<1x32xf32> to vector<16x32xf32>
    %36 = arith.addf %34, %35 : vector<16x32xf32>
    %37 = arith.truncf %36 : vector<16x32xf32> to vector<16x32xbf16>
    %c0_19 = arith.constant 0 : index
    %c0_20 = arith.constant 0 : index
    %c0_21 = arith.constant 0 : index
    %38 = vector.load %arg6[%c0_19, %c0_20, %c0_21] : memref<2x32x96xbf16, #tpu.memory_space<vmem>>, vector<1x32x96xbf16>
    %39 = vector.shape_cast %38 : vector<1x32x96xbf16> to vector<32x96xbf16>
    %cst_22 = arith.constant dense<0.000000e+00> : vector<16x96xf32>
    %40 = tpu.matmul %37, %39, %cst_22 {dimension_numbers = #tpu.dot_dimension_numbers<[1], [0], [0], [1], [0, 0, 1, 1], [], []>} : vector<16x32xbf16>, vector<32x96xbf16>, vector<16x96xf32> -> vector<16x96xf32>
    %c0_23 = arith.constant 0 : index
    %c0_24 = arith.constant 0 : index
    %c0_25 = arith.constant 0 : index
    %41 = vector.load %arg7[%c0_23, %c0_24, %c0_25] : memref<2x1x96xf32, #tpu.memory_space<vmem>>, vector<1x1x96xf32>
    %42 = vector.shape_cast %41 : vector<1x1x96xf32> to vector<1x96xf32>
    %43 = vector.broadcast %42 : vector<1x96xf32> to vector<16x96xf32>
    %44 = arith.addf %40, %43 : vector<16x96xf32>
    %45 = vector.extract_strided_slice %44 {offsets = [0, 0], sizes = [16, 4], strides = [1, 1]} : vector<16x96xf32> to vector<16x4xf32>
    %46 = vector.shape_cast %45 : vector<16x4xf32> to vector<2x8x4xf32>
    %47 = vector.extract_strided_slice %44 {offsets = [0, 32], sizes = [16, 4], strides = [1, 1]} : vector<16x96xf32> to vector<16x4xf32>
    %48 = vector.shape_cast %47 : vector<16x4xf32> to vector<2x8x4xf32>
    %49 = vector.extract_strided_slice %44 {offsets = [0, 64], sizes = [16, 4], strides = [1, 1]} : vector<16x96xf32> to vector<16x4xf32>
    %50 = vector.shape_cast %49 : vector<16x4xf32> to vector<2x8x4xf32>
    "tpu.trace_start"() <{level = 10 : i32, message = "bqd,bkd->bqk"}> : () -> ()
    %cst_26 = arith.constant dense<0.000000e+00> : vector<2x8x8xf32>
    %51 = tpu.matmul %46, %48, %cst_26 {dimension_numbers = #tpu.dot_dimension_numbers<[2], [2], [1], [1], [0, 0, 0, 1, 1, 1], [0], [0]>} : vector<2x8x4xf32>, vector<2x8x4xf32>, vector<2x8x8xf32> -> vector<2x8x8xf32>
    "tpu.trace_stop"() : () -> ()
    %cst_27 = arith.constant 5.000000e-01 : f32
    %52 = vector.broadcast %cst_27 : f32 to vector<2x8x8xf32>
    %53 = arith.mulf %51, %52 : vector<2x8x8xf32>
    %cst_28 = arith.constant dense<0xFF800000> : vector<2x8xf32>
    %54 = vector.multi_reduction <maximumf>, %53, %cst_28 [2] : vector<2x8x8xf32> to vector<2x8xf32>
    %55 = vector.shape_cast %54 : vector<2x8xf32> to vector<2x8x1xf32>
    %56 = vector.broadcast %55 : vector<2x8x1xf32> to vector<2x8x8xf32>
    %57 = arith.subf %53, %56 : vector<2x8x8xf32>
    %58 = math.exp %57 : vector<2x8x8xf32>
    %cst_29 = arith.constant dense<0.000000e+00> : vector<2x8xf32>
    %59 = vector.multi_reduction <add>, %58, %cst_29 [2] : vector<2x8x8xf32> to vector<2x8xf32>
    %60 = vector.shape_cast %59 : vector<2x8xf32> to vector<2x8x1xf32>
    %61 = vector.broadcast %60 : vector<2x8x1xf32> to vector<2x8x8xf32>
    %62 = arith.divf %58, %61 : vector<2x8x8xf32>
    "tpu.trace_start"() <{level = 10 : i32, message = "bqk,bkd->bqd"}> : () -> ()
    %cst_30 = arith.constant dense<0.000000e+00> : vector<2x8x4xf32>
    %63 = tpu.matmul %62, %50, %cst_30 {dimension_numbers = #tpu.dot_dimension_numbers<[2], [1], [1], [2], [0, 0, 0, 1, 1, 2], [0], [0]>} : vector<2x8x8xf32>, vector<2x8x4xf32>, vector<2x8x4xf32> -> vector<2x8x4xf32>
    "tpu.trace_stop"() : () -> ()
    %64 = vector.shape_cast %63 : vector<2x8x4xf32> to vector<16x4xf32>
    %65 = vector.extract_strided_slice %44 {offsets = [0, 4], sizes = [16, 4], strides = [1, 1]} : vector<16x96xf32> to vector<16x4xf32>
    %66 = vector.shape_cast %65 : vector<16x4xf32> to vector<2x8x4xf32>
    %67 = vector.extract_strided_slice %44 {offsets = [0, 36], sizes = [16, 4], strides = [1, 1]} : vector<16x96xf32> to vector<16x4xf32>
    %68 = vector.shape_cast %67 : vector<16x4xf32> to vector<2x8x4xf32>
    %69 = vector.extract_strided_slice %44 {offsets = [0, 68], sizes = [16, 4], strides = [1, 1]} : vector<16x96xf32> to vector<16x4xf32>
    %70 = vector.shape_cast %69 : vector<16x4xf32> to vector<2x8x4xf32>
    "tpu.trace_start"() <{level = 10 : i32, message = "bqd,bkd->bqk"}> : () -> ()
    %cst_31 = arith.constant dense<0.000000e+00> : vector<2x8x8xf32>
    %71 = tpu.matmul %66, %68, %cst_31 {dimension_numbers = #tpu.dot_dimension_numbers<[2], [2], [1], [1], [0, 0, 0, 1, 1, 1], [0], [0]>} : vector<2x8x4xf32>, vector<2x8x4xf32>, vector<2x8x8xf32> -> vector<2x8x8xf32>
    "tpu.trace_stop"() : () -> ()
    %cst_32 = arith.constant 5.000000e-01 : f32
    %72 = vector.broadcast %cst_32 : f32 to vector<2x8x8xf32>
    %73 = arith.mulf %71, %72 : vector<2x8x8xf32>
    %cst_33 = arith.constant dense<0xFF800000> : vector<2x8xf32>
    %74 = vector.multi_reduction <maximumf>, %73, %cst_33 [2] : vector<2x8x8xf32> to vector<2x8xf32>
    %75 = vector.shape_cast %74 : vector<2x8xf32> to vector<2x8x1xf32>
    %76 = vector.broadcast %75 : vector<2x8x1xf32> to vector<2x8x8xf32>
    %77 = arith.subf %73, %76 : vector<2x8x8xf32>
    %78 = math.exp %77 : vector<2x8x8xf32>
    %cst_34 = arith.constant dense<0.000000e+00> : vector<2x8xf32>
    %79 = vector.multi_reduction <add>, %78, %cst_34 [2] : vector<2x8x8xf32> to vector<2x8xf32>
    %80 = vector.shape_cast %79 : vector<2x8xf32> to vector<2x8x1xf32>
    %81 = vector.broadcast %80 : vector<2x8x1xf32> to vector<2x8x8xf32>
    %82 = arith.divf %78, %81 : vector<2x8x8xf32>
    "tpu.trace_start"() <{level = 10 : i32, message = "bqk,bkd->bqd"}> : () -> ()
    %cst_35 = arith.constant dense<0.000000e+00> : vector<2x8x4xf32>
    %83 = tpu.matmul %82, %70, %cst_35 {dimension_numbers = #tpu.dot_dimension_numbers<[2], [1], [1], [2], [0, 0, 0, 1, 1, 2], [0], [0]>} : vector<2x8x8xf32>, vector<2x8x4xf32>, vector<2x8x4xf32> -> vector<2x8x4xf32>
    "tpu.trace_stop"() : () -> ()
    %84 = vector.shape_cast %83 : vector<2x8x4xf32> to vector<16x4xf32>
    %85 = vector.extract_strided_slice %44 {offsets = [0, 8], sizes = [16, 4], strides = [1, 1]} : vector<16x96xf32> to vector<16x4xf32>
    %86 = vector.shape_cast %85 : vector<16x4xf32> to vector<2x8x4xf32>
    %87 = vector.extract_strided_slice %44 {offsets = [0, 40], sizes = [16, 4], strides = [1, 1]} : vector<16x96xf32> to vector<16x4xf32>
    %88 = vector.shape_cast %87 : vector<16x4xf32> to vector<2x8x4xf32>
    %89 = vector.extract_strided_slice %44 {offsets = [0, 72], sizes = [16, 4], strides = [1, 1]} : vector<16x96xf32> to vector<16x4xf32>
    %90 = vector.shape_cast %89 : vector<16x4xf32> to vector<2x8x4xf32>
    "tpu.trace_start"() <{level = 10 : i32, message = "bqd,bkd->bqk"}> : () -> ()
    %cst_36 = arith.constant dense<0.000000e+00> : vector<2x8x8xf32>
    %91 = tpu.matmul %86, %88, %cst_36 {dimension_numbers = #tpu.dot_dimension_numbers<[2], [2], [1], [1], [0, 0, 0, 1, 1, 1], [0], [0]>} : vector<2x8x4xf32>, vector<2x8x4xf32>, vector<2x8x8xf32> -> vector<2x8x8xf32>
    "tpu.trace_stop"() : () -> ()
    %cst_37 = arith.constant 5.000000e-01 : f32
    %92 = vector.broadcast %cst_37 : f32 to vector<2x8x8xf32>
    %93 = arith.mulf %91, %92 : vector<2x8x8xf32>
    %cst_38 = arith.constant dense<0xFF800000> : vector<2x8xf32>
    %94 = vector.multi_reduction <maximumf>, %93, %cst_38 [2] : vector<2x8x8xf32> to vector<2x8xf32>
    %95 = vector.shape_cast %94 : vector<2x8xf32> to vector<2x8x1xf32>
    %96 = vector.broadcast %95 : vector<2x8x1xf32> to vector<2x8x8xf32>
    %97 = arith.subf %93, %96 : vector<2x8x8xf32>
    %98 = math.exp %97 : vector<2x8x8xf32>
    %cst_39 = arith.constant dense<0.000000e+00> : vector<2x8xf32>
    %99 = vector.multi_reduction <add>, %98, %cst_39 [2] : vector<2x8x8xf32> to vector<2x8xf32>
    %100 = vector.shape_cast %99 : vector<2x8xf32> to vector<2x8x1xf32>
    %101 = vector.broadcast %100 : vector<2x8x1xf32> to vector<2x8x8xf32>
    %102 = arith.divf %98, %101 : vector<2x8x8xf32>
    "tpu.trace_start"() <{level = 10 : i32, message = "bqk,bkd->bqd"}> : () -> ()
    %cst_40 = arith.constant dense<0.000000e+00> : vector<2x8x4xf32>
    %103 = tpu.matmul %102, %90, %cst_40 {dimension_numbers = #tpu.dot_dimension_numbers<[2], [1], [1], [2], [0, 0, 0, 1, 1, 2], [0], [0]>} : vector<2x8x8xf32>, vector<2x8x4xf32>, vector<2x8x4xf32> -> vector<2x8x4xf32>
    "tpu.trace_stop"() : () -> ()
    %104 = vector.shape_cast %103 : vector<2x8x4xf32> to vector<16x4xf32>
    %105 = vector.extract_strided_slice %44 {offsets = [0, 12], sizes = [16, 4], strides = [1, 1]} : vector<16x96xf32> to vector<16x4xf32>
    %106 = vector.shape_cast %105 : vector<16x4xf32> to vector<2x8x4xf32>
    %107 = vector.extract_strided_slice %44 {offsets = [0, 44], sizes = [16, 4], strides = [1, 1]} : vector<16x96xf32> to vector<16x4xf32>
    %108 = vector.shape_cast %107 : vector<16x4xf32> to vector<2x8x4xf32>
    %109 = vector.extract_strided_slice %44 {offsets = [0, 76], sizes = [16, 4], strides = [1, 1]} : vector<16x96xf32> to vector<16x4xf32>
    %110 = vector.shape_cast %109 : vector<16x4xf32> to vector<2x8x4xf32>
    "tpu.trace_start"() <{level = 10 : i32, message = "bqd,bkd->bqk"}> : () -> ()
    %cst_41 = arith.constant dense<0.000000e+00> : vector<2x8x8xf32>
    %111 = tpu.matmul %106, %108, %cst_41 {dimension_numbers = #tpu.dot_dimension_numbers<[2], [2], [1], [1], [0, 0, 0, 1, 1, 1], [0], [0]>} : vector<2x8x4xf32>, vector<2x8x4xf32>, vector<2x8x8xf32> -> vector<2x8x8xf32>
    "tpu.trace_stop"() : () -> ()
    %cst_42 = arith.constant 5.000000e-01 : f32
    %112 = vector.broadcast %cst_42 : f32 to vector<2x8x8xf32>
    %113 = arith.mulf %111, %112 : vector<2x8x8xf32>
    %cst_43 = arith.constant dense<0xFF800000> : vector<2x8xf32>
    %114 = vector.multi_reduction <maximumf>, %113, %cst_43 [2] : vector<2x8x8xf32> to vector<2x8xf32>
    %115 = vector.shape_cast %114 : vector<2x8xf32> to vector<2x8x1xf32>
    %116 = vector.broadcast %115 : vector<2x8x1xf32> to vector<2x8x8xf32>
    %117 = arith.subf %113, %116 : vector<2x8x8xf32>
    %118 = math.exp %117 : vector<2x8x8xf32>
    %cst_44 = arith.constant dense<0.000000e+00> : vector<2x8xf32>
    %119 = vector.multi_reduction <add>, %118, %cst_44 [2] : vector<2x8x8xf32> to vector<2x8xf32>
    %120 = vector.shape_cast %119 : vector<2x8xf32> to vector<2x8x1xf32>
    %121 = vector.broadcast %120 : vector<2x8x1xf32> to vector<2x8x8xf32>
    %122 = arith.divf %118, %121 : vector<2x8x8xf32>
    "tpu.trace_start"() <{level = 10 : i32, message = "bqk,bkd->bqd"}> : () -> ()
    %cst_45 = arith.constant dense<0.000000e+00> : vector<2x8x4xf32>
    %123 = tpu.matmul %122, %110, %cst_45 {dimension_numbers = #tpu.dot_dimension_numbers<[2], [1], [1], [2], [0, 0, 0, 1, 1, 2], [0], [0]>} : vector<2x8x8xf32>, vector<2x8x4xf32>, vector<2x8x4xf32> -> vector<2x8x4xf32>
    "tpu.trace_stop"() : () -> ()
    %124 = vector.shape_cast %123 : vector<2x8x4xf32> to vector<16x4xf32>
    %125 = vector.extract_strided_slice %44 {offsets = [0, 16], sizes = [16, 4], strides = [1, 1]} : vector<16x96xf32> to vector<16x4xf32>
    %126 = vector.shape_cast %125 : vector<16x4xf32> to vector<2x8x4xf32>
    %127 = vector.extract_strided_slice %44 {offsets = [0, 48], sizes = [16, 4], strides = [1, 1]} : vector<16x96xf32> to vector<16x4xf32>
    %128 = vector.shape_cast %127 : vector<16x4xf32> to vector<2x8x4xf32>
    %129 = vector.extract_strided_slice %44 {offsets = [0, 80], sizes = [16, 4], strides = [1, 1]} : vector<16x96xf32> to vector<16x4xf32>
    %130 = vector.shape_cast %129 : vector<16x4xf32> to vector<2x8x4xf32>
    "tpu.trace_start"() <{level = 10 : i32, message = "bqd,bkd->bqk"}> : () -> ()
    %cst_46 = arith.constant dense<0.000000e+00> : vector<2x8x8xf32>
    %131 = tpu.matmul %126, %128, %cst_46 {dimension_numbers = #tpu.dot_dimension_numbers<[2], [2], [1], [1], [0, 0, 0, 1, 1, 1], [0], [0]>} : vector<2x8x4xf32>, vector<2x8x4xf32>, vector<2x8x8xf32> -> vector<2x8x8xf32>
    "tpu.trace_stop"() : () -> ()
    %cst_47 = arith.constant 5.000000e-01 : f32
    %132 = vector.broadcast %cst_47 : f32 to vector<2x8x8xf32>
    %133 = arith.mulf %131, %132 : vector<2x8x8xf32>
    %cst_48 = arith.constant dense<0xFF800000> : vector<2x8xf32>
    %134 = vector.multi_reduction <maximumf>, %133, %cst_48 [2] : vector<2x8x8xf32> to vector<2x8xf32>
    %135 = vector.shape_cast %134 : vector<2x8xf32> to vector<2x8x1xf32>
    %136 = vector.broadcast %135 : vector<2x8x1xf32> to vector<2x8x8xf32>
    %137 = arith.subf %133, %136 : vector<2x8x8xf32>
    %138 = math.exp %137 : vector<2x8x8xf32>
    %cst_49 = arith.constant dense<0.000000e+00> : vector<2x8xf32>
    %139 = vector.multi_reduction <add>, %138, %cst_49 [2] : vector<2x8x8xf32> to vector<2x8xf32>
    %140 = vector.shape_cast %139 : vector<2x8xf32> to vector<2x8x1xf32>
    %141 = vector.broadcast %140 : vector<2x8x1xf32> to vector<2x8x8xf32>
    %142 = arith.divf %138, %141 : vector<2x8x8xf32>
    "tpu.trace_start"() <{level = 10 : i32, message = "bqk,bkd->bqd"}> : () -> ()
    %cst_50 = arith.constant dense<0.000000e+00> : vector<2x8x4xf32>
    %143 = tpu.matmul %142, %130, %cst_50 {dimension_numbers = #tpu.dot_dimension_numbers<[2], [1], [1], [2], [0, 0, 0, 1, 1, 2], [0], [0]>} : vector<2x8x8xf32>, vector<2x8x4xf32>, vector<2x8x4xf32> -> vector<2x8x4xf32>
    "tpu.trace_stop"() : () -> ()
    %144 = vector.shape_cast %143 : vector<2x8x4xf32> to vector<16x4xf32>
    %145 = vector.extract_strided_slice %44 {offsets = [0, 20], sizes = [16, 4], strides = [1, 1]} : vector<16x96xf32> to vector<16x4xf32>
    %146 = vector.shape_cast %145 : vector<16x4xf32> to vector<2x8x4xf32>
    %147 = vector.extract_strided_slice %44 {offsets = [0, 52], sizes = [16, 4], strides = [1, 1]} : vector<16x96xf32> to vector<16x4xf32>
    %148 = vector.shape_cast %147 : vector<16x4xf32> to vector<2x8x4xf32>
    %149 = vector.extract_strided_slice %44 {offsets = [0, 84], sizes = [16, 4], strides = [1, 1]} : vector<16x96xf32> to vector<16x4xf32>
    %150 = vector.shape_cast %149 : vector<16x4xf32> to vector<2x8x4xf32>
    "tpu.trace_start"() <{level = 10 : i32, message = "bqd,bkd->bqk"}> : () -> ()
    %cst_51 = arith.constant dense<0.000000e+00> : vector<2x8x8xf32>
    %151 = tpu.matmul %146, %148, %cst_51 {dimension_numbers = #tpu.dot_dimension_numbers<[2], [2], [1], [1], [0, 0, 0, 1, 1, 1], [0], [0]>} : vector<2x8x4xf32>, vector<2x8x4xf32>, vector<2x8x8xf32> -> vector<2x8x8xf32>
    "tpu.trace_stop"() : () -> ()
    %cst_52 = arith.constant 5.000000e-01 : f32
    %152 = vector.broadcast %cst_52 : f32 to vector<2x8x8xf32>
    %153 = arith.mulf %151, %152 : vector<2x8x8xf32>
    %cst_53 = arith.constant dense<0xFF800000> : vector<2x8xf32>
    %154 = vector.multi_reduction <maximumf>, %153, %cst_53 [2] : vector<2x8x8xf32> to vector<2x8xf32>
    %155 = vector.shape_cast %154 : vector<2x8xf32> to vector<2x8x1xf32>
    %156 = vector.broadcast %155 : vector<2x8x1xf32> to vector<2x8x8xf32>
    %157 = arith.subf %153, %156 : vector<2x8x8xf32>
    %158 = math.exp %157 : vector<2x8x8xf32>
    %cst_54 = arith.constant dense<0.000000e+00> : vector<2x8xf32>
    %159 = vector.multi_reduction <add>, %158, %cst_54 [2] : vector<2x8x8xf32> to vector<2x8xf32>
    %160 = vector.shape_cast %159 : vector<2x8xf32> to vector<2x8x1xf32>
    %161 = vector.broadcast %160 : vector<2x8x1xf32> to vector<2x8x8xf32>
    %162 = arith.divf %158, %161 : vector<2x8x8xf32>
    "tpu.trace_start"() <{level = 10 : i32, message = "bqk,bkd->bqd"}> : () -> ()
    %cst_55 = arith.constant dense<0.000000e+00> : vector<2x8x4xf32>
    %163 = tpu.matmul %162, %150, %cst_55 {dimension_numbers = #tpu.dot_dimension_numbers<[2], [1], [1], [2], [0, 0, 0, 1, 1, 2], [0], [0]>} : vector<2x8x8xf32>, vector<2x8x4xf32>, vector<2x8x4xf32> -> vector<2x8x4xf32>
    "tpu.trace_stop"() : () -> ()
    %164 = vector.shape_cast %163 : vector<2x8x4xf32> to vector<16x4xf32>
    %165 = vector.extract_strided_slice %44 {offsets = [0, 24], sizes = [16, 4], strides = [1, 1]} : vector<16x96xf32> to vector<16x4xf32>
    %166 = vector.shape_cast %165 : vector<16x4xf32> to vector<2x8x4xf32>
    %167 = vector.extract_strided_slice %44 {offsets = [0, 56], sizes = [16, 4], strides = [1, 1]} : vector<16x96xf32> to vector<16x4xf32>
    %168 = vector.shape_cast %167 : vector<16x4xf32> to vector<2x8x4xf32>
    %169 = vector.extract_strided_slice %44 {offsets = [0, 88], sizes = [16, 4], strides = [1, 1]} : vector<16x96xf32> to vector<16x4xf32>
    %170 = vector.shape_cast %169 : vector<16x4xf32> to vector<2x8x4xf32>
    "tpu.trace_start"() <{level = 10 : i32, message = "bqd,bkd->bqk"}> : () -> ()
    %cst_56 = arith.constant dense<0.000000e+00> : vector<2x8x8xf32>
    %171 = tpu.matmul %166, %168, %cst_56 {dimension_numbers = #tpu.dot_dimension_numbers<[2], [2], [1], [1], [0, 0, 0, 1, 1, 1], [0], [0]>} : vector<2x8x4xf32>, vector<2x8x4xf32>, vector<2x8x8xf32> -> vector<2x8x8xf32>
    "tpu.trace_stop"() : () -> ()
    %cst_57 = arith.constant 5.000000e-01 : f32
    %172 = vector.broadcast %cst_57 : f32 to vector<2x8x8xf32>
    %173 = arith.mulf %171, %172 : vector<2x8x8xf32>
    %cst_58 = arith.constant dense<0xFF800000> : vector<2x8xf32>
    %174 = vector.multi_reduction <maximumf>, %173, %cst_58 [2] : vector<2x8x8xf32> to vector<2x8xf32>
    %175 = vector.shape_cast %174 : vector<2x8xf32> to vector<2x8x1xf32>
    %176 = vector.broadcast %175 : vector<2x8x1xf32> to vector<2x8x8xf32>
    %177 = arith.subf %173, %176 : vector<2x8x8xf32>
    %178 = math.exp %177 : vector<2x8x8xf32>
    %cst_59 = arith.constant dense<0.000000e+00> : vector<2x8xf32>
    %179 = vector.multi_reduction <add>, %178, %cst_59 [2] : vector<2x8x8xf32> to vector<2x8xf32>
    %180 = vector.shape_cast %179 : vector<2x8xf32> to vector<2x8x1xf32>
    %181 = vector.broadcast %180 : vector<2x8x1xf32> to vector<2x8x8xf32>
    %182 = arith.divf %178, %181 : vector<2x8x8xf32>
    "tpu.trace_start"() <{level = 10 : i32, message = "bqk,bkd->bqd"}> : () -> ()
    %cst_60 = arith.constant dense<0.000000e+00> : vector<2x8x4xf32>
    %183 = tpu.matmul %182, %170, %cst_60 {dimension_numbers = #tpu.dot_dimension_numbers<[2], [1], [1], [2], [0, 0, 0, 1, 1, 2], [0], [0]>} : vector<2x8x8xf32>, vector<2x8x4xf32>, vector<2x8x4xf32> -> vector<2x8x4xf32>
    "tpu.trace_stop"() : () -> ()
    %184 = vector.shape_cast %183 : vector<2x8x4xf32> to vector<16x4xf32>
    %185 = vector.extract_strided_slice %44 {offsets = [0, 28], sizes = [16, 4], strides = [1, 1]} : vector<16x96xf32> to vector<16x4xf32>
    %186 = vector.shape_cast %185 : vector<16x4xf32> to vector<2x8x4xf32>
    %187 = vector.extract_strided_slice %44 {offsets = [0, 60], sizes = [16, 4], strides = [1, 1]} : vector<16x96xf32> to vector<16x4xf32>
    %188 = vector.shape_cast %187 : vector<16x4xf32> to vector<2x8x4xf32>
    %189 = vector.extract_strided_slice %44 {offsets = [0, 92], sizes = [16, 4], strides = [1, 1]} : vector<16x96xf32> to vector<16x4xf32>
    %190 = vector.shape_cast %189 : vector<16x4xf32> to vector<2x8x4xf32>
    "tpu.trace_start"() <{level = 10 : i32, message = "bqd,bkd->bqk"}> : () -> ()
    %cst_61 = arith.constant dense<0.000000e+00> : vector<2x8x8xf32>
    %191 = tpu.matmul %186, %188, %cst_61 {dimension_numbers = #tpu.dot_dimension_numbers<[2], [2], [1], [1], [0, 0, 0, 1, 1, 1], [0], [0]>} : vector<2x8x4xf32>, vector<2x8x4xf32>, vector<2x8x8xf32> -> vector<2x8x8xf32>
    "tpu.trace_stop"() : () -> ()
    %cst_62 = arith.constant 5.000000e-01 : f32
    %192 = vector.broadcast %cst_62 : f32 to vector<2x8x8xf32>
    %193 = arith.mulf %191, %192 : vector<2x8x8xf32>
    %cst_63 = arith.constant dense<0xFF800000> : vector<2x8xf32>
    %194 = vector.multi_reduction <maximumf>, %193, %cst_63 [2] : vector<2x8x8xf32> to vector<2x8xf32>
    %195 = vector.shape_cast %194 : vector<2x8xf32> to vector<2x8x1xf32>
    %196 = vector.broadcast %195 : vector<2x8x1xf32> to vector<2x8x8xf32>
    %197 = arith.subf %193, %196 : vector<2x8x8xf32>
    %198 = math.exp %197 : vector<2x8x8xf32>
    %cst_64 = arith.constant dense<0.000000e+00> : vector<2x8xf32>
    %199 = vector.multi_reduction <add>, %198, %cst_64 [2] : vector<2x8x8xf32> to vector<2x8xf32>
    %200 = vector.shape_cast %199 : vector<2x8xf32> to vector<2x8x1xf32>
    %201 = vector.broadcast %200 : vector<2x8x1xf32> to vector<2x8x8xf32>
    %202 = arith.divf %198, %201 : vector<2x8x8xf32>
    "tpu.trace_start"() <{level = 10 : i32, message = "bqk,bkd->bqd"}> : () -> ()
    %cst_65 = arith.constant dense<0.000000e+00> : vector<2x8x4xf32>
    %203 = tpu.matmul %202, %190, %cst_65 {dimension_numbers = #tpu.dot_dimension_numbers<[2], [1], [1], [2], [0, 0, 0, 1, 1, 2], [0], [0]>} : vector<2x8x8xf32>, vector<2x8x4xf32>, vector<2x8x4xf32> -> vector<2x8x4xf32>
    "tpu.trace_stop"() : () -> ()
    %204 = vector.shape_cast %203 : vector<2x8x4xf32> to vector<16x4xf32>
    %205 = tpu.concatenate %64, %84, %104, %124, %144, %164, %184, %204 in 1 : vector<16x4xf32>, vector<16x4xf32>, vector<16x4xf32>, vector<16x4xf32>, vector<16x4xf32>, vector<16x4xf32>, vector<16x4xf32>, vector<16x4xf32> -> vector<16x32xf32>
    %206 = arith.truncf %205 : vector<16x32xf32> to vector<16x32xbf16>
    %c0_66 = arith.constant 0 : index
    %c0_67 = arith.constant 0 : index
    %c0_68 = arith.constant 0 : index
    %207 = vector.load %arg8[%c0_66, %c0_67, %c0_68] : memref<2x32x32xbf16, #tpu.memory_space<vmem>>, vector<1x32x32xbf16>
    %208 = vector.shape_cast %207 : vector<1x32x32xbf16> to vector<32x32xbf16>
    %cst_69 = arith.constant dense<0.000000e+00> : vector<16x32xf32>
    %209 = tpu.matmul %206, %208, %cst_69 {dimension_numbers = #tpu.dot_dimension_numbers<[1], [0], [0], [1], [0, 0, 1, 1], [], []>} : vector<16x32xbf16>, vector<32x32xbf16>, vector<16x32xf32> -> vector<16x32xf32>
    %210 = arith.addf %12, %209 : vector<16x32xf32>
    %c0_70 = arith.constant 0 : index
    %c0_71 = arith.constant 0 : index
    %c0_72 = arith.constant 0 : index
    %211 = vector.load %arg9[%c0_70, %c0_71, %c0_72] : memref<2x1x32xf32, #tpu.memory_space<vmem>>, vector<1x1x32xf32>
    %212 = vector.shape_cast %211 : vector<1x1x32xf32> to vector<1x32xf32>
    %213 = vector.broadcast %212 : vector<1x32xf32> to vector<16x32xf32>
    %214 = arith.addf %210, %213 : vector<16x32xf32>
    %c0_73 = arith.constant 0 : index
    %c0_74 = arith.constant 0 : index
    %c0_75 = arith.constant 0 : index
    %215 = vector.load %arg10[%c0_73, %c0_74, %c0_75] : memref<2x1x32xf32, #tpu.memory_space<vmem>>, vector<1x1x32xf32>
    %216 = vector.shape_cast %215 : vector<1x1x32xf32> to vector<1x32xf32>
    %c0_76 = arith.constant 0 : index
    %c0_77 = arith.constant 0 : index
    %c0_78 = arith.constant 0 : index
    %217 = vector.load %arg11[%c0_76, %c0_77, %c0_78] : memref<2x1x32xf32, #tpu.memory_space<vmem>>, vector<1x1x32xf32>
    %218 = vector.shape_cast %217 : vector<1x1x32xf32> to vector<1x32xf32>
    %cst_79 = arith.constant dense<0.000000e+00> : vector<16xf32>
    %219 = vector.multi_reduction <add>, %214, %cst_79 [1] : vector<16x32xf32> to vector<16xf32>
    %220 = vector.shape_cast %219 : vector<16xf32> to vector<16x1xf32>
    %cst_80 = arith.constant 3.200000e+01 : f32
    %221 = vector.broadcast %cst_80 : f32 to vector<16x1xf32>
    %222 = arith.divf %220, %221 : vector<16x1xf32>
    %223 = vector.broadcast %222 : vector<16x1xf32> to vector<16x32xf32>
    %224 = arith.subf %214, %223 : vector<16x32xf32>
    %225 = arith.mulf %224, %224 : vector<16x32xf32>
    %cst_81 = arith.constant dense<0.000000e+00> : vector<16xf32>
    %226 = vector.multi_reduction <add>, %225, %cst_81 [1] : vector<16x32xf32> to vector<16xf32>
    %227 = vector.shape_cast %226 : vector<16xf32> to vector<16x1xf32>
    %cst_82 = arith.constant 3.200000e+01 : f32
    %228 = vector.broadcast %cst_82 : f32 to vector<16x1xf32>
    %229 = arith.divf %227, %228 : vector<16x1xf32>
    %cst_83 = arith.constant 9.99999974E-6 : f32
    %230 = vector.broadcast %cst_83 : f32 to vector<16x1xf32>
    %231 = arith.addf %229, %230 : vector<16x1xf32>
    %232 = math.rsqrt %231 : vector<16x1xf32>
    %233 = vector.broadcast %232 : vector<16x1xf32> to vector<16x32xf32>
    %234 = arith.mulf %224, %233 : vector<16x32xf32>
    %235 = vector.broadcast %216 : vector<1x32xf32> to vector<16x32xf32>
    %236 = arith.mulf %234, %235 : vector<16x32xf32>
    %237 = vector.broadcast %218 : vector<1x32xf32> to vector<16x32xf32>
    %238 = arith.addf %236, %237 : vector<16x32xf32>
    %239 = arith.truncf %238 : vector<16x32xf32> to vector<16x32xbf16>
    %c0_84 = arith.constant 0 : index
    %c0_85 = arith.constant 0 : index
    %c0_86 = arith.constant 0 : index
    %240 = vector.load %arg12[%c0_84, %c0_85, %c0_86] : memref<2x32x2048xbf16, #tpu.memory_space<vmem>>, vector<1x32x2048xbf16>
    %241 = vector.shape_cast %240 : vector<1x32x2048xbf16> to vector<32x2048xbf16>
    %cst_87 = arith.constant dense<0.000000e+00> : vector<16x2048xf32>
    %242 = tpu.matmul %239, %241, %cst_87 {dimension_numbers = #tpu.dot_dimension_numbers<[1], [0], [0], [1], [0, 0, 1, 1], [], []>} : vector<16x32xbf16>, vector<32x2048xbf16>, vector<16x2048xf32> -> vector<16x2048xf32>
    %c0_88 = arith.constant 0 : index
    %c0_89 = arith.constant 0 : index
    %c0_90 = arith.constant 0 : index
    %243 = vector.load %arg13[%c0_88, %c0_89, %c0_90] : memref<2x1x2048xf32, #tpu.memory_space<vmem>>, vector<1x1x2048xf32>
    %244 = vector.shape_cast %243 : vector<1x1x2048xf32> to vector<1x2048xf32>
    %245 = vector.broadcast %244 : vector<1x2048xf32> to vector<16x2048xf32>
    %246 = arith.addf %242, %245 : vector<16x2048xf32>
    %cst_91 = arith.constant 0.000000e+00 : f32
    %247 = vector.broadcast %cst_91 : f32 to vector<16x2048xf32>
    %248 = arith.maximumf %246, %247 : vector<16x2048xf32>
    %249 = arith.truncf %248 : vector<16x2048xf32> to vector<16x2048xbf16>
    %c0_92 = arith.constant 0 : index
    %c0_93 = arith.constant 0 : index
    %c0_94 = arith.constant 0 : index
    %250 = vector.load %arg14[%c0_92, %c0_93, %c0_94] : memref<2x2048x32xbf16, #tpu.memory_space<vmem>>, vector<1x2048x32xbf16>
    %251 = vector.shape_cast %250 : vector<1x2048x32xbf16> to vector<2048x32xbf16>
    %cst_95 = arith.constant dense<0.000000e+00> : vector<16x32xf32>
    %252 = tpu.matmul %249, %251, %cst_95 {dimension_numbers = #tpu.dot_dimension_numbers<[1], [0], [0], [1], [0, 0, 1, 1], [], []>} : vector<16x2048xbf16>, vector<2048x32xbf16>, vector<16x32xf32> -> vector<16x32xf32>
    %c0_96 = arith.constant 0 : index
    %c0_97 = arith.constant 0 : index
    %c0_98 = arith.constant 0 : index
    %253 = vector.load %arg15[%c0_96, %c0_97, %c0_98] : memref<2x1x32xf32, #tpu.memory_space<vmem>>, vector<1x1x32xf32>
    %254 = vector.shape_cast %253 : vector<1x1x32xf32> to vector<1x32xf32>
    %255 = vector.broadcast %254 : vector<1x32xf32> to vector<16x32xf32>
    %256 = arith.addf %252, %255 : vector<16x32xf32>
    %257 = arith.addf %214, %256 : vector<16x32xf32>
    %c1 = arith.constant 1 : index
    %c0_99 = arith.constant 0 : index
    %c0_100 = arith.constant 0 : index
    %258 = vector.load %arg4[%c1, %c0_99, %c0_100] : memref<2x1x32xf32, #tpu.memory_space<vmem>>, vector<1x1x32xf32>
    %259 = vector.shape_cast %258 : vector<1x1x32xf32> to vector<1x32xf32>
    %c1_101 = arith.constant 1 : index
    %c0_102 = arith.constant 0 : index
    %c0_103 = arith.constant 0 : index
    %260 = vector.load %arg5[%c1_101, %c0_102, %c0_103] : memref<2x1x32xf32, #tpu.memory_space<vmem>>, vector<1x1x32xf32>
    %261 = vector.shape_cast %260 : vector<1x1x32xf32> to vector<1x32xf32>
    %cst_104 = arith.constant dense<0.000000e+00> : vector<16xf32>
    %262 = vector.multi_reduction <add>, %257, %cst_104 [1] : vector<16x32xf32> to vector<16xf32>
    %263 = vector.shape_cast %262 : vector<16xf32> to vector<16x1xf32>
    %cst_105 = arith.constant 3.200000e+01 : f32
    %264 = vector.broadcast %cst_105 : f32 to vector<16x1xf32>
    %265 = arith.divf %263, %264 : vector<16x1xf32>
    %266 = vector.broadcast %265 : vector<16x1xf32> to vector<16x32xf32>
    %267 = arith.subf %257, %266 : vector<16x32xf32>
    %268 = arith.mulf %267, %267 : vector<16x32xf32>
    %cst_106 = arith.constant dense<0.000000e+00> : vector<16xf32>
    %269 = vector.multi_reduction <add>, %268, %cst_106 [1] : vector<16x32xf32> to vector<16xf32>
    %270 = vector.shape_cast %269 : vector<16xf32> to vector<16x1xf32>
    %cst_107 = arith.constant 3.200000e+01 : f32
    %271 = vector.broadcast %cst_107 : f32 to vector<16x1xf32>
    %272 = arith.divf %270, %271 : vector<16x1xf32>
    %cst_108 = arith.constant 9.99999974E-6 : f32
    %273 = vector.broadcast %cst_108 : f32 to vector<16x1xf32>
    %274 = arith.addf %272, %273 : vector<16x1xf32>
    %275 = math.rsqrt %274 : vector<16x1xf32>
    %276 = vector.broadcast %275 : vector<16x1xf32> to vector<16x32xf32>
    %277 = arith.mulf %267, %276 : vector<16x32xf32>
    %278 = vector.broadcast %259 : vector<1x32xf32> to vector<16x32xf32>
    %279 = arith.mulf %277, %278 : vector<16x32xf32>
    %280 = vector.broadcast %261 : vector<1x32xf32> to vector<16x32xf32>
    %281 = arith.addf %279, %280 : vector<16x32xf32>
    %282 = arith.truncf %281 : vector<16x32xf32> to vector<16x32xbf16>
    %c1_109 = arith.constant 1 : index
    %c0_110 = arith.constant 0 : index
    %c0_111 = arith.constant 0 : index
    %283 = vector.load %arg6[%c1_109, %c0_110, %c0_111] : memref<2x32x96xbf16, #tpu.memory_space<vmem>>, vector<1x32x96xbf16>
    %284 = vector.shape_cast %283 : vector<1x32x96xbf16> to vector<32x96xbf16>
    %cst_112 = arith.constant dense<0.000000e+00> : vector<16x96xf32>
    %285 = tpu.matmul %282, %284, %cst_112 {dimension_numbers = #tpu.dot_dimension_numbers<[1], [0], [0], [1], [0, 0, 1, 1], [], []>} : vector<16x32xbf16>, vector<32x96xbf16>, vector<16x96xf32> -> vector<16x96xf32>
    %c1_113 = arith.constant 1 : index
    %c0_114 = arith.constant 0 : index
    %c0_115 = arith.constant 0 : index
    %286 = vector.load %arg7[%c1_113, %c0_114, %c0_115] : memref<2x1x96xf32, #tpu.memory_space<vmem>>, vector<1x1x96xf32>
    %287 = vector.shape_cast %286 : vector<1x1x96xf32> to vector<1x96xf32>
    %288 = vector.broadcast %287 : vector<1x96xf32> to vector<16x96xf32>
    %289 = arith.addf %285, %288 : vector<16x96xf32>
    %290 = vector.extract_strided_slice %289 {offsets = [0, 0], sizes = [16, 4], strides = [1, 1]} : vector<16x96xf32> to vector<16x4xf32>
    %291 = vector.shape_cast %290 : vector<16x4xf32> to vector<2x8x4xf32>
    %292 = vector.extract_strided_slice %289 {offsets = [0, 32], sizes = [16, 4], strides = [1, 1]} : vector<16x96xf32> to vector<16x4xf32>
    %293 = vector.shape_cast %292 : vector<16x4xf32> to vector<2x8x4xf32>
    %294 = vector.extract_strided_slice %289 {offsets = [0, 64], sizes = [16, 4], strides = [1, 1]} : vector<16x96xf32> to vector<16x4xf32>
    %295 = vector.shape_cast %294 : vector<16x4xf32> to vector<2x8x4xf32>
    "tpu.trace_start"() <{level = 10 : i32, message = "bqd,bkd->bqk"}> : () -> ()
    %cst_116 = arith.constant dense<0.000000e+00> : vector<2x8x8xf32>
    %296 = tpu.matmul %291, %293, %cst_116 {dimension_numbers = #tpu.dot_dimension_numbers<[2], [2], [1], [1], [0, 0, 0, 1, 1, 1], [0], [0]>} : vector<2x8x4xf32>, vector<2x8x4xf32>, vector<2x8x8xf32> -> vector<2x8x8xf32>
    "tpu.trace_stop"() : () -> ()
    %cst_117 = arith.constant 5.000000e-01 : f32
    %297 = vector.broadcast %cst_117 : f32 to vector<2x8x8xf32>
    %298 = arith.mulf %296, %297 : vector<2x8x8xf32>
    %cst_118 = arith.constant dense<0xFF800000> : vector<2x8xf32>
    %299 = vector.multi_reduction <maximumf>, %298, %cst_118 [2] : vector<2x8x8xf32> to vector<2x8xf32>
    %300 = vector.shape_cast %299 : vector<2x8xf32> to vector<2x8x1xf32>
    %301 = vector.broadcast %300 : vector<2x8x1xf32> to vector<2x8x8xf32>
    %302 = arith.subf %298, %301 : vector<2x8x8xf32>
    %303 = math.exp %302 : vector<2x8x8xf32>
    %cst_119 = arith.constant dense<0.000000e+00> : vector<2x8xf32>
    %304 = vector.multi_reduction <add>, %303, %cst_119 [2] : vector<2x8x8xf32> to vector<2x8xf32>
    %305 = vector.shape_cast %304 : vector<2x8xf32> to vector<2x8x1xf32>
    %306 = vector.broadcast %305 : vector<2x8x1xf32> to vector<2x8x8xf32>
    %307 = arith.divf %303, %306 : vector<2x8x8xf32>
    "tpu.trace_start"() <{level = 10 : i32, message = "bqk,bkd->bqd"}> : () -> ()
    %cst_120 = arith.constant dense<0.000000e+00> : vector<2x8x4xf32>
    %308 = tpu.matmul %307, %295, %cst_120 {dimension_numbers = #tpu.dot_dimension_numbers<[2], [1], [1], [2], [0, 0, 0, 1, 1, 2], [0], [0]>} : vector<2x8x8xf32>, vector<2x8x4xf32>, vector<2x8x4xf32> -> vector<2x8x4xf32>
    "tpu.trace_stop"() : () -> ()
    %309 = vector.shape_cast %308 : vector<2x8x4xf32> to vector<16x4xf32>
    %310 = vector.extract_strided_slice %289 {offsets = [0, 4], sizes = [16, 4], strides = [1, 1]} : vector<16x96xf32> to vector<16x4xf32>
    %311 = vector.shape_cast %310 : vector<16x4xf32> to vector<2x8x4xf32>
    %312 = vector.extract_strided_slice %289 {offsets = [0, 36], sizes = [16, 4], strides = [1, 1]} : vector<16x96xf32> to vector<16x4xf32>
    %313 = vector.shape_cast %312 : vector<16x4xf32> to vector<2x8x4xf32>
    %314 = vector.extract_strided_slice %289 {offsets = [0, 68], sizes = [16, 4], strides = [1, 1]} : vector<16x96xf32> to vector<16x4xf32>
    %315 = vector.shape_cast %314 : vector<16x4xf32> to vector<2x8x4xf32>
    "tpu.trace_start"() <{level = 10 : i32, message = "bqd,bkd->bqk"}> : () -> ()
    %cst_121 = arith.constant dense<0.000000e+00> : vector<2x8x8xf32>
    %316 = tpu.matmul %311, %313, %cst_121 {dimension_numbers = #tpu.dot_dimension_numbers<[2], [2], [1], [1], [0, 0, 0, 1, 1, 1], [0], [0]>} : vector<2x8x4xf32>, vector<2x8x4xf32>, vector<2x8x8xf32> -> vector<2x8x8xf32>
    "tpu.trace_stop"() : () -> ()
    %cst_122 = arith.constant 5.000000e-01 : f32
    %317 = vector.broadcast %cst_122 : f32 to vector<2x8x8xf32>
    %318 = arith.mulf %316, %317 : vector<2x8x8xf32>
    %cst_123 = arith.constant dense<0xFF800000> : vector<2x8xf32>
    %319 = vector.multi_reduction <maximumf>, %318, %cst_123 [2] : vector<2x8x8xf32> to vector<2x8xf32>
    %320 = vector.shape_cast %319 : vector<2x8xf32> to vector<2x8x1xf32>
    %321 = vector.broadcast %320 : vector<2x8x1xf32> to vector<2x8x8xf32>
    %322 = arith.subf %318, %321 : vector<2x8x8xf32>
    %323 = math.exp %322 : vector<2x8x8xf32>
    %cst_124 = arith.constant dense<0.000000e+00> : vector<2x8xf32>
    %324 = vector.multi_reduction <add>, %323, %cst_124 [2] : vector<2x8x8xf32> to vector<2x8xf32>
    %325 = vector.shape_cast %324 : vector<2x8xf32> to vector<2x8x1xf32>
    %326 = vector.broadcast %325 : vector<2x8x1xf32> to vector<2x8x8xf32>
    %327 = arith.divf %323, %326 : vector<2x8x8xf32>
    "tpu.trace_start"() <{level = 10 : i32, message = "bqk,bkd->bqd"}> : () -> ()
    %cst_125 = arith.constant dense<0.000000e+00> : vector<2x8x4xf32>
    %328 = tpu.matmul %327, %315, %cst_125 {dimension_numbers = #tpu.dot_dimension_numbers<[2], [1], [1], [2], [0, 0, 0, 1, 1, 2], [0], [0]>} : vector<2x8x8xf32>, vector<2x8x4xf32>, vector<2x8x4xf32> -> vector<2x8x4xf32>
    "tpu.trace_stop"() : () -> ()
    %329 = vector.shape_cast %328 : vector<2x8x4xf32> to vector<16x4xf32>
    %330 = vector.extract_strided_slice %289 {offsets = [0, 8], sizes = [16, 4], strides = [1, 1]} : vector<16x96xf32> to vector<16x4xf32>
    %331 = vector.shape_cast %330 : vector<16x4xf32> to vector<2x8x4xf32>
    %332 = vector.extract_strided_slice %289 {offsets = [0, 40], sizes = [16, 4], strides = [1, 1]} : vector<16x96xf32> to vector<16x4xf32>
    %333 = vector.shape_cast %332 : vector<16x4xf32> to vector<2x8x4xf32>
    %334 = vector.extract_strided_slice %289 {offsets = [0, 72], sizes = [16, 4], strides = [1, 1]} : vector<16x96xf32> to vector<16x4xf32>
    %335 = vector.shape_cast %334 : vector<16x4xf32> to vector<2x8x4xf32>
    "tpu.trace_start"() <{level = 10 : i32, message = "bqd,bkd->bqk"}> : () -> ()
    %cst_126 = arith.constant dense<0.000000e+00> : vector<2x8x8xf32>
    %336 = tpu.matmul %331, %333, %cst_126 {dimension_numbers = #tpu.dot_dimension_numbers<[2], [2], [1], [1], [0, 0, 0, 1, 1, 1], [0], [0]>} : vector<2x8x4xf32>, vector<2x8x4xf32>, vector<2x8x8xf32> -> vector<2x8x8xf32>
    "tpu.trace_stop"() : () -> ()
    %cst_127 = arith.constant 5.000000e-01 : f32
    %337 = vector.broadcast %cst_127 : f32 to vector<2x8x8xf32>
    %338 = arith.mulf %336, %337 : vector<2x8x8xf32>
    %cst_128 = arith.constant dense<0xFF800000> : vector<2x8xf32>
    %339 = vector.multi_reduction <maximumf>, %338, %cst_128 [2] : vector<2x8x8xf32> to vector<2x8xf32>
    %340 = vector.shape_cast %339 : vector<2x8xf32> to vector<2x8x1xf32>
    %341 = vector.broadcast %340 : vector<2x8x1xf32> to vector<2x8x8xf32>
    %342 = arith.subf %338, %341 : vector<2x8x8xf32>
    %343 = math.exp %342 : vector<2x8x8xf32>
    %cst_129 = arith.constant dense<0.000000e+00> : vector<2x8xf32>
    %344 = vector.multi_reduction <add>, %343, %cst_129 [2] : vector<2x8x8xf32> to vector<2x8xf32>
    %345 = vector.shape_cast %344 : vector<2x8xf32> to vector<2x8x1xf32>
    %346 = vector.broadcast %345 : vector<2x8x1xf32> to vector<2x8x8xf32>
    %347 = arith.divf %343, %346 : vector<2x8x8xf32>
    "tpu.trace_start"() <{level = 10 : i32, message = "bqk,bkd->bqd"}> : () -> ()
    %cst_130 = arith.constant dense<0.000000e+00> : vector<2x8x4xf32>
    %348 = tpu.matmul %347, %335, %cst_130 {dimension_numbers = #tpu.dot_dimension_numbers<[2], [1], [1], [2], [0, 0, 0, 1, 1, 2], [0], [0]>} : vector<2x8x8xf32>, vector<2x8x4xf32>, vector<2x8x4xf32> -> vector<2x8x4xf32>
    "tpu.trace_stop"() : () -> ()
    %349 = vector.shape_cast %348 : vector<2x8x4xf32> to vector<16x4xf32>
    %350 = vector.extract_strided_slice %289 {offsets = [0, 12], sizes = [16, 4], strides = [1, 1]} : vector<16x96xf32> to vector<16x4xf32>
    %351 = vector.shape_cast %350 : vector<16x4xf32> to vector<2x8x4xf32>
    %352 = vector.extract_strided_slice %289 {offsets = [0, 44], sizes = [16, 4], strides = [1, 1]} : vector<16x96xf32> to vector<16x4xf32>
    %353 = vector.shape_cast %352 : vector<16x4xf32> to vector<2x8x4xf32>
    %354 = vector.extract_strided_slice %289 {offsets = [0, 76], sizes = [16, 4], strides = [1, 1]} : vector<16x96xf32> to vector<16x4xf32>
    %355 = vector.shape_cast %354 : vector<16x4xf32> to vector<2x8x4xf32>
    "tpu.trace_start"() <{level = 10 : i32, message = "bqd,bkd->bqk"}> : () -> ()
    %cst_131 = arith.constant dense<0.000000e+00> : vector<2x8x8xf32>
    %356 = tpu.matmul %351, %353, %cst_131 {dimension_numbers = #tpu.dot_dimension_numbers<[2], [2], [1], [1], [0, 0, 0, 1, 1, 1], [0], [0]>} : vector<2x8x4xf32>, vector<2x8x4xf32>, vector<2x8x8xf32> -> vector<2x8x8xf32>
    "tpu.trace_stop"() : () -> ()
    %cst_132 = arith.constant 5.000000e-01 : f32
    %357 = vector.broadcast %cst_132 : f32 to vector<2x8x8xf32>
    %358 = arith.mulf %356, %357 : vector<2x8x8xf32>
    %cst_133 = arith.constant dense<0xFF800000> : vector<2x8xf32>
    %359 = vector.multi_reduction <maximumf>, %358, %cst_133 [2] : vector<2x8x8xf32> to vector<2x8xf32>
    %360 = vector.shape_cast %359 : vector<2x8xf32> to vector<2x8x1xf32>
    %361 = vector.broadcast %360 : vector<2x8x1xf32> to vector<2x8x8xf32>
    %362 = arith.subf %358, %361 : vector<2x8x8xf32>
    %363 = math.exp %362 : vector<2x8x8xf32>
    %cst_134 = arith.constant dense<0.000000e+00> : vector<2x8xf32>
    %364 = vector.multi_reduction <add>, %363, %cst_134 [2] : vector<2x8x8xf32> to vector<2x8xf32>
    %365 = vector.shape_cast %364 : vector<2x8xf32> to vector<2x8x1xf32>
    %366 = vector.broadcast %365 : vector<2x8x1xf32> to vector<2x8x8xf32>
    %367 = arith.divf %363, %366 : vector<2x8x8xf32>
    "tpu.trace_start"() <{level = 10 : i32, message = "bqk,bkd->bqd"}> : () -> ()
    %cst_135 = arith.constant dense<0.000000e+00> : vector<2x8x4xf32>
    %368 = tpu.matmul %367, %355, %cst_135 {dimension_numbers = #tpu.dot_dimension_numbers<[2], [1], [1], [2], [0, 0, 0, 1, 1, 2], [0], [0]>} : vector<2x8x8xf32>, vector<2x8x4xf32>, vector<2x8x4xf32> -> vector<2x8x4xf32>
    "tpu.trace_stop"() : () -> ()
    %369 = vector.shape_cast %368 : vector<2x8x4xf32> to vector<16x4xf32>
    %370 = vector.extract_strided_slice %289 {offsets = [0, 16], sizes = [16, 4], strides = [1, 1]} : vector<16x96xf32> to vector<16x4xf32>
    %371 = vector.shape_cast %370 : vector<16x4xf32> to vector<2x8x4xf32>
    %372 = vector.extract_strided_slice %289 {offsets = [0, 48], sizes = [16, 4], strides = [1, 1]} : vector<16x96xf32> to vector<16x4xf32>
    %373 = vector.shape_cast %372 : vector<16x4xf32> to vector<2x8x4xf32>
    %374 = vector.extract_strided_slice %289 {offsets = [0, 80], sizes = [16, 4], strides = [1, 1]} : vector<16x96xf32> to vector<16x4xf32>
    %375 = vector.shape_cast %374 : vector<16x4xf32> to vector<2x8x4xf32>
    "tpu.trace_start"() <{level = 10 : i32, message = "bqd,bkd->bqk"}> : () -> ()
    %cst_136 = arith.constant dense<0.000000e+00> : vector<2x8x8xf32>
    %376 = tpu.matmul %371, %373, %cst_136 {dimension_numbers = #tpu.dot_dimension_numbers<[2], [2], [1], [1], [0, 0, 0, 1, 1, 1], [0], [0]>} : vector<2x8x4xf32>, vector<2x8x4xf32>, vector<2x8x8xf32> -> vector<2x8x8xf32>
    "tpu.trace_stop"() : () -> ()
    %cst_137 = arith.constant 5.000000e-01 : f32
    %377 = vector.broadcast %cst_137 : f32 to vector<2x8x8xf32>
    %378 = arith.mulf %376, %377 : vector<2x8x8xf32>
    %cst_138 = arith.constant dense<0xFF800000> : vector<2x8xf32>
    %379 = vector.multi_reduction <maximumf>, %378, %cst_138 [2] : vector<2x8x8xf32> to vector<2x8xf32>
    %380 = vector.shape_cast %379 : vector<2x8xf32> to vector<2x8x1xf32>
    %381 = vector.broadcast %380 : vector<2x8x1xf32> to vector<2x8x8xf32>
    %382 = arith.subf %378, %381 : vector<2x8x8xf32>
    %383 = math.exp %382 : vector<2x8x8xf32>
    %cst_139 = arith.constant dense<0.000000e+00> : vector<2x8xf32>
    %384 = vector.multi_reduction <add>, %383, %cst_139 [2] : vector<2x8x8xf32> to vector<2x8xf32>
    %385 = vector.shape_cast %384 : vector<2x8xf32> to vector<2x8x1xf32>
    %386 = vector.broadcast %385 : vector<2x8x1xf32> to vector<2x8x8xf32>
    %387 = arith.divf %383, %386 : vector<2x8x8xf32>
    "tpu.trace_start"() <{level = 10 : i32, message = "bqk,bkd->bqd"}> : () -> ()
    %cst_140 = arith.constant dense<0.000000e+00> : vector<2x8x4xf32>
    %388 = tpu.matmul %387, %375, %cst_140 {dimension_numbers = #tpu.dot_dimension_numbers<[2], [1], [1], [2], [0, 0, 0, 1, 1, 2], [0], [0]>} : vector<2x8x8xf32>, vector<2x8x4xf32>, vector<2x8x4xf32> -> vector<2x8x4xf32>
    "tpu.trace_stop"() : () -> ()
    %389 = vector.shape_cast %388 : vector<2x8x4xf32> to vector<16x4xf32>
    %390 = vector.extract_strided_slice %289 {offsets = [0, 20], sizes = [16, 4], strides = [1, 1]} : vector<16x96xf32> to vector<16x4xf32>
    %391 = vector.shape_cast %390 : vector<16x4xf32> to vector<2x8x4xf32>
    %392 = vector.extract_strided_slice %289 {offsets = [0, 52], sizes = [16, 4], strides = [1, 1]} : vector<16x96xf32> to vector<16x4xf32>
    %393 = vector.shape_cast %392 : vector<16x4xf32> to vector<2x8x4xf32>
    %394 = vector.extract_strided_slice %289 {offsets = [0, 84], sizes = [16, 4], strides = [1, 1]} : vector<16x96xf32> to vector<16x4xf32>
    %395 = vector.shape_cast %394 : vector<16x4xf32> to vector<2x8x4xf32>
    "tpu.trace_start"() <{level = 10 : i32, message = "bqd,bkd->bqk"}> : () -> ()
    %cst_141 = arith.constant dense<0.000000e+00> : vector<2x8x8xf32>
    %396 = tpu.matmul %391, %393, %cst_141 {dimension_numbers = #tpu.dot_dimension_numbers<[2], [2], [1], [1], [0, 0, 0, 1, 1, 1], [0], [0]>} : vector<2x8x4xf32>, vector<2x8x4xf32>, vector<2x8x8xf32> -> vector<2x8x8xf32>
    "tpu.trace_stop"() : () -> ()
    %cst_142 = arith.constant 5.000000e-01 : f32
    %397 = vector.broadcast %cst_142 : f32 to vector<2x8x8xf32>
    %398 = arith.mulf %396, %397 : vector<2x8x8xf32>
    %cst_143 = arith.constant dense<0xFF800000> : vector<2x8xf32>
    %399 = vector.multi_reduction <maximumf>, %398, %cst_143 [2] : vector<2x8x8xf32> to vector<2x8xf32>
    %400 = vector.shape_cast %399 : vector<2x8xf32> to vector<2x8x1xf32>
    %401 = vector.broadcast %400 : vector<2x8x1xf32> to vector<2x8x8xf32>
    %402 = arith.subf %398, %401 : vector<2x8x8xf32>
    %403 = math.exp %402 : vector<2x8x8xf32>
    %cst_144 = arith.constant dense<0.000000e+00> : vector<2x8xf32>
    %404 = vector.multi_reduction <add>, %403, %cst_144 [2] : vector<2x8x8xf32> to vector<2x8xf32>
    %405 = vector.shape_cast %404 : vector<2x8xf32> to vector<2x8x1xf32>
    %406 = vector.broadcast %405 : vector<2x8x1xf32> to vector<2x8x8xf32>
    %407 = arith.divf %403, %406 : vector<2x8x8xf32>
    "tpu.trace_start"() <{level = 10 : i32, message = "bqk,bkd->bqd"}> : () -> ()
    %cst_145 = arith.constant dense<0.000000e+00> : vector<2x8x4xf32>
    %408 = tpu.matmul %407, %395, %cst_145 {dimension_numbers = #tpu.dot_dimension_numbers<[2], [1], [1], [2], [0, 0, 0, 1, 1, 2], [0], [0]>} : vector<2x8x8xf32>, vector<2x8x4xf32>, vector<2x8x4xf32> -> vector<2x8x4xf32>
    "tpu.trace_stop"() : () -> ()
    %409 = vector.shape_cast %408 : vector<2x8x4xf32> to vector<16x4xf32>
    %410 = vector.extract_strided_slice %289 {offsets = [0, 24], sizes = [16, 4], strides = [1, 1]} : vector<16x96xf32> to vector<16x4xf32>
    %411 = vector.shape_cast %410 : vector<16x4xf32> to vector<2x8x4xf32>
    %412 = vector.extract_strided_slice %289 {offsets = [0, 56], sizes = [16, 4], strides = [1, 1]} : vector<16x96xf32> to vector<16x4xf32>
    %413 = vector.shape_cast %412 : vector<16x4xf32> to vector<2x8x4xf32>
    %414 = vector.extract_strided_slice %289 {offsets = [0, 88], sizes = [16, 4], strides = [1, 1]} : vector<16x96xf32> to vector<16x4xf32>
    %415 = vector.shape_cast %414 : vector<16x4xf32> to vector<2x8x4xf32>
    "tpu.trace_start"() <{level = 10 : i32, message = "bqd,bkd->bqk"}> : () -> ()
    %cst_146 = arith.constant dense<0.000000e+00> : vector<2x8x8xf32>
    %416 = tpu.matmul %411, %413, %cst_146 {dimension_numbers = #tpu.dot_dimension_numbers<[2], [2], [1], [1], [0, 0, 0, 1, 1, 1], [0], [0]>} : vector<2x8x4xf32>, vector<2x8x4xf32>, vector<2x8x8xf32> -> vector<2x8x8xf32>
    "tpu.trace_stop"() : () -> ()
    %cst_147 = arith.constant 5.000000e-01 : f32
    %417 = vector.broadcast %cst_147 : f32 to vector<2x8x8xf32>
    %418 = arith.mulf %416, %417 : vector<2x8x8xf32>
    %cst_148 = arith.constant dense<0xFF800000> : vector<2x8xf32>
    %419 = vector.multi_reduction <maximumf>, %418, %cst_148 [2] : vector<2x8x8xf32> to vector<2x8xf32>
    %420 = vector.shape_cast %419 : vector<2x8xf32> to vector<2x8x1xf32>
    %421 = vector.broadcast %420 : vector<2x8x1xf32> to vector<2x8x8xf32>
    %422 = arith.subf %418, %421 : vector<2x8x8xf32>
    %423 = math.exp %422 : vector<2x8x8xf32>
    %cst_149 = arith.constant dense<0.000000e+00> : vector<2x8xf32>
    %424 = vector.multi_reduction <add>, %423, %cst_149 [2] : vector<2x8x8xf32> to vector<2x8xf32>
    %425 = vector.shape_cast %424 : vector<2x8xf32> to vector<2x8x1xf32>
    %426 = vector.broadcast %425 : vector<2x8x1xf32> to vector<2x8x8xf32>
    %427 = arith.divf %423, %426 : vector<2x8x8xf32>
    "tpu.trace_start"() <{level = 10 : i32, message = "bqk,bkd->bqd"}> : () -> ()
    %cst_150 = arith.constant dense<0.000000e+00> : vector<2x8x4xf32>
    %428 = tpu.matmul %427, %415, %cst_150 {dimension_numbers = #tpu.dot_dimension_numbers<[2], [1], [1], [2], [0, 0, 0, 1, 1, 2], [0], [0]>} : vector<2x8x8xf32>, vector<2x8x4xf32>, vector<2x8x4xf32> -> vector<2x8x4xf32>
    "tpu.trace_stop"() : () -> ()
    %429 = vector.shape_cast %428 : vector<2x8x4xf32> to vector<16x4xf32>
    %430 = vector.extract_strided_slice %289 {offsets = [0, 28], sizes = [16, 4], strides = [1, 1]} : vector<16x96xf32> to vector<16x4xf32>
    %431 = vector.shape_cast %430 : vector<16x4xf32> to vector<2x8x4xf32>
    %432 = vector.extract_strided_slice %289 {offsets = [0, 60], sizes = [16, 4], strides = [1, 1]} : vector<16x96xf32> to vector<16x4xf32>
    %433 = vector.shape_cast %432 : vector<16x4xf32> to vector<2x8x4xf32>
    %434 = vector.extract_strided_slice %289 {offsets = [0, 92], sizes = [16, 4], strides = [1, 1]} : vector<16x96xf32> to vector<16x4xf32>
    %435 = vector.shape_cast %434 : vector<16x4xf32> to vector<2x8x4xf32>
    "tpu.trace_start"() <{level = 10 : i32, message = "bqd,bkd->bqk"}> : () -> ()
    %cst_151 = arith.constant dense<0.000000e+00> : vector<2x8x8xf32>
    %436 = tpu.matmul %431, %433, %cst_151 {dimension_numbers = #tpu.dot_dimension_numbers<[2], [2], [1], [1], [0, 0, 0, 1, 1, 1], [0], [0]>} : vector<2x8x4xf32>, vector<2x8x4xf32>, vector<2x8x8xf32> -> vector<2x8x8xf32>
    "tpu.trace_stop"() : () -> ()
    %cst_152 = arith.constant 5.000000e-01 : f32
    %437 = vector.broadcast %cst_152 : f32 to vector<2x8x8xf32>
    %438 = arith.mulf %436, %437 : vector<2x8x8xf32>
    %cst_153 = arith.constant dense<0xFF800000> : vector<2x8xf32>
    %439 = vector.multi_reduction <maximumf>, %438, %cst_153 [2] : vector<2x8x8xf32> to vector<2x8xf32>
    %440 = vector.shape_cast %439 : vector<2x8xf32> to vector<2x8x1xf32>
    %441 = vector.broadcast %440 : vector<2x8x1xf32> to vector<2x8x8xf32>
    %442 = arith.subf %438, %441 : vector<2x8x8xf32>
    %443 = math.exp %442 : vector<2x8x8xf32>
    %cst_154 = arith.constant dense<0.000000e+00> : vector<2x8xf32>
    %444 = vector.multi_reduction <add>, %443, %cst_154 [2] : vector<2x8x8xf32> to vector<2x8xf32>
    %445 = vector.shape_cast %444 : vector<2x8xf32> to vector<2x8x1xf32>
    %446 = vector.broadcast %445 : vector<2x8x1xf32> to vector<2x8x8xf32>
    %447 = arith.divf %443, %446 : vector<2x8x8xf32>
    "tpu.trace_start"() <{level = 10 : i32, message = "bqk,bkd->bqd"}> : () -> ()
    %cst_155 = arith.constant dense<0.000000e+00> : vector<2x8x4xf32>
    %448 = tpu.matmul %447, %435, %cst_155 {dimension_numbers = #tpu.dot_dimension_numbers<[2], [1], [1], [2], [0, 0, 0, 1, 1, 2], [0], [0]>} : vector<2x8x8xf32>, vector<2x8x4xf32>, vector<2x8x4xf32> -> vector<2x8x4xf32>
    "tpu.trace_stop"() : () -> ()
    %449 = vector.shape_cast %448 : vector<2x8x4xf32> to vector<16x4xf32>
    %450 = tpu.concatenate %309, %329, %349, %369, %389, %409, %429, %449 in 1 : vector<16x4xf32>, vector<16x4xf32>, vector<16x4xf32>, vector<16x4xf32>, vector<16x4xf32>, vector<16x4xf32>, vector<16x4xf32>, vector<16x4xf32> -> vector<16x32xf32>
    %451 = arith.truncf %450 : vector<16x32xf32> to vector<16x32xbf16>
    %c1_156 = arith.constant 1 : index
    %c0_157 = arith.constant 0 : index
    %c0_158 = arith.constant 0 : index
    %452 = vector.load %arg8[%c1_156, %c0_157, %c0_158] : memref<2x32x32xbf16, #tpu.memory_space<vmem>>, vector<1x32x32xbf16>
    %453 = vector.shape_cast %452 : vector<1x32x32xbf16> to vector<32x32xbf16>
    %cst_159 = arith.constant dense<0.000000e+00> : vector<16x32xf32>
    %454 = tpu.matmul %451, %453, %cst_159 {dimension_numbers = #tpu.dot_dimension_numbers<[1], [0], [0], [1], [0, 0, 1, 1], [], []>} : vector<16x32xbf16>, vector<32x32xbf16>, vector<16x32xf32> -> vector<16x32xf32>
    %455 = arith.addf %257, %454 : vector<16x32xf32>
    %c1_160 = arith.constant 1 : index
    %c0_161 = arith.constant 0 : index
    %c0_162 = arith.constant 0 : index
    %456 = vector.load %arg9[%c1_160, %c0_161, %c0_162] : memref<2x1x32xf32, #tpu.memory_space<vmem>>, vector<1x1x32xf32>
    %457 = vector.shape_cast %456 : vector<1x1x32xf32> to vector<1x32xf32>
    %458 = vector.broadcast %457 : vector<1x32xf32> to vector<16x32xf32>
    %459 = arith.addf %455, %458 : vector<16x32xf32>
    %c1_163 = arith.constant 1 : index
    %c0_164 = arith.constant 0 : index
    %c0_165 = arith.constant 0 : index
    %460 = vector.load %arg10[%c1_163, %c0_164, %c0_165] : memref<2x1x32xf32, #tpu.memory_space<vmem>>, vector<1x1x32xf32>
    %461 = vector.shape_cast %460 : vector<1x1x32xf32> to vector<1x32xf32>
    %c1_166 = arith.constant 1 : index
    %c0_167 = arith.constant 0 : index
    %c0_168 = arith.constant 0 : index
    %462 = vector.load %arg11[%c1_166, %c0_167, %c0_168] : memref<2x1x32xf32, #tpu.memory_space<vmem>>, vector<1x1x32xf32>
    %463 = vector.shape_cast %462 : vector<1x1x32xf32> to vector<1x32xf32>
    %cst_169 = arith.constant dense<0.000000e+00> : vector<16xf32>
    %464 = vector.multi_reduction <add>, %459, %cst_169 [1] : vector<16x32xf32> to vector<16xf32>
    %465 = vector.shape_cast %464 : vector<16xf32> to vector<16x1xf32>
    %cst_170 = arith.constant 3.200000e+01 : f32
    %466 = vector.broadcast %cst_170 : f32 to vector<16x1xf32>
    %467 = arith.divf %465, %466 : vector<16x1xf32>
    %468 = vector.broadcast %467 : vector<16x1xf32> to vector<16x32xf32>
    %469 = arith.subf %459, %468 : vector<16x32xf32>
    %470 = arith.mulf %469, %469 : vector<16x32xf32>
    %cst_171 = arith.constant dense<0.000000e+00> : vector<16xf32>
    %471 = vector.multi_reduction <add>, %470, %cst_171 [1] : vector<16x32xf32> to vector<16xf32>
    %472 = vector.shape_cast %471 : vector<16xf32> to vector<16x1xf32>
    %cst_172 = arith.constant 3.200000e+01 : f32
    %473 = vector.broadcast %cst_172 : f32 to vector<16x1xf32>
    %474 = arith.divf %472, %473 : vector<16x1xf32>
    %cst_173 = arith.constant 9.99999974E-6 : f32
    %475 = vector.broadcast %cst_173 : f32 to vector<16x1xf32>
    %476 = arith.addf %474, %475 : vector<16x1xf32>
    %477 = math.rsqrt %476 : vector<16x1xf32>
    %478 = vector.broadcast %477 : vector<16x1xf32> to vector<16x32xf32>
    %479 = arith.mulf %469, %478 : vector<16x32xf32>
    %480 = vector.broadcast %461 : vector<1x32xf32> to vector<16x32xf32>
    %481 = arith.mulf %479, %480 : vector<16x32xf32>
    %482 = vector.broadcast %463 : vector<1x32xf32> to vector<16x32xf32>
    %483 = arith.addf %481, %482 : vector<16x32xf32>
    %484 = arith.truncf %483 : vector<16x32xf32> to vector<16x32xbf16>
    %c1_174 = arith.constant 1 : index
    %c0_175 = arith.constant 0 : index
    %c0_176 = arith.constant 0 : index
    %485 = vector.load %arg12[%c1_174, %c0_175, %c0_176] : memref<2x32x2048xbf16, #tpu.memory_space<vmem>>, vector<1x32x2048xbf16>
    %486 = vector.shape_cast %485 : vector<1x32x2048xbf16> to vector<32x2048xbf16>
    %cst_177 = arith.constant dense<0.000000e+00> : vector<16x2048xf32>
    %487 = tpu.matmul %484, %486, %cst_177 {dimension_numbers = #tpu.dot_dimension_numbers<[1], [0], [0], [1], [0, 0, 1, 1], [], []>} : vector<16x32xbf16>, vector<32x2048xbf16>, vector<16x2048xf32> -> vector<16x2048xf32>
    %c1_178 = arith.constant 1 : index
    %c0_179 = arith.constant 0 : index
    %c0_180 = arith.constant 0 : index
    %488 = vector.load %arg13[%c1_178, %c0_179, %c0_180] : memref<2x1x2048xf32, #tpu.memory_space<vmem>>, vector<1x1x2048xf32>
    %489 = vector.shape_cast %488 : vector<1x1x2048xf32> to vector<1x2048xf32>
    %490 = vector.broadcast %489 : vector<1x2048xf32> to vector<16x2048xf32>
    %491 = arith.addf %487, %490 : vector<16x2048xf32>
    %cst_181 = arith.constant 0.000000e+00 : f32
    %492 = vector.broadcast %cst_181 : f32 to vector<16x2048xf32>
    %493 = arith.maximumf %491, %492 : vector<16x2048xf32>
    %494 = arith.truncf %493 : vector<16x2048xf32> to vector<16x2048xbf16>
    %c1_182 = arith.constant 1 : index
    %c0_183 = arith.constant 0 : index
    %c0_184 = arith.constant 0 : index
    %495 = vector.load %arg14[%c1_182, %c0_183, %c0_184] : memref<2x2048x32xbf16, #tpu.memory_space<vmem>>, vector<1x2048x32xbf16>
    %496 = vector.shape_cast %495 : vector<1x2048x32xbf16> to vector<2048x32xbf16>
    %cst_185 = arith.constant dense<0.000000e+00> : vector<16x32xf32>
    %497 = tpu.matmul %494, %496, %cst_185 {dimension_numbers = #tpu.dot_dimension_numbers<[1], [0], [0], [1], [0, 0, 1, 1], [], []>} : vector<16x2048xbf16>, vector<2048x32xbf16>, vector<16x32xf32> -> vector<16x32xf32>
    %c1_186 = arith.constant 1 : index
    %c0_187 = arith.constant 0 : index
    %c0_188 = arith.constant 0 : index
    %498 = vector.load %arg15[%c1_186, %c0_187, %c0_188] : memref<2x1x32xf32, #tpu.memory_space<vmem>>, vector<1x1x32xf32>
    %499 = vector.shape_cast %498 : vector<1x1x32xf32> to vector<1x32xf32>
    %500 = vector.broadcast %499 : vector<1x32xf32> to vector<16x32xf32>
    %501 = arith.addf %497, %500 : vector<16x32xf32>
    %502 = arith.addf %459, %501 : vector<16x32xf32>
    %c0_189 = arith.constant 0 : index
    %c0_190 = arith.constant 0 : index
    %503 = vector.load %arg16[%c0_189, %c0_190] : memref<32x16xf32, #tpu.memory_space<vmem>>, vector<32x16xf32>
    %cst_191 = arith.constant dense<0.000000e+00> : vector<16x16xf32>
    %504 = tpu.matmul %502, %503, %cst_191 {dimension_numbers = #tpu.dot_dimension_numbers<[1], [0], [0], [1], [0, 0, 1, 1], [], []>} : vector<16x32xf32>, vector<32x16xf32>, vector<16x16xf32> -> vector<16x16xf32>
    %c0_192 = arith.constant 0 : index
    %c0_193 = arith.constant 0 : index
    %505 = vector.load %arg17[%c0_192, %c0_193] : memref<1x16xf32, #tpu.memory_space<vmem>>, vector<1x16xf32>
    %506 = vector.broadcast %505 : vector<1x16xf32> to vector<16x16xf32>
    %507 = arith.addf %504, %506 : vector<16x16xf32>
    %cst_194 = arith.constant 0.000000e+00 : f32
    %508 = vector.broadcast %cst_194 : f32 to vector<16x16xf32>
    %509 = arith.maximumf %507, %508 : vector<16x16xf32>
    %c0_195 = arith.constant 0 : index
    %c0_196 = arith.constant 0 : index
    %510 = vector.load %arg18[%c0_195, %c0_196] : memref<16x16xf32, #tpu.memory_space<vmem>>, vector<16x16xf32>
    tpu.vector_store %arg18[%c0_195, %c0_196], %509 {strides = array<i32>} : memref<16x16xf32, #tpu.memory_space<vmem>>, vector<16x16xf32>,
    return
  }
}

</mosaic_0001>

<bundles_post_ra>
// kernel: tpu_custom_call.1
= control target key start
LH: loop header
LB: loop body
LE: loop exit
PB: predicated region body
PF: predicated region fallthrough
CT: control target
= control target key end

     0   :  { %s14666_s0 = inlined_call_operand.vmem [shape: f32[2,8,16], index: 0, kind: input, shape index: {}]   ;;  %s14667_s1 = inlined_call_operand.vmem [shape: f32[16,32], index: 1, kind: input, shape index: {}]   ;;  %s14668_s2 = inlined_call_operand.vmem [shape: f32[1,32], index: 2, kind: input, shape index: {}]   ;;  %s14669_s3 = inlined_call_operand.vmem [shape: f32[64,32], index: 3, kind: input, shape index: {}]   ;;  %s14670_s4 = inlined_call_operand.vmem [shape: f32[2,1,32], index: 4, kind: input, shape index: {}]   ;;  %s14671_s5 = inlined_call_operand.vmem [shape: f32[2,1,32], index: 5, kind: input, shape index: {}]   ;;  %s14672_s6 = inlined_call_operand.vmem [shape: bf16[2,32,96], index: 6, kind: input, shape index: {}]   ;;  %s14673_s7 = inlined_call_operand.vmem [shape: f32[2,1,96], index: 7, kind: input, shape index: {}]   ;;  %s14674_s8 = inlined_call_operand.vmem [shape: bf16[2,32,32], index: 8, kind: input, shape index: {}]   ;;  %s14675_s9 = inlined_call_operand.vmem [shape: f32[2,1,32], index: 9, kind: input, shape index: {}]   ;;  %s14676_s10 = inlined_call_operand.vmem [shape: f32[2,1,32], index: 10, kind: input, shape index: {}]   ;;  %s14677_s11 = inlined_call_operand.vmem [shape: f32[2,1,32], index: 11, kind: input, shape index: {}]   ;;  %s14678_s12 = inlined_call_operand.vmem [shape: bf16[2,32,2048], index: 12, kind: input, shape index: {}]   ;;  %s14679_s13 = inlined_call_operand.vmem [shape: f32[2,1,2048], index: 13, kind: input, shape index: {}]   ;;  %s14680_s14 = inlined_call_operand.vmem [shape: bf16[2,2048,32], index: 14, kind: input, shape index: {}]   ;;  %s14681_s15 = inlined_call_operand.vmem [shape: f32[2,1,32], index: 15, kind: input, shape index: {}]   ;;  %s14682_s16 = inlined_call_operand.vmem [shape: f32[32,16], index: 16, kind: input, shape index: {}]   ;;  %s14683_s17 = inlined_call_operand.vmem [shape: f32[1,16], index: 17, kind: input, shape index: {}]   ;;  %s14684_s18 = inlined_call_operand.hbm [shape: f32[16,16], index: 18, kind: output, shape index: {}]  }
   0x1   :  { %14729 = sst [smem:[#allocation5_spill]] %s14666_s0 }
   0x2   :  { %14730 = sst [smem:[#allocation6_spill]] %s14667_s1 }
   0x3   :  { %14731 = sst [smem:[#allocation7_spill]] %s14668_s2 }
   0x4   :  { %s14732_s29 = sld [smem:[#allocation6_spill]]  ;;  %s14733_s20 = sld [smem:[#allocation5_spill]]  ;;  %vm72_vm0 = vcmask 130048  }
   0xa   :  { %v63_v0 = vld [vmem:[%s14732_s29] sm:$0xff]  ;;  %v64_v1 = vld [vmem:[%s14732_s29 + $0x8] sm:$0xff] }
   0xb   :  { %v61_v2 = vld [vmem:[%s14733_s20] sm:$0xff]  ;;  %v11934_v3 = vpack.c.bf16 %v64_v1, %v63_v0  ;;  %v62_v4 = vld [vmem:[%s14733_s20 + $0x8] sm:$0xff] }
   0xc   :  { %11568 = vmatprep.mubr.msk.f32.mxu0 %vm72_vm0, %v61_v2 }
   0xd   :  { %11935 = vmatprep.subr.bf16.mxu0 %v11934_v3 }
   0xe   :  { %11937 = vmatpush3.bf16.msra.mxu0 %v11934_v3 }
  0x11   :  { %11569 = vmatmul.mubr.msk.f32.vlgmr.msra.gmra.mrb[0].mxu0 %vm72_vm0, %v62_v4 }
  0x12   :  { %23 = vsyncpa [#allocation3], 0  ;;  %v12484_v5 = vmov 1966171168   ;;  %v167_v7 = vlaneseq  ;;  %s14734_s26 = sld [smem:[#allocation7_spill]]  ;;  %vm192_vm1 = vcmask 261120  }
  0x13   :  { %v165_v6 = vunpack.c.l.s4 %v12484_v5  ;;  %v10295_v10 = vld.sshfl [vmem:[%s14669_s3] sm:$0x11 pattern:$0x75316420]  ;;  %v12485_v38 = vmov 0.0   ;;  %vm12486_vm2 = vmmov 0  }
  0x14   :  { %v12629_v9 = vshrl.u32 %v167_v7, 7  ;;  %v163_v12 = vcombine.high %v10295_v10, %v10295_v10  ;;  %v12052_v37 = vld [vmem:[%s14672_s6] sm:$0xff]   ;;  %11571 = vmatprep.subr.bf16.mxu1 %v12485_v38  ;;  %11575 = vmatprep.mubr.msk.bf16.mxu1 %vm12486_vm2, %v12485_v38  ;;  %v12053_v39 = vld [vmem:[%s14672_s6 + $0x8] sm:$0xff]   ;;  %s12487_s22 = smov 96   ;;  %vm307_vm3 = vcmask 31744   ;;  %vm461_vm4 = vcmask 64512  }
  0x15   :  { %v166_v8 = vunpack.c.0.s8 %v165_v6  ;;  %11572 = vmatpush3.bf16.msra.mxu1 %v12052_v37  ;;  %11579 = vmatprep.subr.mxu0 %v12485_v38  ;;  %v10296_v48 = vld [vmem:[%s14670_s4] ss:$0 sm:$0xff]  ;;  %s12488_s2 = smov 64   ;;  %s12489_s23 = smov 92   ;;  %vm3020_vm5 = vcmask 97280   ;;  %vm3025_vm6 = vcmask 162816  }
  0x16   :  { %v12636_v13 = vsub.s32 0, %v12629_v9  ;;  %11573 = vmatprep.subr.bf16.mxu1 %v12485_v38  ;;  %11581 = vmatprep.mubr.msk.f32.mxu0 %vm12486_vm2, %v12485_v38  ;;  %v10297_v52 = vld [vmem:[%s14671_s5] ss:$0 sm:$0xff]  ;;  %s12490_s24 = smov 124   ;;  %s12491_s25 = smov 60   ;;  %vm3028_vm7 = vcmask 195584  }
  0x17   :  { %v169_v11 = vsub.s32 %v166_v8, %v12629_v9  ;;  %v10298_v57 = vld [vmem:[%s14673_s7] ss:$0 sm:$0xff]  ;;  %s14727_s3 = smov 120   ;;  %s14725_s27 = smov 56   ;;  %vm3031_vm8 = vcmask 228352  }
  0x18   :  { %v10292_v16 = vld [vmem:[%s14734_s26] ss:$0 sm:$0xff]  ;;  %s12492_s26 = smov 88   ;;  %s14723_s28 = smov 84  }
  0x19   :  { %v170_v14 = vrot.slane %v10295_v10, %v169_v11  ;;  %v177_v15 = vrot.slane %v163_v12, %v169_v11  ;;  %11574 = vmatpush3.bf16.msra.mxu1 %v12053_v39  ;;  %s14721_s29 = smov 116   ;;  %s14719_s30 = smov 52  }
  0x1a   :  { %11594 = vmatprep.subr.mxu1 %v12485_v38  ;;  %s14707_s0 = smov 80   ;;  %s14705_s19 = smov 112  }
  0x1b   :  { %v181_v18 = vrot.slane %v170_v14, %v12636_v13  ;;  %v185_v21 = vrot.slane %v177_v15, %v12636_v13  ;;  %s14691_s1 = smov 48   ;;  %s14689_s20 = smov 76  }
  0x1c   :  { %s14687_s21 = smov 108  }
  0xe4   :  { %v11570_v17 = vpop.f32.mrb[0].mxu0 }
  0xe5   :  { %v145_v19 = vpop.f32.mrb[1].mxu0  ;;  %v151_v20 = vadd.f32 %v11570_v17, %v10292_v16 }
  0xe6   :  { %v146_v22 = vadd.f32 %v10292_v16, %v145_v19 }
  0xe7   :  { %v12645_v24 = vadd.f32 %v185_v21, %v151_v20 }
  0xe8   :  { %v12643_v23 = vadd.f32 %v181_v18, %v146_v22 }
  0xe9   :  { %v196_v26 = vsel %vm192_vm1, %v12645_v24, 0.0 }
  0xea   :  { %v193_v25 = vsel %vm192_vm1, %v12643_v23, 0.0 }
  0xeb   :  { %194 = vadd.xlane.f32.xlu0 %v193_v25 }
  0xef   :  { %197 = vadd.xlane.f32.xlu0 %v196_v26 }
 0x178   :  { %v195_v27 = vpop.xlane.xlu0 %194 }
 0x179   :  { %v200_v28 = vmul.f32 0.03125, %v195_v27 }
 0x17b   :  { %v202_v29 = vsub.f32 %v12643_v23, %v200_v28 }
 0x17c   :  { %v198_v30 = vpop.xlane.xlu0 %197 }
 0x17d   :  { %v201_v31 = vmul.f32 0.03125, %v198_v30  ;;  %v204_v32 = vmul.f32 %v202_v29, %v202_v29 }
 0x17f   :  { %v203_v33 = vsub.f32 %v12645_v24, %v201_v31  ;;  %v206_v34 = vsel %vm192_vm1, %v204_v32, 0.0 }
 0x180   :  { %207 = vadd.xlane.f32.xlu1 %v206_v34 }
 0x181   :  { %v205_v35 = vmul.f32 %v203_v33, %v203_v33 }
 0x183   :  { %v209_v36 = vsel %vm192_vm1, %v205_v35, 0.0 }
 0x184   :  { %210 = vadd.xlane.f32.xlu1 %v209_v36 }
 0x20d   :  { %v208_v40 = vpop.xlane.xlu1 %207 }
 0x20e   :  { %v212_v41 = vmul.f32 0.03125, %v208_v40 }
 0x210   :  { %v214_v42 = vadd.f32 1e-05, %v212_v41 }
 0x211   :  { %v211_v43 = vpop.xlane.xlu1 %210 }
 0x212   :  { %12316 = vrsqrt.f32 %v214_v42  ;;  %v213_v44 = vmul.f32 0.03125, %v211_v43 }
 0x214   :  { %v215_v45 = vadd.f32 1e-05, %v213_v44 }
 0x216   :  { %12318 = vrsqrt.f32 %v215_v45 }
 0x21c   :  { %v12317_v46 = vpop.eup %12316 }
 0x21d   :  { %v218_v47 = vmul.f32 %v12317_v46, %v202_v29 }
 0x21f   :  { %v226_v51 = vmul.f32 %v10296_v48, %v218_v47 }
 0x220   :  { %v12319_v49 = vpop.eup %12318 }
 0x221   :  { %v219_v50 = vmul.f32 %v12319_v49, %v203_v33  ;;  %v234_v54 = vadd.f32 %v10297_v52, %v226_v51 }
 0x223   :  { %v227_v53 = vmul.f32 %v10296_v48, %v219_v50 }
 0x225   :  { %v235_v55 = vadd.f32 %v10297_v52, %v227_v53 }
 0x227   :  { %v236_v56 = vpack.c.bf16 %v235_v55, %v234_v54 }
 0x229   :  { %11576 = vmatmul.mubr.msk.bf16.vlgmr.msra.gmra.mrb[0].mxu1 %vm192_vm1, %v236_v56 }
 0x22a   :  { %11596 = vmatprep.mubr.msk.f32.mxu1 %vm12486_vm2, %v12485_v38 }
 0x2fc   :  { %v297_v58 = vpop.f32.mrb[0].mxu1 }
 0x2fd   :  { %v12681_v59 = vadd.f32 %v10298_v57, %v297_v58  ;;  %v11577_v60 = vpop.f32.mrb[1].mxu1 }
 0x2fe   :  { %v300_v61 = vpop.f32.mrb[2].mxu1 }
 0x2ff   :  { %v12683_v62 = vadd.f32 %v10298_v57, %v300_v61  ;;  %305 = vrot.lane.b32.xlu0 %v12681_v59, %s12487_s22  ;;  %v11578_v63 = vpop.f32.mrb[3].mxu1 }
 0x301   :  { %383 = vrot.lane.b32.xlu1 %v12683_v62, %s12487_s22 }
 0x371   :  { %v306_v0 = vpop.permute.xlu0 %305 }
 0x372   :  { %11580 = vmatpush3.xpose.msk.msra.mxu0 %vm307_vm3, %v306_v0 }
 0x373   :  { %11584 = vmatprep.subr.mxu0 %v12485_v38  ;;  %v384_v1 = vpop.permute.xlu1 %383 }
 0x375   :  { %11582 = vmatmul.mubr.msk.f32.vlgmr.msra.gmra.mrb[2].mxu0 %vm307_vm3, %v12681_v59 }
 0x376   :  { %11585 = vmatpush3.xpose.msk.msra.mxu0 %vm307_vm3, %v384_v1  ;;  %11586 = vmatprep.mubr.msk.f32.mxu0 %vm12486_vm2, %v12485_v38 }
 0x377   :  { %11589 = vmatprep.subr.mxu0 %v12485_v38 }
 0x379   :  { %11587 = vmatmul.mubr.msk.f32.vlgmr.msra.gmra.mrb[4].mxu0 %vm307_vm3, %v12683_v62 }
 0x37a   :  { %11591 = vmatprep.mubr.msk.f32.mxu0 %vm12486_vm2, %v12485_v38 }
 0x448   :  { %v378_v2 = vpop.f32.mrb[2].mxu0 }
 0x449   :  { %v459_v3 = vmul.f32 0.5, %v378_v2  ;;  %v11583_v4 = vpop.f32.mrb[3].mxu0 }
 0x44b   :  { %v462_v5 = vsel %vm461_vm4, %v459_v3, -inf }
 0x44c   :  { %463 = vmax.xlane.f32.xlu1 %v462_v5  ;;  %v455_v6 = vpop.f32.mrb[4].mxu0 }
 0x44d   :  { %v460_v7 = vmul.f32 0.5, %v455_v6  ;;  %v11588_v8 = vpop.f32.mrb[5].mxu0 }
 0x44f   :  { %v465_v10 = vsel %vm461_vm4, %v460_v7, -inf }
 0x450   :  { %466 = vmax.xlane.f32.xlu0 %v465_v10 }
 0x45d   :  { %560 = vrot.lane.b32.xlu1 %v12683_v62, %s12488_s2 }
 0x461   :  { %638 = vrot.lane.b32.xlu1 %v12681_v59, %s12489_s23 }
 0x465   :  { %716 = vrot.lane.b32.xlu1 %v12683_v62, %s12489_s23 }
 0x466   :  { %484 = vrot.lane.b32.xlu0 %v12681_v59, %s12488_s2 }
 0x4d9   :  { %v464_v11 = vpop.xlane.xlu1 %463 }
 0x4da   :  { %v468_v12 = vsub.f32 %v459_v3, %v464_v11 }
 0x4dc   :  { %v470_v14 = vmul.f32 1.442695, %v468_v12 }
 0x4dd   :  { %v467_v15 = vpop.xlane.xlu0 %466  ;;  %v561_v16 = vpop.permute.xlu1 %560 }
 0x4de   :  { %12320 = vpow2.f32 %v470_v14  ;;  %v469_v17 = vsub.f32 %v460_v7, %v467_v15  ;;  %11595 = vmatpush3.msra.mxu1 %v561_v16 }
 0x4df   :  { %11604 = vmatprep.subr.mxu1 %v12485_v38 }
 0x4e0   :  { %v472_v18 = vmul.f32 1.442695, %v469_v17 }
 0x4e1   :  { %v485_v19 = vpop.permute.xlu0 %484  ;;  %v639_v26 = vpop.permute.xlu1 %638 }
 0x4e2   :  { %12322 = vpow2.f32 %v472_v18  ;;  %11590 = vmatpush3.msra.mxu0 %v485_v19 }
 0x4e3   :  { %11599 = vmatprep.subr.mxu0 %v12485_v38 }
 0x4e5   :  { %v717_v27 = vpop.permute.xlu1 %716 }
 0x4e8   :  { %v12321_v20 = vpop.eup %12320 }
 0x4e9   :  { %v474_v21 = vsel %vm461_vm4, %v12321_v20, 0.0 }
 0x4ea   :  { %475 = vadd.xlane.f32.xlu0 %v474_v21 }
 0x4ec   :  { %v12323_v22 = vpop.eup %12322 }
 0x4ed   :  { %v477_v25 = vsel %vm461_vm4, %v12323_v22, 0.0 }
 0x4ee   :  { %478 = vadd.xlane.f32.xlu1 %v477_v25 }
 0x4ff   :  { %714 = vrot.lane.b32.xlu1 %v12683_v62, %s12490_s24 }
 0x500   :  { %636 = vrot.lane.b32.xlu0 %v12681_v59, %s12490_s24 }
 0x577   :  { %v476_v28 = vpop.xlane.xlu0 %475 }
 0x578   :  { %12324 = vrcp.f32 %v476_v28 }
 0x57b   :  { %v479_v29 = vpop.xlane.xlu1 %478  ;;  %v637_v34 = vpop.permute.xlu0 %636 }
 0x57c   :  { %12326 = vrcp.f32 %v479_v29 }
 0x57f   :  { %v715_v35 = vpop.permute.xlu1 %714 }
 0x582   :  { %v12325_v30 = vpop.eup %12324 }
 0x583   :  { %v481_v31 = vmul.f32 %v12325_v30, %v12321_v20 }
 0x585   :  { %11592 = vmatmul.mubr.msk.f32.vlgmr.msra.gmra.mrb[6].mxu0 %vm461_vm4, %v481_v31 }
 0x586   :  { %v12327_v32 = vpop.eup %12326  ;;  %11600 = vmatpush3.xpose.msk.msra.mxu0 %vm307_vm3, %v639_v26  ;;  %11601 = vmatprep.mubr.msk.f32.mxu0 %vm12486_vm2, %v12485_v38 }
 0x587   :  { %v483_v33 = vmul.f32 %v12327_v32, %v12323_v22  ;;  %11609 = vmatprep.subr.mxu0 %v12485_v38 }
 0x589   :  { %11597 = vmatmul.mubr.msk.f32.vlgmr.msra.gmra.mrb[4].mxu1 %vm461_vm4, %v483_v33  ;;  %11602 = vmatmul.mubr.msk.f32.vlgmr.msra.gmra.mrb[8].mxu0 %vm307_vm3, %v637_v34 }
 0x58a   :  { %11605 = vmatpush3.xpose.msk.msra.mxu1 %vm307_vm3, %v717_v27  ;;  %11606 = vmatprep.mubr.msk.f32.mxu1 %vm12486_vm2, %v12485_v38 }
 0x58b   :  { %11614 = vmatprep.subr.mxu1 %v12485_v38  ;;  %11611 = vmatprep.mubr.msk.f32.mxu0 %vm12486_vm2, %v12485_v38 }
 0x58d   :  { %11607 = vmatmul.mubr.msk.f32.vlgmr.msra.gmra.mrb[6].mxu1 %vm307_vm3, %v715_v35 }
 0x58e   :  { %11616 = vmatprep.mubr.msk.f32.mxu1 %vm12486_vm2, %v12485_v38 }
 0x658   :  { %v12735_v36 = vpop.f32.mrb[6].mxu0 }
 0x659   :  { %v11593_v37 = vpop.f32.mrb[7].mxu0 }
 0x65c   :  { %v12737_v39 = vpop.f32.mrb[4].mxu1  ;;  %v710_v40 = vpop.f32.mrb[8].mxu0 }
 0x65d   :  { %v792_v41 = vmul.f32 0.5, %v710_v40  ;;  %v11598_v42 = vpop.f32.mrb[5].mxu1  ;;  %v11603_v43 = vpop.f32.mrb[9].mxu0 }
 0x65f   :  { %v794_v44 = vsel %vm461_vm4, %v792_v41, -inf }
 0x660   :  { %795 = vmax.xlane.f32.xlu0 %v794_v44  ;;  %v788_v45 = vpop.f32.mrb[6].mxu1 }
 0x661   :  { %v793_v46 = vmul.f32 0.5, %v788_v45  ;;  %v11608_v47 = vpop.f32.mrb[7].mxu1 }
 0x663   :  { %v797_v48 = vsel %vm461_vm4, %v793_v46, -inf }
 0x664   :  { %798 = vmax.xlane.f32.xlu1 %v797_v48 }
 0x675   :  { %892 = vrot.lane.b32.xlu1 %v12683_v62, %s12491_s25 }
 0x676   :  { %816 = vrot.lane.b32.xlu0 %v12681_v59, %s12491_s25 }
 0x679   :  { %970 = vrot.lane.b32.xlu1 %v12681_v59, %s12492_s26 }
 0x67d   :  { %1048 = vrot.lane.b32.xlu1 %v12683_v62, %s12492_s26 }
 0x681   :  { %1046 = vrot.lane.b32.xlu1 %v12683_v62, %s14727_s3 }
 0x6ed   :  { %v796_v49 = vpop.xlane.xlu0 %795 }
 0x6ee   :  { %v800_v50 = vsub.f32 %v792_v41, %v796_v49 }
 0x6f0   :  { %v802_v51 = vmul.f32 1.442695, %v800_v50 }
 0x6f1   :  { %v817_v52 = vpop.permute.xlu0 %816  ;;  %v799_v53 = vpop.xlane.xlu1 %798 }
 0x6f2   :  { %12328 = vpow2.f32 %v802_v51  ;;  %v801_v54 = vsub.f32 %v793_v46, %v799_v53  ;;  %11610 = vmatpush3.msra.mxu0 %v817_v52 }
 0x6f3   :  { %11619 = vmatprep.subr.mxu0 %v12485_v38 }
 0x6f4   :  { %v804_v55 = vmul.f32 1.442695, %v801_v54 }
 0x6f5   :  { %v893_v56 = vpop.permute.xlu1 %892 }
 0x6f6   :  { %12330 = vpow2.f32 %v804_v55  ;;  %11615 = vmatpush3.msra.mxu1 %v893_v56 }
 0x6f7   :  { %11624 = vmatprep.subr.mxu1 %v12485_v38 }
 0x6f9   :  { %v971_v1 = vpop.permute.xlu1 %970 }
 0x6fc   :  { %v12329_v57 = vpop.eup %12328 }
 0x6fd   :  { %v806_v58 = vsel %vm461_vm4, %v12329_v57, 0.0  ;;  %v1049_v5 = vpop.permute.xlu1 %1048 }
 0x6fe   :  { %807 = vadd.xlane.f32.xlu0 %v806_v58 }
 0x700   :  { %v12331_v60 = vpop.eup %12330 }
 0x701   :  { %v809_v61 = vsel %vm461_vm4, %v12331_v60, 0.0  ;;  %v1047_v8 = vpop.permute.xlu1 %1046 }
 0x702   :  { %810 = vadd.xlane.f32.xlu0 %v809_v61 }
 0x718   :  { %968 = vrot.lane.b32.xlu0 %v12681_v59, %s14727_s3  ;;  %s14745_s3 = smov 44  }
 0x78b   :  { %v808_v63 = vpop.xlane.xlu0 %807 }
 0x78c   :  { %12332 = vrcp.f32 %v808_v63 }
 0x78f   :  { %v811_v0 = vpop.xlane.xlu0 %810 }
 0x790   :  { %12334 = vrcp.f32 %v811_v0 }
 0x793   :  { %v969_v7 = vpop.permute.xlu0 %968 }
 0x796   :  { %v12333_v2 = vpop.eup %12332 }
 0x797   :  { %v813_v3 = vmul.f32 %v12333_v2, %v12329_v57 }
 0x799   :  { %11612 = vmatmul.mubr.msk.f32.vlgmr.msra.gmra.mrb[10].mxu0 %vm461_vm4, %v813_v3 }
 0x79a   :  { %v12335_v4 = vpop.eup %12334  ;;  %11620 = vmatpush3.xpose.msk.msra.mxu0 %vm307_vm3, %v971_v1  ;;  %11621 = vmatprep.mubr.msk.f32.mxu0 %vm12486_vm2, %v12485_v38 }
 0x79b   :  { %v815_v6 = vmul.f32 %v12335_v4, %v12331_v60  ;;  %11629 = vmatprep.subr.mxu0 %v12485_v38 }
 0x79d   :  { %11617 = vmatmul.mubr.msk.f32.vlgmr.msra.gmra.mrb[8].mxu1 %vm461_vm4, %v815_v6  ;;  %11622 = vmatmul.mubr.msk.f32.vlgmr.msra.gmra.mrb[12].mxu0 %vm307_vm3, %v969_v7 }
 0x79e   :  { %11625 = vmatpush3.xpose.msk.msra.mxu1 %vm307_vm3, %v1049_v5  ;;  %11626 = vmatprep.mubr.msk.f32.mxu1 %vm12486_vm2, %v12485_v38 }
 0x79f   :  { %11634 = vmatprep.subr.mxu1 %v12485_v38  ;;  %11631 = vmatprep.mubr.msk.f32.mxu0 %vm12486_vm2, %v12485_v38 }
 0x7a1   :  { %11627 = vmatmul.mubr.msk.f32.vlgmr.msra.gmra.mrb[10].mxu1 %vm307_vm3, %v1047_v8 }
 0x7a2   :  { %11636 = vmatprep.mubr.msk.f32.mxu1 %vm12486_vm2, %v12485_v38 }
 0x86c   :  { %v12773_v10 = vpop.f32.mrb[10].mxu0 }
 0x86d   :  { %v11613_v11 = vpop.f32.mrb[11].mxu0 }
 0x870   :  { %v12775_v12 = vpop.f32.mrb[8].mxu1  ;;  %v1042_v14 = vpop.f32.mrb[12].mxu0 }
 0x871   :  { %v11982_v15 = vpack.i.bf16 %v12775_v12, %v12773_v10  ;;  %v1124_v16 = vmul.f32 0.5, %v1042_v14  ;;  %v11618_v17 = vpop.f32.mrb[9].mxu1  ;;  %v11623_v18 = vpop.f32.mrb[13].mxu0 }
 0x873   :  { %v1126_v19 = vsel %vm461_vm4, %v1124_v16, -inf }
 0x874   :  { %1127 = vmax.xlane.f32.xlu0 %v1126_v19  ;;  %v1120_v20 = vpop.f32.mrb[10].mxu1 }
 0x875   :  { %v1125_v21 = vmul.f32 0.5, %v1120_v20  ;;  %v11628_v22 = vpop.f32.mrb[11].mxu1 }
 0x877   :  { %v1129_v25 = vsel %vm461_vm4, %v1125_v21, -inf }
 0x878   :  { %1130 = vmax.xlane.f32.xlu1 %v1129_v25 }
 0x889   :  { %1224 = vrot.lane.b32.xlu1 %v12683_v62, %s14725_s27 }
 0x88a   :  { %1148 = vrot.lane.b32.xlu0 %v12681_v59, %s14725_s27  ;;  %s14746_s27 = smov 72  }
 0x88d   :  { %1302 = vrot.lane.b32.xlu1 %v12681_v59, %s14723_s28 }
 0x891   :  { %1380 = vrot.lane.b32.xlu1 %v12683_v62, %s14723_s28  ;;  %s14747_s28 = smov 104  }
 0x895   :  { %1378 = vrot.lane.b32.xlu1 %v12683_v62, %s14721_s29 }
 0x901   :  { %v1128_v26 = vpop.xlane.xlu0 %1127 }
 0x902   :  { %v1132_v27 = vsub.f32 %v1124_v16, %v1128_v26 }
 0x904   :  { %v1134_v28 = vmul.f32 1.442695, %v1132_v27 }
 0x905   :  { %v1149_v29 = vpop.permute.xlu0 %1148  ;;  %v1131_v30 = vpop.xlane.xlu1 %1130 }
 0x906   :  { %12336 = vpow2.f32 %v1134_v28  ;;  %v1133_v31 = vsub.f32 %v1125_v21, %v1131_v30  ;;  %11630 = vmatpush3.msra.mxu0 %v1149_v29 }
 0x907   :  { %11639 = vmatprep.subr.mxu0 %v12485_v38 }
 0x908   :  { %v1136_v32 = vmul.f32 1.442695, %v1133_v31 }
 0x909   :  { %v1225_v33 = vpop.permute.xlu1 %1224 }
 0x90a   :  { %12338 = vpow2.f32 %v1136_v32  ;;  %11635 = vmatpush3.msra.mxu1 %v1225_v33 }
 0x90b   :  { %11644 = vmatprep.subr.mxu1 %v12485_v38 }
 0x90d   :  { %v1303_v43 = vpop.permute.xlu1 %1302 }
 0x910   :  { %v12337_v34 = vpop.eup %12336 }
 0x911   :  { %v1138_v35 = vsel %vm461_vm4, %v12337_v34, 0.0  ;;  %v1381_v47 = vpop.permute.xlu1 %1380 }
 0x912   :  { %1139 = vadd.xlane.f32.xlu0 %v1138_v35 }
 0x914   :  { %v12339_v37 = vpop.eup %12338 }
 0x915   :  { %v1141_v40 = vsel %vm461_vm4, %v12339_v37, 0.0  ;;  %v1379_v50 = vpop.permute.xlu1 %1378 }
 0x916   :  { %1142 = vadd.xlane.f32.xlu0 %v1141_v40 }
 0x92c   :  { %1300 = vrot.lane.b32.xlu0 %v12681_v59, %s14721_s29  ;;  %s14748_s29 = smov 40  }
 0x99f   :  { %v1140_v41 = vpop.xlane.xlu0 %1139 }
 0x9a0   :  { %12340 = vrcp.f32 %v1140_v41 }
 0x9a3   :  { %v1143_v42 = vpop.xlane.xlu0 %1142 }
 0x9a4   :  { %12342 = vrcp.f32 %v1143_v42 }
 0x9a7   :  { %v1301_v49 = vpop.permute.xlu0 %1300 }
 0x9aa   :  { %v12341_v44 = vpop.eup %12340 }
 0x9ab   :  { %v1145_v45 = vmul.f32 %v12341_v44, %v12337_v34 }
 0x9ad   :  { %11632 = vmatmul.mubr.msk.f32.vlgmr.msra.gmra.mrb[14].mxu0 %vm461_vm4, %v1145_v45 }
 0x9ae   :  { %v12343_v46 = vpop.eup %12342  ;;  %11640 = vmatpush3.xpose.msk.msra.mxu0 %vm307_vm3, %v1303_v43  ;;  %11641 = vmatprep.mubr.msk.f32.mxu0 %vm12486_vm2, %v12485_v38 }
 0x9af   :  { %v1147_v48 = vmul.f32 %v12343_v46, %v12339_v37  ;;  %11649 = vmatprep.subr.mxu0 %v12485_v38 }
 0x9b1   :  { %11637 = vmatmul.mubr.msk.f32.vlgmr.msra.gmra.mrb[12].mxu1 %vm461_vm4, %v1147_v48  ;;  %11642 = vmatmul.mubr.msk.f32.vlgmr.msra.gmra.mrb[16].mxu0 %vm307_vm3, %v1301_v49 }
 0x9b2   :  { %11645 = vmatpush3.xpose.msk.msra.mxu1 %vm307_vm3, %v1381_v47  ;;  %11646 = vmatprep.mubr.msk.f32.mxu1 %vm12486_vm2, %v12485_v38 }
 0x9b3   :  { %11654 = vmatprep.subr.mxu1 %v12485_v38  ;;  %11651 = vmatprep.mubr.msk.f32.mxu0 %vm12486_vm2, %v12485_v38 }
 0x9b5   :  { %11647 = vmatmul.mubr.msk.f32.vlgmr.msra.gmra.mrb[14].mxu1 %vm307_vm3, %v1379_v50 }
 0x9b6   :  { %11656 = vmatprep.mubr.msk.f32.mxu1 %vm12486_vm2, %v12485_v38 }
 0xa80   :  { %v12813_v51 = vpop.f32.mrb[14].mxu0 }
 0xa81   :  { %v11633_v52 = vpop.f32.mrb[15].mxu0 }
 0xa84   :  { %v12815_v53 = vpop.f32.mrb[12].mxu1  ;;  %v1374_v54 = vpop.f32.mrb[16].mxu0 }
 0xa85   :  { %v11987_v55 = vpack.i.bf16 %v12815_v53, %v12813_v51  ;;  %v1456_v56 = vmul.f32 0.5, %v1374_v54  ;;  %v11638_v57 = vpop.f32.mrb[13].mxu1  ;;  %v11643_v58 = vpop.f32.mrb[17].mxu0 }
 0xa87   :  { %v1458_v60 = vsel %vm461_vm4, %v1456_v56, -inf }
 0xa88   :  { %1459 = vmax.xlane.f32.xlu0 %v1458_v60  ;;  %v1452_v61 = vpop.f32.mrb[14].mxu1 }
 0xa89   :  { %v1457_v63 = vmul.f32 0.5, %v1452_v61  ;;  %v11648_v0 = vpop.f32.mrb[15].mxu1 }
 0xa8b   :  { %v1461_v1 = vsel %vm461_vm4, %v1457_v63, -inf }
 0xa8c   :  { %1462 = vmax.xlane.f32.xlu1 %v1461_v1 }
 0xa9d   :  { %1556 = vrot.lane.b32.xlu1 %v12683_v62, %s14719_s30 }
 0xa9e   :  { %1480 = vrot.lane.b32.xlu0 %v12681_v59, %s14719_s30  ;;  %s14754_s30 = smov 12  }
 0xaa1   :  { %1634 = vrot.lane.b32.xlu1 %v12681_v59, %s14707_s0 }
 0xaa5   :  { %1712 = vrot.lane.b32.xlu1 %v12683_v62, %s14707_s0  ;;  %s14709_s0 = smov 24  }
 0xaa9   :  { %1710 = vrot.lane.b32.xlu1 %v12683_v62, %s14705_s19 }
 0xb15   :  { %v1460_v2 = vpop.xlane.xlu0 %1459 }
 0xb16   :  { %v1464_v3 = vsub.f32 %v1456_v56, %v1460_v2 }
 0xb18   :  { %v1466_v4 = vmul.f32 1.442695, %v1464_v3 }
 0xb19   :  { %v1481_v5 = vpop.permute.xlu0 %1480  ;;  %v1463_v6 = vpop.xlane.xlu1 %1462 }
 0xb1a   :  { %12344 = vpow2.f32 %v1466_v4  ;;  %v1465_v7 = vsub.f32 %v1457_v63, %v1463_v6  ;;  %11650 = vmatpush3.msra.mxu0 %v1481_v5 }
 0xb1b   :  { %11659 = vmatprep.subr.mxu0 %v12485_v38 }
 0xb1c   :  { %v1468_v8 = vmul.f32 1.442695, %v1465_v7 }
 0xb1d   :  { %v1557_v11 = vpop.permute.xlu1 %1556 }
 0xb1e   :  { %12346 = vpow2.f32 %v1468_v8  ;;  %11655 = vmatpush3.msra.mxu1 %v1557_v11 }
 0xb1f   :  { %11664 = vmatprep.subr.mxu1 %v12485_v38 }
 0xb21   :  { %v1635_v21 = vpop.permute.xlu1 %1634 }
 0xb24   :  { %v12345_v14 = vpop.eup %12344 }
 0xb25   :  { %v1470_v16 = vsel %vm461_vm4, %v12345_v14, 0.0  ;;  %v1713_v27 = vpop.permute.xlu1 %1712 }
 0xb26   :  { %1471 = vadd.xlane.f32.xlu0 %v1470_v16 }
 0xb28   :  { %v12347_v17 = vpop.eup %12346 }
 0xb29   :  { %v1473_v18 = vsel %vm461_vm4, %v12347_v17, 0.0  ;;  %v1711_v30 = vpop.permute.xlu1 %1710 }
 0xb2a   :  { %1474 = vadd.xlane.f32.xlu0 %v1473_v18 }
 0xb40   :  { %1632 = vrot.lane.b32.xlu0 %v12681_v59, %s14705_s19  ;;  %s14710_s19 = smov 16  }
 0xbb3   :  { %v1472_v19 = vpop.xlane.xlu0 %1471 }
 0xbb4   :  { %12348 = vrcp.f32 %v1472_v19 }
 0xbb7   :  { %v1475_v20 = vpop.xlane.xlu0 %1474 }
 0xbb8   :  { %12350 = vrcp.f32 %v1475_v20 }
 0xbbb   :  { %v1633_v29 = vpop.permute.xlu0 %1632 }
 0xbbe   :  { %v12349_v22 = vpop.eup %12348 }
 0xbbf   :  { %v1477_v25 = vmul.f32 %v12349_v22, %v12345_v14 }
 0xbc1   :  { %11652 = vmatmul.mubr.msk.f32.vlgmr.msra.gmra.mrb[18].mxu0 %vm461_vm4, %v1477_v25 }
 0xbc2   :  { %v12351_v26 = vpop.eup %12350  ;;  %11660 = vmatpush3.xpose.msk.msra.mxu0 %vm307_vm3, %v1635_v21  ;;  %11661 = vmatprep.mubr.msk.f32.mxu0 %vm12486_vm2, %v12485_v38 }
 0xbc3   :  { %v1479_v28 = vmul.f32 %v12351_v26, %v12347_v17  ;;  %11669 = vmatprep.subr.mxu0 %v12485_v38 }
 0xbc5   :  { %11657 = vmatmul.mubr.msk.f32.vlgmr.msra.gmra.mrb[16].mxu1 %vm461_vm4, %v1479_v28  ;;  %11662 = vmatmul.mubr.msk.f32.vlgmr.msra.gmra.mrb[20].mxu0 %vm307_vm3, %v1633_v29 }
 0xbc6   :  { %11665 = vmatpush3.xpose.msk.msra.mxu1 %vm307_vm3, %v1713_v27  ;;  %11666 = vmatprep.mubr.msk.f32.mxu1 %vm12486_vm2, %v12485_v38 }
 0xbc7   :  { %11674 = vmatprep.subr.mxu1 %v12485_v38  ;;  %11671 = vmatprep.mubr.msk.f32.mxu0 %vm12486_vm2, %v12485_v38 }
 0xbc9   :  { %11667 = vmatmul.mubr.msk.f32.vlgmr.msra.gmra.mrb[18].mxu1 %vm307_vm3, %v1711_v30 }
 0xbca   :  { %11676 = vmatprep.mubr.msk.f32.mxu1 %vm12486_vm2, %v12485_v38 }
 0xc94   :  { %v12853_v31 = vpop.f32.mrb[18].mxu0 }
 0xc95   :  { %v11653_v32 = vpop.f32.mrb[19].mxu0 }
 0xc98   :  { %v12855_v33 = vpop.f32.mrb[16].mxu1  ;;  %v1706_v34 = vpop.f32.mrb[20].mxu0 }
 0xc99   :  { %v11992_v35 = vpack.i.bf16 %v12855_v33, %v12853_v31  ;;  %v1788_v37 = vmul.f32 0.5, %v1706_v34  ;;  %v11658_v40 = vpop.f32.mrb[17].mxu1  ;;  %v11663_v41 = vpop.f32.mrb[21].mxu0 }
 0xc9b   :  { %v1790_v42 = vsel %vm461_vm4, %v1788_v37, -inf }
 0xc9c   :  { %1791 = vmax.xlane.f32.xlu0 %v1790_v42  ;;  %v1784_v43 = vpop.f32.mrb[18].mxu1 }
 0xc9d   :  { %v1789_v44 = vmul.f32 0.5, %v1784_v43  ;;  %v11668_v45 = vpop.f32.mrb[19].mxu1 }
 0xc9f   :  { %v1793_v46 = vsel %vm461_vm4, %v1789_v44, -inf }
 0xca0   :  { %1794 = vmax.xlane.f32.xlu1 %v1793_v46 }
 0xcb1   :  { %1888 = vrot.lane.b32.xlu1 %v12683_v62, %s14691_s1 }
 0xcb2   :  { %1812 = vrot.lane.b32.xlu0 %v12681_v59, %s14691_s1  ;;  %s14693_s1 = smov 104  }
 0xcb5   :  { %1966 = vrot.lane.b32.xlu1 %v12681_v59, %s14689_s20 }
 0xcb9   :  { %2044 = vrot.lane.b32.xlu1 %v12683_v62, %s14689_s20  ;;  %s14695_s20 = smov 72  }
 0xcbd   :  { %2042 = vrot.lane.b32.xlu1 %v12683_v62, %s14687_s21 }
 0xd29   :  { %v1792_v47 = vpop.xlane.xlu0 %1791 }
 0xd2a   :  { %v1796_v48 = vsub.f32 %v1788_v37, %v1792_v47 }
 0xd2c   :  { %v1798_v49 = vmul.f32 1.442695, %v1796_v48 }
 0xd2d   :  { %v1813_v50 = vpop.permute.xlu0 %1812  ;;  %v1795_v52 = vpop.xlane.xlu1 %1794 }
 0xd2e   :  { %12352 = vpow2.f32 %v1798_v49  ;;  %v1797_v54 = vsub.f32 %v1789_v44, %v1795_v52  ;;  %11670 = vmatpush3.msra.mxu0 %v1813_v50 }
 0xd2f   :  { %11679 = vmatprep.subr.mxu0 %v12485_v38 }
 0xd30   :  { %v1800_v56 = vmul.f32 1.442695, %v1797_v54 }
 0xd31   :  { %v1889_v57 = vpop.permute.xlu1 %1888 }
 0xd32   :  { %12354 = vpow2.f32 %v1800_v56  ;;  %11675 = vmatpush3.msra.mxu1 %v1889_v57 }
 0xd33   :  { %11684 = vmatprep.subr.mxu1 %v12485_v38 }
 0xd35   :  { %v1967_v2 = vpop.permute.xlu1 %1966 }
 0xd38   :  { %v12353_v58 = vpop.eup %12352 }
 0xd39   :  { %v1802_v60 = vsel %vm461_vm4, %v12353_v58, 0.0  ;;  %v2045_v6 = vpop.permute.xlu1 %2044 }
 0xd3a   :  { %1803 = vadd.xlane.f32.xlu0 %v1802_v60 }
 0xd3c   :  { %v12355_v61 = vpop.eup %12354 }
 0xd3d   :  { %v1805_v63 = vsel %vm461_vm4, %v12355_v61, 0.0  ;;  %v2043_v11 = vpop.permute.xlu1 %2042 }
 0xd3e   :  { %1806 = vadd.xlane.f32.xlu0 %v1805_v63 }
 0xd54   :  { %1964 = vrot.lane.b32.xlu0 %v12681_v59, %s14687_s21  ;;  %s14697_s21 = smov 44  }
 0xdc7   :  { %v1804_v0 = vpop.xlane.xlu0 %1803 }
 0xdc8   :  { %12356 = vrcp.f32 %v1804_v0 }
 0xdcb   :  { %v1807_v1 = vpop.xlane.xlu0 %1806 }
 0xdcc   :  { %12358 = vrcp.f32 %v1807_v1 }
 0xdcf   :  { %v1965_v8 = vpop.permute.xlu0 %1964 }
 0xdd2   :  { %v12357_v3 = vpop.eup %12356 }
 0xdd3   :  { %v1809_v4 = vmul.f32 %v12357_v3, %v12353_v58 }
 0xdd5   :  { %11672 = vmatmul.mubr.msk.f32.vlgmr.msra.gmra.mrb[22].mxu0 %vm461_vm4, %v1809_v4 }
 0xdd6   :  { %v12359_v5 = vpop.eup %12358  ;;  %11680 = vmatpush3.xpose.msk.msra.mxu0 %vm307_vm3, %v1967_v2  ;;  %11681 = vmatprep.mubr.msk.f32.mxu0 %vm12486_vm2, %v12485_v38 }
 0xdd7   :  { %v1811_v7 = vmul.f32 %v12359_v5, %v12355_v61  ;;  %11689 = vmatprep.subr.mxu0 %v12485_v38 }
 0xdd9   :  { %11677 = vmatmul.mubr.msk.f32.vlgmr.msra.gmra.mrb[20].mxu1 %vm461_vm4, %v1811_v7  ;;  %11682 = vmatmul.mubr.msk.f32.vlgmr.msra.gmra.mrb[24].mxu0 %vm307_vm3, %v1965_v8 }
 0xdda   :  { %11685 = vmatpush3.xpose.msk.msra.mxu1 %vm307_vm3, %v2045_v6  ;;  %11686 = vmatprep.mubr.msk.f32.mxu1 %vm12486_vm2, %v12485_v38 }
 0xddb   :  { %11694 = vmatprep.subr.mxu1 %v12485_v38  ;;  %11691 = vmatprep.mubr.msk.f32.mxu0 %vm12486_vm2, %v12485_v38 }
 0xddd   :  { %11687 = vmatmul.mubr.msk.f32.vlgmr.msra.gmra.mrb[22].mxu1 %vm307_vm3, %v2043_v11 }
 0xdde   :  { %11696 = vmatprep.mubr.msk.f32.mxu1 %vm12486_vm2, %v12485_v38 }
 0xea8   :  { %v12893_v14 = vpop.f32.mrb[22].mxu0 }
 0xea9   :  { %v11673_v16 = vpop.f32.mrb[23].mxu0 }
 0xeac   :  { %v12895_v17 = vpop.f32.mrb[20].mxu1  ;;  %v2038_v18 = vpop.f32.mrb[24].mxu0 }
 0xead   :  { %v11997_v19 = vpack.i.bf16 %v12895_v17, %v12893_v14  ;;  %v2120_v20 = vmul.f32 0.5, %v2038_v18  ;;  %v11678_v21 = vpop.f32.mrb[21].mxu1  ;;  %v11683_v22 = vpop.f32.mrb[25].mxu0 }
 0xeaf   :  { %v2122_v25 = vsel %vm461_vm4, %v2120_v20, -inf }
 0xeb0   :  { %2123 = vmax.xlane.f32.xlu0 %v2122_v25  ;;  %v2116_v26 = vpop.f32.mrb[22].mxu1 }
 0xeb1   :  { %v2121_v27 = vmul.f32 0.5, %v2116_v26  ;;  %v11688_v28 = vpop.f32.mrb[23].mxu1 }
 0xeb3   :  { %v2125_v29 = vsel %vm461_vm4, %v2121_v27, -inf }
 0xeb4   :  { %2126 = vmax.xlane.f32.xlu1 %v2125_v29 }
 0xec5   :  { %2220 = vrot.lane.b32.xlu1 %v12683_v62, %s14697_s21 }
 0xec6   :  { %2144 = vrot.lane.b32.xlu0 %v12681_v59, %s14697_s21  ;;  %s14699_s21 = smov 100  }
 0xec9   :  { %2298 = vrot.lane.b32.xlu1 %v12681_v59, %s14695_s20 }
 0xecd   :  { %2376 = vrot.lane.b32.xlu1 %v12683_v62, %s14695_s20  ;;  %s14701_s20 = smov 68  }
 0xed1   :  { %2374 = vrot.lane.b32.xlu1 %v12683_v62, %s14693_s1 }
 0xf3d   :  { %v2124_v30 = vpop.xlane.xlu0 %2123 }
 0xf3e   :  { %v2128_v32 = vsub.f32 %v2120_v20, %v2124_v30 }
 0xf40   :  { %v2130_v34 = vmul.f32 1.442695, %v2128_v32 }
 0xf41   :  { %v2145_v37 = vpop.permute.xlu0 %2144  ;;  %v2127_v40 = vpop.xlane.xlu1 %2126 }
 0xf42   :  { %12360 = vpow2.f32 %v2130_v34  ;;  %v2129_v41 = vsub.f32 %v2121_v27, %v2127_v40  ;;  %11690 = vmatpush3.msra.mxu0 %v2145_v37 }
 0xf43   :  { %11699 = vmatprep.subr.mxu0 %v12485_v38 }
 0xf44   :  { %v2132_v42 = vmul.f32 1.442695, %v2129_v41 }
 0xf45   :  { %v2221_v43 = vpop.permute.xlu1 %2220 }
 0xf46   :  { %12362 = vpow2.f32 %v2132_v42  ;;  %11695 = vmatpush3.msra.mxu1 %v2221_v43 }
 0xf47   :  { %11704 = vmatprep.subr.mxu1 %v12485_v38 }
 0xf49   :  { %v2299_v50 = vpop.permute.xlu1 %2298 }
 0xf4c   :  { %v12361_v44 = vpop.eup %12360 }
 0xf4d   :  { %v2134_v45 = vsel %vm461_vm4, %v12361_v44, 0.0  ;;  %v2377_v57 = vpop.permute.xlu1 %2376 }
 0xf4e   :  { %2135 = vadd.xlane.f32.xlu0 %v2134_v45 }
 0xf50   :  { %v12363_v46 = vpop.eup %12362 }
 0xf51   :  { %v2137_v47 = vsel %vm461_vm4, %v12363_v46, 0.0  ;;  %v2375_v61 = vpop.permute.xlu1 %2374 }
 0xf52   :  { %2138 = vadd.xlane.f32.xlu0 %v2137_v47 }
 0xf68   :  { %2296 = vrot.lane.b32.xlu0 %v12681_v59, %s14693_s1  ;;  %s14703_s1 = smov 40  }
 0xfdb   :  { %v2136_v48 = vpop.xlane.xlu0 %2135 }
 0xfdc   :  { %12364 = vrcp.f32 %v2136_v48 }
 0xfdf   :  { %v2139_v49 = vpop.xlane.xlu0 %2138 }
 0xfe0   :  { %12366 = vrcp.f32 %v2139_v49 }
 0xfe3   :  { %v2297_v60 = vpop.permute.xlu0 %2296 }
 0xfe6   :  { %v12365_v52 = vpop.eup %12364 }
 0xfe7   :  { %v2141_v54 = vmul.f32 %v12365_v52, %v12361_v44 }
 0xfe9   :  { %11692 = vmatmul.mubr.msk.f32.vlgmr.msra.gmra.mrb[26].mxu0 %vm461_vm4, %v2141_v54 }
 0xfea   :  { %v12367_v56 = vpop.eup %12366  ;;  %11700 = vmatpush3.xpose.msk.msra.mxu0 %vm307_vm3, %v2299_v50  ;;  %11701 = vmatprep.mubr.msk.f32.mxu0 %vm12486_vm2, %v12485_v38 }
 0xfeb   :  { %v2143_v58 = vmul.f32 %v12367_v56, %v12363_v46  ;;  %11709 = vmatprep.subr.mxu0 %v12485_v38 }
 0xfed   :  { %11697 = vmatmul.mubr.msk.f32.vlgmr.msra.gmra.mrb[24].mxu1 %vm461_vm4, %v2143_v58  ;;  %11702 = vmatmul.mubr.msk.f32.vlgmr.msra.gmra.mrb[28].mxu0 %vm307_vm3, %v2297_v60 }
 0xfee   :  { %11705 = vmatpush3.xpose.msk.msra.mxu1 %vm307_vm3, %v2377_v57  ;;  %11706 = vmatprep.mubr.msk.f32.mxu1 %vm12486_vm2, %v12485_v38 }
 0xfef   :  { %11714 = vmatprep.subr.mxu1 %v12485_v38  ;;  %11711 = vmatprep.mubr.msk.f32.mxu0 %vm12486_vm2, %v12485_v38 }
 0xff1   :  { %11707 = vmatmul.mubr.msk.f32.vlgmr.msra.gmra.mrb[26].mxu1 %vm307_vm3, %v2375_v61 }
 0xff2   :  { %11716 = vmatprep.mubr.msk.f32.mxu1 %vm12486_vm2, %v12485_v38 }
0x10bc   :  { %v12933_v63 = vpop.f32.mrb[26].mxu0 }
0x10bd   :  { %v11693_v0 = vpop.f32.mrb[27].mxu0 }
0x10c0   :  { %v12935_v1 = vpop.f32.mrb[24].mxu1  ;;  %v2370_v2 = vpop.f32.mrb[28].mxu0 }
0x10c1   :  { %v12002_v3 = vpack.i.bf16 %v12935_v1, %v12933_v63  ;;  %v2452_v4 = vmul.f32 0.5, %v2370_v2  ;;  %v11698_v5 = vpop.f32.mrb[25].mxu1  ;;  %v11703_v6 = vpop.f32.mrb[29].mxu0  ;;  %v12055_v63 = vld [vmem:[%s14674_s8 + $0x8] sm:$0xff]  }
0x10c3   :  { %v2454_v7 = vsel %vm461_vm4, %v2452_v4, -inf }
0x10c4   :  { %2455 = vmax.xlane.f32.xlu0 %v2454_v7  ;;  %v2448_v8 = vpop.f32.mrb[26].mxu1 }
0x10c5   :  { %v2453_v11 = vmul.f32 0.5, %v2448_v8  ;;  %v11708_v16 = vpop.f32.mrb[27].mxu1 }
0x10c7   :  { %v2457_v18 = vsel %vm461_vm4, %v2453_v11, -inf }
0x10c8   :  { %2458 = vmax.xlane.f32.xlu1 %v2457_v18 }
0x10d9   :  { %2552 = vrot.lane.b32.xlu1 %v12683_v62, %s14703_s1 }
0x10da   :  { %2476 = vrot.lane.b32.xlu0 %v12681_v59, %s14703_s1  ;;  %s14713_s1 = smov 8  }
0x10dd   :  { %2630 = vrot.lane.b32.xlu1 %v12681_v59, %s14701_s20 }
0x10e1   :  { %2708 = vrot.lane.b32.xlu1 %v12683_v62, %s14701_s20  ;;  %s14715_s20 = smov 4  }
0x10e5   :  { %2706 = vrot.lane.b32.xlu1 %v12683_v62, %s14699_s21 }
0x1151   :  { %v2456_v20 = vpop.xlane.xlu0 %2455 }
0x1152   :  { %v2460_v21 = vsub.f32 %v2452_v4, %v2456_v20 }
0x1154   :  { %v2462_v22 = vmul.f32 1.442695, %v2460_v21 }
0x1155   :  { %v2477_v25 = vpop.permute.xlu0 %2476  ;;  %v2459_v26 = vpop.xlane.xlu1 %2458 }
0x1156   :  { %12368 = vpow2.f32 %v2462_v22  ;;  %v2461_v27 = vsub.f32 %v2453_v11, %v2459_v26  ;;  %11710 = vmatpush3.msra.mxu0 %v2477_v25 }
0x1157   :  { %11719 = vmatprep.subr.mxu0 %v12485_v38 }
0x1158   :  { %v2464_v28 = vmul.f32 1.442695, %v2461_v27 }
0x1159   :  { %v2553_v29 = vpop.permute.xlu1 %2552 }
0x115a   :  { %12370 = vpow2.f32 %v2464_v28  ;;  %11715 = vmatpush3.msra.mxu1 %v2553_v29 }
0x115b   :  { %11724 = vmatprep.subr.mxu1 %v12485_v38 }
0x115d   :  { %v2631_v42 = vpop.permute.xlu1 %2630 }
0x1160   :  { %v12369_v30 = vpop.eup %12368 }
0x1161   :  { %v2466_v32 = vsel %vm461_vm4, %v12369_v30, 0.0  ;;  %v2709_v46 = vpop.permute.xlu1 %2708 }
0x1162   :  { %2467 = vadd.xlane.f32.xlu0 %v2466_v32 }
0x1164   :  { %v12371_v34 = vpop.eup %12370 }
0x1165   :  { %v2469_v37 = vsel %vm461_vm4, %v12371_v34, 0.0  ;;  %v2707_v49 = vpop.permute.xlu1 %2706 }
0x1166   :  { %2470 = vadd.xlane.f32.xlu0 %v2469_v37 }
0x117c   :  { %2628 = vrot.lane.b32.xlu0 %v12681_v59, %s14699_s21  ;;  %s14716_s21 = smov 36  }
0x11ef   :  { %v2468_v40 = vpop.xlane.xlu0 %2467 }
0x11f0   :  { %12372 = vrcp.f32 %v2468_v40 }
0x11f3   :  { %v2471_v41 = vpop.xlane.xlu0 %2470 }
0x11f4   :  { %12374 = vrcp.f32 %v2471_v41 }
0x11f7   :  { %v2629_v48 = vpop.permute.xlu0 %2628 }
0x11fa   :  { %v12373_v43 = vpop.eup %12372 }
0x11fb   :  { %v2473_v44 = vmul.f32 %v12373_v43, %v12369_v30 }
0x11fd   :  { %11712 = vmatmul.mubr.msk.f32.vlgmr.msra.gmra.mrb[30].mxu0 %vm461_vm4, %v2473_v44 }
0x11fe   :  { %v12375_v45 = vpop.eup %12374  ;;  %11720 = vmatpush3.xpose.msk.msra.mxu0 %vm307_vm3, %v2631_v42  ;;  %11721 = vmatprep.mubr.msk.f32.mxu0 %vm12486_vm2, %v12485_v38 }
0x11ff   :  { %v2475_v47 = vmul.f32 %v12375_v45, %v12371_v34  ;;  %11729 = vmatprep.subr.mxu0 %v12485_v38 }
0x1201   :  { %11717 = vmatmul.mubr.msk.f32.vlgmr.msra.gmra.mrb[28].mxu1 %vm461_vm4, %v2475_v47  ;;  %11722 = vmatmul.mubr.msk.f32.vlgmr.msra.gmra.mrb[32].mxu0 %vm307_vm3, %v2629_v48 }
0x1202   :  { %11725 = vmatpush3.xpose.msk.msra.mxu1 %vm307_vm3, %v2709_v46  ;;  %11726 = vmatprep.mubr.msk.f32.mxu1 %vm12486_vm2, %v12485_v38 }
0x1203   :  { %11734 = vmatprep.subr.mxu1 %v12485_v38  ;;  %11731 = vmatprep.mubr.msk.f32.mxu0 %vm12486_vm2, %v12485_v38 }
0x1205   :  { %11727 = vmatmul.mubr.msk.f32.vlgmr.msra.gmra.mrb[30].mxu1 %vm307_vm3, %v2707_v49 }
0x1206   :  { %11736 = vmatprep.mubr.msk.f32.mxu1 %vm12486_vm2, %v12485_v38 }
0x12d0   :  { %v2548_v50 = vpop.f32.mrb[30].mxu0 }
0x12d1   :  { %v11713_v52 = vpop.f32.mrb[31].mxu0 }
0x12d4   :  { %v2624_v54 = vpop.f32.mrb[28].mxu1  ;;  %v2702_v56 = vpop.f32.mrb[32].mxu0 }
0x12d5   :  { %v12007_v57 = vpack.i.bf16 %v2624_v54, %v2548_v50  ;;  %v2784_v58 = vmul.f32 0.5, %v2702_v56  ;;  %v11718_v60 = vpop.f32.mrb[29].mxu1  ;;  %v11723_v61 = vpop.f32.mrb[33].mxu0 }
0x12d7   :  { %v2786_v0 = vsel %vm461_vm4, %v2784_v58, -inf }
0x12d8   :  { %2787 = vmax.xlane.f32.xlu0 %v2786_v0  ;;  %v2780_v2 = vpop.f32.mrb[30].mxu1 }
0x12d9   :  { %v2785_v4 = vmul.f32 0.5, %v2780_v2  ;;  %v11728_v5 = vpop.f32.mrb[31].mxu1 }
0x12db   :  { %v2789_v6 = vsel %vm461_vm4, %v2785_v4, -inf }
0x12dc   :  { %2790 = vmax.xlane.f32.xlu1 %v2789_v6 }
0x12ed   :  { %2884 = vrot.lane.b32.xlu1 %v12683_v62, %s14716_s21 }
0x12f1   :  { %11983 = vrot.lane.b32.xlu1 %v11982_v15, %s14715_s20  ;;  %s14750_s20 = smov 100  }
0x12f5   :  { %11988 = vrot.lane.b32.xlu1 %v11987_v55, %s14713_s1  ;;  %s14749_s1 = smov 68  }
0x12f9   :  { %11998 = vrot.lane.b32.xlu1 %v11997_v19, %s14710_s19  ;;  %s14711_s19 = smov 20  }
0x12fd   :  { %12008 = vrot.lane.b32.xlu1 %v12007_v57, %s14709_s0  ;;  %s14712_s0 = smov 12  }
0x1365   :  { %v2788_v62 = vpop.xlane.xlu0 %2787 }
0x1366   :  { %v2792_v7 = vsub.f32 %v2784_v58, %v2788_v62 }
0x1368   :  { %v2794_v8 = vmul.f32 1.442695, %v2792_v7 }
0x1369   :  { %v2791_v10 = vpop.xlane.xlu1 %2790 }
0x136a   :  { %12376 = vpow2.f32 %v2794_v8  ;;  %v2793_v12 = vsub.f32 %v2785_v4, %v2791_v10  ;;  %v10353_v10 = vld [vmem:[%s14675_s9] ss:$0 sm:$0xff] }
0x136c   :  { %v2796_v15 = vmul.f32 1.442695, %v2793_v12 }
0x136d   :  { %v2885_v11 = vpop.permute.xlu1 %2884 }
0x136e   :  { %12378 = vpow2.f32 %v2796_v15  ;;  %11735 = vmatpush3.msra.mxu1 %v2885_v11 }
0x1371   :  { %v11984_v25 = vpop.permute.xlu1 %11983 }
0x1372   :  { %v11986_v28 = vunpack.i.h.bf16 %v11984_v25  ;;  %v11985_v29 = vunpack.i.l.bf16 %v11984_v25  ;;  %v3160_v25 = vld [vmem:[%s14678_s12 + $0x48] sm:$0xff] }
0x1374   :  { %v12377_v51 = vpop.eup %12376  ;;  %v3017_v42 = vsel %vm307_vm3, %v12737_v39, %v11986_v28  ;;  %v3016_v43 = vsel %vm307_vm3, %v12735_v36, %v11985_v29  ;;  %v3167_v29 = vld [vmem:[%s14678_s12 + $0x80] sm:$0xff] }
0x1375   :  { %v2798_v53 = vsel %vm461_vm4, %v12377_v51, 0.0  ;;  %v11989_v26 = vpop.permute.xlu1 %11988 }
0x1376   :  { %2799 = vadd.xlane.f32.xlu0 %v2798_v53  ;;  %v11991_v30 = vunpack.i.h.bf16 %v11989_v26  ;;  %v11990_v32 = vunpack.i.l.bf16 %v11989_v26 }
0x1378   :  { %v12379_v55 = vpop.eup %12378  ;;  %v3018_v44 = vsel %vm461_vm4, %v3016_v43, %v11990_v32  ;;  %v3019_v45 = vsel %vm461_vm4, %v3017_v42, %v11991_v30  ;;  %v3175_v30 = vld [vmem:[%s14678_s12 + $0xc0] sm:$0xff]  ;;  %v3168_v32 = vld [vmem:[%s14678_s12 + $0x88] sm:$0xff]  ;;  %v3153_v43 = vld [vmem:[%s14678_s12 + $0x10] sm:$0xff] }
0x1379   :  { %v2801_v14 = vsel %vm461_vm4, %v12379_v55, 0.0  ;;  %v11999_v34 = vpop.permute.xlu1 %11998 }
0x137a   :  { %2802 = vadd.xlane.f32.xlu0 %v2801_v14  ;;  %v12001_v50 = vunpack.i.h.bf16 %v11999_v34  ;;  %v12000_v52 = vunpack.i.l.bf16 %v11999_v34  ;;  %v10373_v34 = vcombine.high %v3167_v29, %v3175_v30 }
0x137d   :  { %v12009_v54 = vpop.permute.xlu1 %12008 }
0x137e   :  { %v12011_v58 = vunpack.i.h.bf16 %v12009_v54  ;;  %v12010_v60 = vunpack.i.l.bf16 %v12009_v54 }
0x1390   :  { %2808 = vrot.lane.b32.xlu0 %v12681_v59, %s14716_s21  ;;  %s14718_s21 = smov 28  }
0x1394   :  { %11993 = vrot.lane.b32.xlu0 %v11992_v35, %s14712_s0  ;;  %v12054_v35 = vld [vmem:[%s14674_s8] sm:$0xff]   ;;  %s14752_s0 = smov 4  }
0x1398   :  { %12003 = vrot.lane.b32.xlu0 %v12002_v3, %s14711_s19  ;;  %s14753_s19 = smov 8  }
0x1403   :  { %v2800_v17 = vpop.xlane.xlu0 %2799 }
0x1404   :  { %12380 = vrcp.f32 %v2800_v17 }
0x1407   :  { %v2803_v19 = vpop.xlane.xlu0 %2802 }
0x1408   :  { %12382 = vrcp.f32 %v2803_v19 }
0x140b   :  { %v2809_v16 = vpop.permute.xlu0 %2808 }
0x140c   :  { %11730 = vmatpush3.msra.mxu0 %v2809_v16 }
0x140d   :  { %11739 = vmatprep.subr.bf16.mxu0 %v12485_v38 }
0x140e   :  { %v12381_v59 = vpop.eup %12380 }
0x140f   :  { %v2805_v18 = vmul.f32 %v12381_v59, %v12377_v51  ;;  %v11994_v27 = vpop.permute.xlu0 %11993 }
0x1410   :  { %v11996_v37 = vunpack.i.h.bf16 %v11994_v27  ;;  %v11995_v40 = vunpack.i.l.bf16 %v11994_v27 }
0x1411   :  { %11732 = vmatmul.mubr.msk.f32.vlgmr.msra.gmra.mrb[34].mxu0 %vm461_vm4, %v2805_v18 }
0x1412   :  { %v12383_v31 = vpop.eup %12382  ;;  %11743 = vmatprep.mubr.msk.bf16.mxu0 %vm12486_vm2, %v12485_v38  ;;  %11740 = vmatpush3.bf16.msra.mxu0 %v12054_v35  ;;  %v3021_v46 = vsel %vm3020_vm5, %v3018_v44, %v11995_v40  ;;  %v3022_v47 = vsel %vm3020_vm5, %v3019_v45, %v11996_v37  ;;  %v3176_v37 = vld [vmem:[%s14678_s12 + $0xc8] sm:$0xff]  ;;  %v10372_v40 = vcombine.low %v3167_v29, %v3175_v30  ;;  %v3161_v44 = vld [vmem:[%s14678_s12 + $0x50] sm:$0xff]  ;;  %v3154_v45 = vld [vmem:[%s14678_s12 + $0x18] sm:$0xff] }
0x1413   :  { %v2807_v33 = vmul.f32 %v12383_v31, %v12379_v55  ;;  %11741 = vmatprep.subr.bf16.mxu0 %v12485_v38  ;;  %v12004_v41 = vpop.permute.xlu0 %12003  ;;  %v3023_v56 = vsel %vm72_vm0, %v3021_v46, %v12000_v52  ;;  %v3024_v39 = vsel %vm72_vm0, %v3022_v47, %v12001_v50  ;;  %v10375_v42 = vcombine.high %v3168_v32, %v3176_v37  ;;  %v3166_v29 = vld [vmem:[%s14678_s12 + $0x78] sm:$0xff] }
0x1414   :  { %v12006_v48 = vunpack.i.h.bf16 %v12004_v41  ;;  %v12005_v49 = vunpack.i.l.bf16 %v12004_v41  ;;  %v10374_v41 = vcombine.low %v3168_v32, %v3176_v37  ;;  %v12517_v46 = vmov 0  }
0x1415   :  { %11737 = vmatmul.mubr.msk.f32.vlgmr.msra.gmra.mrb[32].mxu1 %vm461_vm4, %v2807_v33  ;;  %v10361_v47 = vcombine.high %v3153_v43, %v3161_v44 }
0x1416   :  { %11742 = vmatpush3.bf16.msra.mxu0 %v12055_v63  ;;  %v3026_v36 = vsel %vm3025_vm6, %v3023_v56, %v12005_v49  ;;  %v3027_v57 = vsel %vm3025_vm6, %v3024_v39, %v12006_v48  ;;  %3462 = vmatprep.mubr.bf16.mxu1 %v12517_v46  ;;  %v3162_v48 = vld [vmem:[%s14678_s12 + $0x58] sm:$0xff]  ;;  %v10360_v49 = vcombine.low %v3153_v43, %v3161_v44 }
0x1417   :  { %v3029_v4 = vsel %vm3028_vm7, %v3026_v36, %v12010_v60  ;;  %v3030_v5 = vsel %vm3028_vm7, %v3027_v57, %v12011_v58  ;;  %v10362_v50 = vcombine.low %v3154_v45, %v3162_v48  ;;  %v10363_v52 = vcombine.high %v3154_v45, %v3162_v48  ;;  %v3182_v43 = vld [vmem:[%s14678_s12 + $0xf8] sm:$0xff] }
0x14e4   :  { %v2880_v1 = vpop.f32.mrb[34].mxu0 }
0x14e5   :  { %v11733_v3 = vpop.f32.mrb[35].mxu0 }
0x14e6   :  { %v3151_v3 = vld [vmem:[%s14678_s12] sm:$0xff] }
0x14e8   :  { %v2956_v20 = vpop.f32.mrb[32].mxu1 }
0x14e9   :  { %v12012_v21 = vpack.i.bf16 %v2956_v20, %v2880_v1  ;;  %v11738_v22 = vpop.f32.mrb[33].mxu1  ;;  %v3159_v20 = vld [vmem:[%s14678_s12 + $0x40] sm:$0xff] }
0x14ea   :  { %v10357_v22 = vcombine.high %v3151_v3, %v3159_v20  ;;  %v10356_v26 = vcombine.low %v3151_v3, %v3159_v20  ;;  %v3180_v3 = vld [vmem:[%s14678_s12 + $0xe8] sm:$0xff] }
0x14eb   :  { %12013 = vrot.lane.b32.xlu0 %v12012_v21, %s14718_s21  ;;  %v3152_v21 = vld [vmem:[%s14678_s12 + $0x8] sm:$0xff]  ;;  %s14744_s21 = smov 108  }
0x14ec   :  { %v10358_v27 = vcombine.low %v3152_v21, %v3160_v25  ;;  %v10359_v28 = vcombine.high %v3152_v21, %v3160_v25  ;;  %3430 = vmatprep.subr.bf16.mxu1 %v10357_v22 }
0x14ed   :  { %3431 = vmatpush1.bf16.msra.mxu1 %v10356_v26  ;;  %v3157_v26 = vld [vmem:[%s14678_s12 + $0x30] sm:$0xff] }
0x14ee   :  { %3473 = vmatprep.subr.bf16.mxu0 %v10359_v28  ;;  %3432 = vmatprep.subr.bf16.mxu1 %v10373_v34  ;;  %v3158_v28 = vld [vmem:[%s14678_s12 + $0x38] sm:$0xff] }
0x14ef   :  { %v10371_v37 = vcombine.high %v3158_v28, %v3166_v29  ;;  %v10370_v45 = vcombine.low %v3158_v28, %v3166_v29  ;;  %v13296_v28 = vsub.s32 4, %v12629_v9  ;;  %v13299_v29 = vsub.s32 6, %v12629_v9 }
0x14f1   :  { %3433 = vmatpush1.bf16.msra.mxu1 %v10372_v40  ;;  %v3173_v40 = vld [vmem:[%s14678_s12 + $0xb0] sm:$0xff] }
0x14f2   :  { %3516 = vmatprep.subr.bf16.mxu1 %v10361_v47 }
0x155d   :  { %v12014_v61 = vpop.permute.xlu0 %12013 }
0x155e   :  { %v12016_v0 = vunpack.i.h.bf16 %v12014_v61  ;;  %v12015_v2 = vunpack.i.l.bf16 %v12014_v61 }
0x1560   :  { %v3033_v6 = vsel %vm3031_vm8, %v3030_v5, %v12016_v0  ;;  %v3032_v62 = vsel %vm3031_vm8, %v3029_v4, %v12015_v2  ;;  %v10354_v0 = vld [vmem:[%s14676_s10] ss:$0 sm:$0xff] }
0x1561   :  { %v3034_v7 = vpack.c.bf16 %v3033_v6, %v3032_v62  ;;  %v10355_v6 = vld [vmem:[%s14677_s11] ss:$0 sm:$0xff] }
0x1563   :  { %11744 = vmatmul.mubr.msk.bf16.vlgmr.msra.gmra.mrb[36].mxu0 %vm192_vm1, %v3034_v7  ;;  %v3169_v7 = vld [vmem:[%s14678_s12 + $0x90] sm:$0xff] }
0x1564   :  { %3474 = vmatpush1.bf16.msra.mxu0 %v10358_v27  ;;  %3505 = vmatprep.mubr.bf16.mxu0 %v12517_v46  ;;  %v3165_v27 = vld [vmem:[%s14678_s12 + $0x70] sm:$0xff] }
0x1565   :  { %3475 = vmatprep.subr.bf16.mxu0 %v10375_v42  ;;  %v10369_v34 = vcombine.high %v3157_v26, %v3165_v27  ;;  %v3174_v42 = vld [vmem:[%s14678_s12 + $0xb8] sm:$0xff]  ;;  %v10368_v44 = vcombine.low %v3157_v26, %v3165_v27 }
0x1566   :  { %v10387_v48 = vcombine.high %v3174_v42, %v3182_v43 }
0x1568   :  { %3476 = vmatpush1.bf16.msra.mxu0 %v10374_v41  ;;  %v3181_v41 = vld [vmem:[%s14678_s12 + $0xf0] sm:$0xff] }
0x1569   :  { %3559 = vmatprep.subr.bf16.mxu0 %v10363_v52  ;;  %v10385_v47 = vcombine.high %v3173_v40, %v3181_v41  ;;  %v12056_v52 = vld [vmem:[%s14680_s14 + $0x40] sm:$0xff]  }
0x1636   :  { %v3088_v8 = vpop.f32.mrb[36].mxu0 }
0x1637   :  { %v3095_v12 = vadd.f32 %v3088_v8, %v12643_v23  ;;  %v11745_v15 = vpop.f32.mrb[37].mxu0  ;;  %v3177_v8 = vld [vmem:[%s14678_s12 + $0xd0] sm:$0xff] }
0x1638   :  { %v3091_v11 = vpop.f32.mrb[38].mxu0 }
0x1639   :  { %v13036_v51 = vadd.f32 %v10353_v10, %v3095_v12  ;;  %v3096_v53 = vadd.f32 %v3091_v11, %v12645_v24  ;;  %v11746_v55 = vpop.f32.mrb[39].mxu0  ;;  %v3178_v12 = vld [vmem:[%s14678_s12 + $0xd8] sm:$0xff] }
0x163a   :  { %v10377_v55 = vcombine.high %v3169_v7, %v3177_v8 }
0x163b   :  { %v13039_v14 = vadd.f32 %v10353_v10, %v3096_v53  ;;  %v3108_v17 = vsel %vm192_vm1, %v13036_v51, 0.0  ;;  %v3170_v10 = vld [vmem:[%s14678_s12 + $0x98] sm:$0xff] }
0x163c   :  { %3109 = vadd.xlane.f32.xlu1 %v3108_v17  ;;  %v10379_v17 = vcombine.high %v3170_v10, %v3178_v12 }
0x163d   :  { %v3111_v19 = vsel %vm192_vm1, %v13039_v14, 0.0 }
0x163e   :  { %3112 = vadd.xlane.f32.xlu0 %v3111_v19  ;;  %v3155_v19 = vld [vmem:[%s14678_s12 + $0x20] sm:$0xff] }
0x16c9   :  { %v3110_v16 = vpop.xlane.xlu1 %3109 }
0x16ca   :  { %v3114_v59 = vmul.f32 0.03125, %v3110_v16  ;;  %v3163_v16 = vld [vmem:[%s14678_s12 + $0x60] sm:$0xff] }
0x16cb   :  { %v3113_v23 = vpop.xlane.xlu0 %3112  ;;  %v10364_v20 = vcombine.low %v3155_v19, %v3163_v16 }
0x16cc   :  { %v3116_v18 = vsub.f32 %v13036_v51, %v3114_v59  ;;  %v3115_v31 = vmul.f32 0.03125, %v3113_v23  ;;  %v3156_v59 = vld [vmem:[%s14678_s12 + $0x28] sm:$0xff] }
0x16cd   :  { %v3164_v23 = vld [vmem:[%s14678_s12 + $0x68] sm:$0xff] }
0x16ce   :  { %v3117_v33 = vsub.f32 %v13039_v14, %v3115_v31  ;;  %v3118_v24 = vmul.f32 %v3116_v18, %v3116_v18  ;;  %v10378_v31 = vcombine.low %v3170_v10, %v3178_v12  ;;  %v10366_v21 = vcombine.low %v3156_v59, %v3164_v23  ;;  %v12073_v10 = vld [vmem:[%s14680_s14 + $0xe0] sm:$0xff]  }
0x16cf   :  { %v12074_v12 = vld [vmem:[%s14680_s14 + $0x20] sm:$0xff]  }
0x16d0   :  { %v3120_v35 = vsel %vm192_vm1, %v3118_v24, 0.0  ;;  %v3119_v63 = vmul.f32 %v3117_v33, %v3117_v33  ;;  %v10367_v24 = vcombine.high %v3156_v59, %v3164_v23  ;;  %v12082_v59 = vld [vmem:[%s14680_s14 + $0x30] sm:$0xff]  }
0x16d1   :  { %3121 = vadd.xlane.f32.xlu0 %v3120_v35  ;;  %v3171_v35 = vld [vmem:[%s14678_s12 + $0xa0] sm:$0xff]  ;;  %v12083_v23 = vld [vmem:[%s14680_s14 + $0xb0] sm:$0xff]  }
0x16d2   :  { %v3123_v1 = vsel %vm192_vm1, %v3119_v63, 0.0  ;;  %v3179_v63 = vld [vmem:[%s14678_s12 + $0xe0] sm:$0xff] }
0x16d3   :  { %v10381_v22 = vcombine.high %v3171_v35, %v3179_v63  ;;  %v10380_v30 = vcombine.low %v3171_v35, %v3179_v63  ;;  %v12088_v35 = vld [vmem:[%s14680_s14 + $0x140] sm:$0xff]  }
0x16d4   :  { %v12089_v63 = vld [vmem:[%s14680_s14 + $0x1c0] sm:$0xff]  }
0x16d5   :  { %3124 = vadd.xlane.f32.xlu0 %v3123_v1  ;;  %v3172_v1 = vld [vmem:[%s14678_s12 + $0xa8] sm:$0xff] }
0x16d6   :  { %v10383_v25 = vcombine.high %v3172_v1, %v3180_v3  ;;  %v10382_v32 = vcombine.low %v3172_v1, %v3180_v3  ;;  %v13280_v1 = vsub.s32 2, %v12629_v9  ;;  %v3183_v3 = vld [vmem:[%s14679_s13] sm:$0xff] }
0x175e   :  { %v3122_v54 = vpop.xlane.xlu0 %3121 }
0x175f   :  { %v3126_v56 = vmul.f32 0.03125, %v3122_v54  ;;  %v12057_v54 = vld [vmem:[%s14680_s14 + $0xc0] sm:$0xff]  }
0x1761   :  { %v3128_v39 = vadd.f32 1e-05, %v3126_v56  ;;  %v12058_v56 = vld [vmem:[%s14680_s14] sm:$0xff]  }
0x1762   :  { %v3125_v36 = vpop.xlane.xlu0 %3124 }
0x1763   :  { %12384 = vrsqrt.f32 %v3128_v39  ;;  %v3127_v57 = vmul.f32 0.03125, %v3125_v36  ;;  %v12059_v39 = vld [vmem:[%s14680_s14 + $0x80] sm:$0xff]   ;;  %v12060_v36 = vld [vmem:[%s14680_s14 + $0x48] sm:$0xff]  }
0x1765   :  { %v3129_v58 = vadd.f32 1e-05, %v3127_v57  ;;  %v12061_v57 = vld [vmem:[%s14680_s14 + $0xc8] sm:$0xff]  }
0x1767   :  { %12386 = vrsqrt.f32 %v3129_v58  ;;  %v12062_v58 = vld [vmem:[%s14680_s14 + $0x8] sm:$0xff]  }
0x176d   :  { %v12385_v60 = vpop.eup %12384 }
0x176e   :  { %v3132_v61 = vmul.f32 %v12385_v60, %v3116_v18  ;;  %v10376_v18 = vcombine.low %v3169_v7, %v3177_v8  ;;  %v12063_v60 = vld [vmem:[%s14680_s14 + $0x88] sm:$0xff]   ;;  %v12071_v7 = vld [vmem:[%s14680_s14 + $0x98] sm:$0xff]   ;;  %v12072_v8 = vld [vmem:[%s14680_s14 + $0x60] sm:$0xff]  }
0x1770   :  { %v3140_v4 = vmul.f32 %v10354_v0, %v3132_v61  ;;  %v12064_v61 = vld [vmem:[%s14680_s14 + $0x50] sm:$0xff]  }
0x1771   :  { %v12387_v2 = vpop.eup %12386 }
0x1772   :  { %v3133_v5 = vmul.f32 %v12387_v2, %v3117_v33  ;;  %v3148_v15 = vadd.f32 %v10355_v6, %v3140_v4  ;;  %v10365_v33 = vcombine.high %v3155_v19, %v3163_v16  ;;  %v12066_v2 = vld [vmem:[%s14680_s14 + $0x10] sm:$0xff]  }
0x1773   :  { %v12067_v4 = vld [vmem:[%s14680_s14 + $0x90] sm:$0xff]  }
0x1774   :  { %v3141_v62 = vmul.f32 %v10354_v0, %v3133_v5  ;;  %v12065_v0 = vld [vmem:[%s14680_s14 + $0xd0] sm:$0xff]   ;;  %v12068_v5 = vld [vmem:[%s14680_s14 + $0x58] sm:$0xff]  }
0x1775   :  { %v12080_v19 = vld [vmem:[%s14680_s14 + $0x70] sm:$0xff]  }
0x1776   :  { %v3149_v11 = vadd.f32 %v10355_v6, %v3141_v62  ;;  %v12069_v6 = vld [vmem:[%s14680_s14 + $0xd8] sm:$0xff]   ;;  %v12081_v16 = vld [vmem:[%s14680_s14 + $0xf0] sm:$0xff]  }
0x1777   :  { %v12070_v62 = vld [vmem:[%s14680_s14 + $0x18] sm:$0xff]  }
0x1778   :  { %v13105_v53 = vpack.c.bf16 %v3149_v11, %v3148_v15  ;;  %v12075_v15 = vld [vmem:[%s14680_s14 + $0xa0] sm:$0xff]   ;;  %v12076_v11 = vld [vmem:[%s14680_s14 + $0x68] sm:$0xff]  }
0x177a   :  { %10388 = vmatmul.mubr.msk.bf16.vlgmr.msra.gmra.mrb[36].mxu1 %vm192_vm1, %v13105_v53  ;;  %10389 = vmatmul.mubr.msk.bf16.vlgmr.msra.gmra.mrb[40].mxu0 %vm192_vm1, %v13105_v53 }
0x177b   :  { %3517 = vmatpush1.bf16.msra.mxu1 %v10360_v49  ;;  %3560 = vmatpush1.bf16.msra.mxu0 %v10362_v50  ;;  %v10384_v49 = vcombine.low %v3173_v40, %v3181_v41  ;;  %v10386_v50 = vcombine.low %v3174_v42, %v3182_v43 }
0x177c   :  { %3518 = vmatprep.subr.bf16.mxu1 %v10377_v55  ;;  %3561 = vmatprep.subr.bf16.mxu0 %v10379_v17  ;;  %v12078_v55 = vld [vmem:[%s14680_s14 + $0x28] sm:$0xff]  }
0x177d   :  { %3548 = vmatprep.mubr.bf16.mxu1 %v12517_v46  ;;  %3591 = vmatprep.mubr.bf16.mxu0 %v12517_v46  ;;  %v12079_v17 = vld [vmem:[%s14680_s14 + $0xa8] sm:$0xff]  }
0x177f   :  { %3519 = vmatpush1.bf16.msra.mxu1 %v10376_v18  ;;  %3562 = vmatpush1.bf16.msra.mxu0 %v10378_v31  ;;  %v12084_v18 = vld [vmem:[%s14680_s14 + $0x78] sm:$0xff]  }
0x1780   :  { %3602 = vmatprep.subr.bf16.mxu1 %v10365_v33  ;;  %3645 = vmatprep.subr.bf16.mxu0 %v10367_v24  ;;  %v12085_v31 = vld [vmem:[%s14680_s14 + $0xf8] sm:$0xff]  }
0x1781   :  { %v12086_v33 = vld [vmem:[%s14680_s14 + $0x38] sm:$0xff]  }
0x1782   :  { %10390 = vmatmul.mubr.msk.bf16.vlgmr.msra.gmra.mrb[40].mxu1 %vm192_vm1, %v13105_v53  ;;  %10391 = vmatmul.mubr.msk.bf16.vlgmr.msra.gmra.mrb[44].mxu0 %vm192_vm1, %v13105_v53  ;;  %v12087_v24 = vld [vmem:[%s14680_s14 + $0xb8] sm:$0xff]  }
0x1783   :  { %3603 = vmatpush1.bf16.msra.mxu1 %v10364_v20  ;;  %3646 = vmatpush1.bf16.msra.mxu0 %v10366_v21  ;;  %v13286_v20 = vsub.s32 1, %v12629_v9  ;;  %v13289_v21 = vsub.s32 3, %v12629_v9 }
0x1784   :  { %3604 = vmatprep.subr.bf16.mxu1 %v10381_v22  ;;  %3647 = vmatprep.subr.bf16.mxu0 %v10383_v25  ;;  %v3190_v22 = vrot.slane %v3183_v3, %v12636_v13  ;;  %v3198_v25 = vrot.slane %v3183_v3, %v13280_v1 }
0x1785   :  { %3634 = vmatprep.mubr.bf16.mxu1 %v12517_v46  ;;  %3677 = vmatprep.mubr.bf16.mxu0 %v12517_v46  ;;  %v3194_v26 = vrot.slane %v3183_v3, %v13286_v20  ;;  %v3202_v27 = vrot.slane %v3183_v3, %v13289_v21 }
0x1787   :  { %3605 = vmatpush1.bf16.msra.mxu1 %v10380_v30  ;;  %3648 = vmatpush1.bf16.msra.mxu0 %v10382_v32 }
0x1788   :  { %3688 = vmatprep.subr.bf16.mxu1 %v10369_v34  ;;  %3731 = vmatprep.subr.bf16.mxu0 %v10371_v37  ;;  %v13302_v34 = vsub.s32 5, %v12629_v9  ;;  %v13305_v37 = vsub.s32 7, %v12629_v9 }
0x178a   :  { %10392 = vmatmul.mubr.msk.bf16.vlgmr.msra.gmra.mrb[44].mxu1 %vm192_vm1, %v13105_v53  ;;  %10393 = vmatmul.mubr.msk.bf16.vlgmr.msra.gmra.mrb[48].mxu0 %vm192_vm1, %v13105_v53  ;;  %v3210_v9 = vrot.slane %v3183_v3, %v13302_v34 }
0x178b   :  { %3689 = vmatpush1.bf16.msra.mxu1 %v10368_v44  ;;  %3732 = vmatpush1.bf16.msra.mxu0 %v10370_v45 }
0x178c   :  { %3690 = vmatprep.subr.bf16.mxu1 %v10385_v47  ;;  %3733 = vmatprep.subr.bf16.mxu0 %v10387_v48 }
0x178d   :  { %3720 = vmatprep.mubr.bf16.mxu1 %v12517_v46  ;;  %3763 = vmatprep.mubr.bf16.mxu0 %v12517_v46 }
0x178f   :  { %3691 = vmatpush1.bf16.msra.mxu1 %v10384_v49  ;;  %3734 = vmatpush1.bf16.msra.mxu0 %v10386_v50 }
0x1790   :  { %11136 = vmatprep.subr.bf16.mxu1 %v12056_v52  ;;  %11158 = vmatprep.subr.bf16.mxu0 %v12057_v54 }
0x1792   :  { %10394 = vmatmul.mubr.msk.bf16.vlgmr.msra.gmra.mrb[48].mxu1 %vm192_vm1, %v13105_v53  ;;  %10395 = vmatmul.mubr.msk.bf16.vlgmr.msra.gmra.mrb[52].mxu0 %vm192_vm1, %v13105_v53  ;;  %v12077_v53 = vld [vmem:[%s14680_s14 + $0xe8] sm:$0xff]  }
0x1793   :  { %11137 = vmatpush3.bf16.msra.mxu1 %v12058_v56  ;;  %11159 = vmatpush3.bf16.msra.mxu0 %v12059_v39  ;;  %v3206_v56 = vrot.slane %v3183_v3, %v13296_v28  ;;  %v3214_v39 = vrot.slane %v3183_v3, %v13299_v29 }
0x1794   :  { %11138 = vmatprep.subr.bf16.mxu1 %v12060_v36  ;;  %11160 = vmatprep.subr.bf16.mxu0 %v12061_v57 }
0x1797   :  { %11139 = vmatpush3.bf16.msra.mxu1 %v12062_v58  ;;  %11161 = vmatpush3.bf16.msra.mxu0 %v12063_v60  ;;  %v3218_v58 = vrot.slane %v3183_v3, %v13305_v37 }
0x1798   :  { %11140 = vmatprep.subr.bf16.mxu1 %v12064_v61  ;;  %11162 = vmatprep.subr.bf16.mxu0 %v12065_v0 }
0x179b   :  { %11141 = vmatpush3.bf16.msra.mxu1 %v12066_v2  ;;  %11163 = vmatpush3.bf16.msra.mxu0 %v12067_v4 }
0x179c   :  { %11142 = vmatprep.subr.bf16.mxu1 %v12068_v5  ;;  %11164 = vmatprep.subr.bf16.mxu0 %v12069_v6 }
0x179f   :  { %11143 = vmatpush3.bf16.msra.mxu1 %v12070_v62  ;;  %11165 = vmatpush3.bf16.msra.mxu0 %v12071_v7  ;;  %v13314_v7 = vld [vmem:[%s14679_s13 + $0x8] sm:$0xff] }
0x17a0   :  { %11144 = vmatprep.subr.bf16.mxu1 %v12072_v8  ;;  %11166 = vmatprep.subr.bf16.mxu0 %v12073_v10 }
0x17a3   :  { %11145 = vmatpush3.bf16.msra.mxu1 %v12074_v12  ;;  %11167 = vmatpush3.bf16.msra.mxu0 %v12075_v15 }
0x17a4   :  { %11146 = vmatprep.subr.bf16.mxu1 %v12076_v11  ;;  %11168 = vmatprep.subr.bf16.mxu0 %v12077_v53 }
0x17a7   :  { %11147 = vmatpush3.bf16.msra.mxu1 %v12078_v55  ;;  %11169 = vmatpush3.bf16.msra.mxu0 %v12079_v17  ;;  %v12090_v55 = vld [vmem:[%s14680_s14 + $0x100] sm:$0xff]  }
0x17a8   :  { %11148 = vmatprep.subr.bf16.mxu1 %v12080_v19  ;;  %11170 = vmatprep.subr.bf16.mxu0 %v12081_v16  ;;  %v12091_v17 = vld [vmem:[%s14680_s14 + $0x180] sm:$0xff]  }
0x17ab   :  { %11149 = vmatpush3.bf16.msra.mxu1 %v12082_v59  ;;  %11171 = vmatpush3.bf16.msra.mxu0 %v12083_v23 }
0x17ac   :  { %11150 = vmatprep.subr.bf16.mxu1 %v12084_v18  ;;  %11172 = vmatprep.subr.bf16.mxu0 %v12085_v31  ;;  %v12092_v18 = vld [vmem:[%s14680_s14 + $0x148] sm:$0xff]  }
0x17ad   :  { %v12093_v31 = vld [vmem:[%s14680_s14 + $0x1c8] sm:$0xff]  }
0x17af   :  { %11151 = vmatpush3.bf16.msra.mxu1 %v12086_v33  ;;  %11173 = vmatpush3.bf16.msra.mxu0 %v12087_v24  ;;  %v3222_v33 = vrot.slane %v13314_v7, %v12636_v13 }
0x17b0   :  { %11180 = vmatprep.subr.bf16.mxu1 %v12088_v35  ;;  %11202 = vmatprep.subr.bf16.mxu0 %v12089_v63 }
0x184d   :  { %v3464_v30 = vpop.f32.mrb[36].mxu1  ;;  %v3507_v32 = vpop.f32.mrb[40].mxu0 }
0x184e   :  { %v3465_v40 = vadd.f32 %v3464_v30, %v3190_v22  ;;  %v3508_v41 = vadd.f32 %v3507_v32, %v3198_v25  ;;  %v3466_v42 = vpop.f32.mrb[37].mxu1  ;;  %v3509_v43 = vpop.f32.mrb[41].mxu0  ;;  %v3226_v32 = vrot.slane %v13314_v7, %v13286_v20 }
0x184f   :  { %v3467_v44 = vadd.f32 %v3466_v42, %v3194_v26  ;;  %v3510_v45 = vadd.f32 %v3509_v43, %v3202_v27  ;;  %v3468_v47 = vpop.f32.mrb[38].mxu1  ;;  %v3511_v48 = vpop.f32.mrb[42].mxu0  ;;  %v12094_v42 = vld [vmem:[%s14680_s14 + $0x108] sm:$0xff]  }
0x1850   :  { %v3469_v49 = vadd.f32 %v3468_v47, %v3190_v22  ;;  %v3512_v50 = vadd.f32 %v3511_v48, %v3198_v25  ;;  %v3470_v52 = vpop.f32.mrb[39].mxu1  ;;  %v3513_v54 = vpop.f32.mrb[43].mxu0  ;;  %v3774_v60 = vmax.f32 %v3465_v40, 0.0  ;;  %v3776_v61 = vmax.f32 %v3508_v41, 0.0  ;;  %v12095_v43 = vld [vmem:[%s14680_s14 + $0x188] sm:$0xff]  }
0x1851   :  { %v3471_v36 = vadd.f32 %v3470_v52, %v3194_v26  ;;  %v3514_v57 = vadd.f32 %v3513_v54, %v3202_v27  ;;  %v3775_v4 = vmax.f32 %v3467_v44, 0.0  ;;  %v3777_v5 = vmax.f32 %v3510_v45, 0.0  ;;  %v12097_v52 = vld [vmem:[%s14680_s14 + $0x1d0] sm:$0xff]  }
0x1852   :  { %v3790_v0 = vmax.f32 %v3469_v49, 0.0  ;;  %v3792_v2 = vmax.f32 %v3512_v50, 0.0  ;;  %v3230_v22 = vrot.slane %v13314_v7, %v13280_v1  ;;  %v3234_v44 = vrot.slane %v13314_v7, %v13289_v21  ;;  %v12096_v50 = vld [vmem:[%s14680_s14 + $0x150] sm:$0xff]  }
0x1853   :  { %v3791_v6 = vmax.f32 %v3471_v36, 0.0  ;;  %v3793_v62 = vmax.f32 %v3514_v57, 0.0 }
0x1854   :  { %v3806_v8 = vpack.c.bf16 %v3790_v0, %v3774_v60  ;;  %v3808_v10 = vpack.c.bf16 %v3792_v2, %v3776_v61  ;;  %v12098_v2 = vld [vmem:[%s14680_s14 + $0x110] sm:$0xff]  }
0x1855   :  { %v3807_v12 = vpack.c.bf16 %v3791_v6, %v3775_v4  ;;  %v3809_v15 = vpack.c.bf16 %v3793_v62, %v3777_v5  ;;  %v3550_v11 = vpop.f32.mrb[40].mxu1  ;;  %v3593_v53 = vpop.f32.mrb[44].mxu0  ;;  %v12099_v4 = vld [vmem:[%s14680_s14 + $0x190] sm:$0xff]  }
0x1856   :  { %v3551_v19 = vadd.f32 %v3550_v11, %v3206_v56  ;;  %v3594_v16 = vadd.f32 %v3593_v53, %v3214_v39  ;;  %v3552_v59 = vpop.f32.mrb[41].mxu1  ;;  %v3595_v23 = vpop.f32.mrb[45].mxu0 }
0x1857   :  { %v3553_v24 = vadd.f32 %v3552_v59, %v3210_v9  ;;  %v3596_v35 = vadd.f32 %v3595_v23, %v3218_v58  ;;  %v3554_v63 = vpop.f32.mrb[42].mxu1  ;;  %v3597_v3 = vpop.f32.mrb[46].mxu0  ;;  %4885 = vmatprep.mubr.bf16.mxu1 %v3807_v12  ;;  %4926 = vmatprep.mubr.bf16.mxu0 %v3809_v15  ;;  %v12101_v12 = vld [vmem:[%s14680_s14 + $0x1d8] sm:$0xff]  }
0x1858   :  { %v3555_v25 = vadd.f32 %v3554_v63, %v3206_v56  ;;  %v3598_v26 = vadd.f32 %v3597_v3, %v3214_v39  ;;  %v3556_v27 = vpop.f32.mrb[43].mxu1  ;;  %v3599_v30 = vpop.f32.mrb[47].mxu0  ;;  %4886 = vmatmul.mubr.bf16.vlgmr.msra.gmra.mrb[52].mxu1 %v3806_v8  ;;  %4927 = vmatmul.mubr.bf16.vlgmr.msra.gmra.mrb[56].mxu0 %v3808_v10  ;;  %v3778_v45 = vmax.f32 %v3551_v19, 0.0  ;;  %v3780_v47 = vmax.f32 %v3594_v16, 0.0  ;;  %v12100_v10 = vld [vmem:[%s14680_s14 + $0x158] sm:$0xff]  }
0x1859   :  { %v3557_v40 = vadd.f32 %v3556_v27, %v3210_v9  ;;  %v3600_v41 = vadd.f32 %v3599_v30, %v3218_v58  ;;  %11181 = vmatpush3.bf16.msra.mxu1 %v12090_v55  ;;  %11203 = vmatpush3.bf16.msra.mxu0 %v12091_v17  ;;  %v3779_v54 = vmax.f32 %v3553_v24, 0.0  ;;  %v3781_v56 = vmax.f32 %v3596_v35, 0.0  ;;  %v12102_v63 = vld [vmem:[%s14680_s14 + $0x118] sm:$0xff]   ;;  %v12104_v30 = vld [vmem:[%s14680_s14 + $0x160] sm:$0xff]  }
0x185a   :  { %v3794_v48 = vmax.f32 %v3555_v25, 0.0  ;;  %v3796_v49 = vmax.f32 %v3598_v26, 0.0  ;;  %11182 = vmatprep.subr.bf16.mxu1 %v12092_v18  ;;  %11204 = vmatprep.subr.bf16.mxu0 %v12093_v31  ;;  %v3238_v17 = vrot.slane %v13314_v7, %v13296_v28  ;;  %v3246_v18 = vrot.slane %v13314_v7, %v13299_v29 }
0x185b   :  { %v3795_v39 = vmax.f32 %v3557_v40, 0.0  ;;  %v3797_v36 = vmax.f32 %v3600_v41, 0.0  ;;  %v3242_v31 = vrot.slane %v13314_v7, %v13302_v34  ;;  %v3250_v3 = vrot.slane %v13314_v7, %v13305_v37 }
0x185c   :  { %v13348_v57 = vpack.c.bf16 %v3794_v48, %v3778_v45  ;;  %v13350_v9 = vpack.c.bf16 %v3796_v49, %v3780_v47 }
0x185d   :  { %v3811_v58 = vpack.c.bf16 %v3795_v39, %v3779_v54  ;;  %v3813_v60 = vpack.c.bf16 %v3797_v36, %v3781_v56  ;;  %11183 = vmatpush3.bf16.msra.mxu1 %v12094_v42  ;;  %11205 = vmatpush3.bf16.msra.mxu0 %v12095_v43  ;;  %v3636_v61 = vpop.f32.mrb[44].mxu1  ;;  %v3679_v0 = vpop.f32.mrb[48].mxu0 }
0x185e   :  { %v3637_v5 = vadd.f32 %v3636_v61, %v3222_v33  ;;  %v3680_v6 = vadd.f32 %v3679_v0, %v3230_v22  ;;  %v3638_v62 = vpop.f32.mrb[45].mxu1  ;;  %v3681_v8 = vpop.f32.mrb[49].mxu0  ;;  %11184 = vmatprep.subr.bf16.mxu1 %v12096_v50  ;;  %11206 = vmatprep.subr.bf16.mxu0 %v12097_v52  ;;  %v12106_v50 = vld [vmem:[%s14680_s14 + $0x120] sm:$0xff]  }
0x185f   :  { %v3639_v15 = vadd.f32 %v3638_v62, %v3226_v32  ;;  %v3682_v11 = vadd.f32 %v3681_v8, %v3234_v44  ;;  %v3640_v53 = vpop.f32.mrb[46].mxu1  ;;  %v3683_v55 = vpop.f32.mrb[50].mxu0  ;;  %4967 = vmatprep.mubr.bf16.mxu1 %v3811_v58  ;;  %5008 = vmatprep.mubr.bf16.mxu0 %v3813_v60  ;;  %v12107_v52 = vld [vmem:[%s14680_s14 + $0x1a0] sm:$0xff]   ;;  %v12108_v58 = vld [vmem:[%s14680_s14 + $0x168] sm:$0xff]  }
0x1860   :  { %v3641_v19 = vadd.f32 %v3640_v53, %v3222_v33  ;;  %v3684_v16 = vadd.f32 %v3683_v55, %v3230_v22  ;;  %v3642_v59 = vpop.f32.mrb[47].mxu1  ;;  %v3685_v23 = vpop.f32.mrb[51].mxu0  ;;  %v12103_v33 = vld [vmem:[%s14680_s14 + $0x198] sm:$0xff]   ;;  %v3782_v22 = vmax.f32 %v3637_v5, 0.0  ;;  %v3784_v25 = vmax.f32 %v3680_v6, 0.0  ;;  %v12109_v60 = vld [vmem:[%s14680_s14 + $0x1e8] sm:$0xff]  }
0x1861   :  { %v3643_v24 = vadd.f32 %v3642_v59, %v3226_v32  ;;  %v3686_v35 = vadd.f32 %v3685_v23, %v3234_v44  ;;  %11185 = vmatpush3.bf16.msra.mxu1 %v12098_v2  ;;  %11207 = vmatpush3.bf16.msra.mxu0 %v12099_v4  ;;  %v12105_v32 = vld [vmem:[%s14680_s14 + $0x1e0] sm:$0xff]   ;;  %v3783_v40 = vmax.f32 %v3639_v15, 0.0  ;;  %v3785_v41 = vmax.f32 %v3682_v11, 0.0  ;;  %v12110_v15 = vld [vmem:[%s14680_s14 + $0x128] sm:$0xff]   ;;  %v12113_v59 = vld [vmem:[%s14680_s14 + $0x1f0] sm:$0xff]  }
0x1862   :  { %v3798_v26 = vmax.f32 %v3641_v19, 0.0  ;;  %v3800_v27 = vmax.f32 %v3684_v16, 0.0  ;;  %11186 = vmatprep.subr.bf16.mxu1 %v12100_v10  ;;  %11208 = vmatprep.subr.bf16.mxu0 %v12101_v12  ;;  %v12111_v11 = vld [vmem:[%s14680_s14 + $0x1a8] sm:$0xff]  }
0x1863   :  { %v3799_v42 = vmax.f32 %v3643_v24, 0.0  ;;  %v3801_v43 = vmax.f32 %v3686_v35, 0.0 }
0x1864   :  { %v13384_v44 = vpack.c.bf16 %v3798_v26, %v3782_v22  ;;  %v13386_v7 = vpack.c.bf16 %v3800_v27, %v3784_v25  ;;  %v12114_v22 = vld [vmem:[%s14680_s14 + $0x130] sm:$0xff]   ;;  %v12116_v26 = vld [vmem:[%s14680_s14 + $0x178] sm:$0xff]  }
0x1865   :  { %v13388_v45 = vpack.c.bf16 %v3799_v42, %v3783_v40  ;;  %v13390_v47 = vpack.c.bf16 %v3801_v43, %v3785_v41  ;;  %11187 = vmatpush3.bf16.msra.mxu1 %v12102_v63  ;;  %11209 = vmatpush3.bf16.msra.mxu0 %v12103_v33  ;;  %v3722_v48 = vpop.f32.mrb[48].mxu1  ;;  %v3765_v49 = vpop.f32.mrb[52].mxu0  ;;  %v12115_v25 = vld [vmem:[%s14680_s14 + $0x1b0] sm:$0xff]   ;;  %v12117_v27 = vld [vmem:[%s14680_s14 + $0x1f8] sm:$0xff]   ;;  %v12120_v40 = vld [vmem:[%s14680_s14 + $0x240] sm:$0xff]  }
0x1866   :  { %v3723_v54 = vadd.f32 %v3722_v48, %v3238_v17  ;;  %v3766_v56 = vadd.f32 %v3765_v49, %v3246_v18  ;;  %v3724_v39 = vpop.f32.mrb[49].mxu1  ;;  %v3767_v36 = vpop.f32.mrb[53].mxu0  ;;  %11188 = vmatprep.subr.bf16.mxu1 %v12104_v30  ;;  %11210 = vmatprep.subr.bf16.mxu0 %v12105_v32  ;;  %v12118_v30 = vld [vmem:[%s14680_s14 + $0x138] sm:$0xff]   ;;  %v12121_v41 = vld [vmem:[%s14680_s14 + $0x2c0] sm:$0xff]   ;;  %v12124_v48 = vld [vmem:[%s14680_s14 + $0x248] sm:$0xff]  }
0x1867   :  { %v3725_v61 = vadd.f32 %v3724_v39, %v3242_v31  ;;  %v3768_v0 = vadd.f32 %v3767_v36, %v3250_v3  ;;  %v3726_v2 = vpop.f32.mrb[50].mxu1  ;;  %v3769_v4 = vpop.f32.mrb[54].mxu0  ;;  %v12119_v32 = vld [vmem:[%s14680_s14 + $0x1b8] sm:$0xff]   ;;  %v12122_v42 = vld [vmem:[%s14680_s14 + $0x200] sm:$0xff]   ;;  %v12125_v49 = vld [vmem:[%s14680_s14 + $0x2c8] sm:$0xff]  }
0x1868   :  { %v3727_v5 = vadd.f32 %v3726_v2, %v3238_v17  ;;  %v3770_v6 = vadd.f32 %v3769_v4, %v3246_v18  ;;  %v3728_v62 = vpop.f32.mrb[51].mxu1  ;;  %v3771_v8 = vpop.f32.mrb[55].mxu0  ;;  %v3786_v53 = vmax.f32 %v3723_v54, 0.0  ;;  %v3788_v55 = vmax.f32 %v3766_v56, 0.0  ;;  %v12112_v17 = vld [vmem:[%s14680_s14 + $0x170] sm:$0xff]   ;;  %v12123_v43 = vld [vmem:[%s14680_s14 + $0x280] sm:$0xff]  }
0x1869   :  { %v3729_v10 = vadd.f32 %v3728_v62, %v3242_v31  ;;  %v3772_v12 = vadd.f32 %v3771_v8, %v3250_v3  ;;  %11189 = vmatpush3.bf16.msra.mxu1 %v12106_v50  ;;  %11211 = vmatpush3.bf16.msra.mxu0 %v12107_v52  ;;  %v3787_v23 = vmax.f32 %v3725_v61, 0.0  ;;  %v3789_v18 = vmax.f32 %v3768_v0, 0.0  ;;  %v12126_v50 = vld [vmem:[%s14680_s14 + $0x208] sm:$0xff]   ;;  %v12132_v54 = vld [vmem:[%s14680_s14 + $0x258] sm:$0xff]   ;;  %v12138_v61 = vld [vmem:[%s14680_s14 + $0x220] sm:$0xff]  }
0x186a   :  { %v3802_v19 = vmax.f32 %v3727_v5, 0.0  ;;  %v3804_v16 = vmax.f32 %v3770_v6, 0.0  ;;  %11190 = vmatprep.subr.bf16.mxu1 %v12108_v58  ;;  %11212 = vmatprep.subr.bf16.mxu0 %v12109_v60  ;;  %v12127_v52 = vld [vmem:[%s14680_s14 + $0x288] sm:$0xff]   ;;  %v12133_v56 = vld [vmem:[%s14680_s14 + $0x2d8] sm:$0xff]   ;;  %v12136_v58 = vld [vmem:[%s14680_s14 + $0x260] sm:$0xff]  }
0x186b   :  { %v3803_v31 = vmax.f32 %v3729_v10, 0.0  ;;  %v3805_v24 = vmax.f32 %v3772_v12, 0.0  ;;  %v12134_v39 = vld [vmem:[%s14680_s14 + $0x218] sm:$0xff]   ;;  %v12137_v60 = vld [vmem:[%s14680_s14 + $0x2e0] sm:$0xff]   ;;  %v12140_v2 = vld [vmem:[%s14680_s14 + $0x268] sm:$0xff]  }
0x186c   :  { %v13416_v35 = vpack.c.bf16 %v3802_v19, %v3786_v53  ;;  %v13418_v63 = vpack.c.bf16 %v3804_v16, %v3788_v55  ;;  %v12135_v36 = vld [vmem:[%s14680_s14 + $0x298] sm:$0xff]   ;;  %v12139_v0 = vld [vmem:[%s14680_s14 + $0x2a0] sm:$0xff]   ;;  %v12141_v4 = vld [vmem:[%s14680_s14 + $0x2e8] sm:$0xff]  }
0x186d   :  { %v13420_v33 = vpack.c.bf16 %v3803_v31, %v3787_v23  ;;  %v13422_v3 = vpack.c.bf16 %v3805_v24, %v3789_v18  ;;  %11191 = vmatpush3.bf16.msra.mxu1 %v12110_v15  ;;  %11213 = vmatpush3.bf16.msra.mxu0 %v12111_v11  ;;  %v12142_v5 = vld [vmem:[%s14680_s14 + $0x228] sm:$0xff]   ;;  %v12144_v62 = vld [vmem:[%s14680_s14 + $0x270] sm:$0xff]   ;;  %v12148_v15 = vld [vmem:[%s14680_s14 + $0x278] sm:$0xff]  }
0x186e   :  { %11192 = vmatprep.subr.bf16.mxu1 %v12112_v17  ;;  %11214 = vmatprep.subr.bf16.mxu0 %v12113_v59  ;;  %v12143_v6 = vld [vmem:[%s14680_s14 + $0x2a8] sm:$0xff]   ;;  %v12145_v8 = vld [vmem:[%s14680_s14 + $0x2f0] sm:$0xff]   ;;  %v12149_v11 = vld [vmem:[%s14680_s14 + $0x2f8] sm:$0xff]  }
0x186f   :  { %v12146_v10 = vld [vmem:[%s14680_s14 + $0x230] sm:$0xff]   ;;  %v12150_v53 = vld [vmem:[%s14680_s14 + $0x238] sm:$0xff]   ;;  %v12152_v19 = vld [vmem:[%s14680_s14 + $0x340] sm:$0xff]  }
0x1870   :  { %v12147_v12 = vld [vmem:[%s14680_s14 + $0x2b0] sm:$0xff]   ;;  %v12151_v55 = vld [vmem:[%s14680_s14 + $0x2b8] sm:$0xff]   ;;  %v12153_v16 = vld [vmem:[%s14680_s14 + $0x3c0] sm:$0xff]  }
0x1871   :  { %11193 = vmatpush3.bf16.msra.mxu1 %v12114_v22  ;;  %11215 = vmatpush3.bf16.msra.mxu0 %v12115_v25  ;;  %v12154_v17 = vld [vmem:[%s14680_s14 + $0x300] sm:$0xff]   ;;  %v12156_v23 = vld [vmem:[%s14680_s14 + $0x348] sm:$0xff]   ;;  %v12163_v22 = vld [vmem:[%s14680_s14 + $0x390] sm:$0xff]  }
0x1872   :  { %11194 = vmatprep.subr.bf16.mxu1 %v12116_v26  ;;  %11216 = vmatprep.subr.bf16.mxu0 %v12117_v27  ;;  %v12155_v59 = vld [vmem:[%s14680_s14 + $0x380] sm:$0xff]   ;;  %v12157_v18 = vld [vmem:[%s14680_s14 + $0x3c8] sm:$0xff]   ;;  %v12165_v25 = vld [vmem:[%s14680_s14 + $0x3d8] sm:$0xff]  }
0x1873   :  { %v12158_v31 = vld [vmem:[%s14680_s14 + $0x308] sm:$0xff]   ;;  %v12166_v26 = vld [vmem:[%s14680_s14 + $0x318] sm:$0xff]  }
0x1874   :  { %v12159_v24 = vld [vmem:[%s14680_s14 + $0x388] sm:$0xff]   ;;  %v12167_v27 = vld [vmem:[%s14680_s14 + $0x398] sm:$0xff]  }
0x1875   :  { %11195 = vmatpush3.bf16.msra.mxu1 %v12118_v30  ;;  %11217 = vmatpush3.bf16.msra.mxu0 %v12119_v32  ;;  %v12168_v30 = vld [vmem:[%s14680_s14 + $0x360] sm:$0xff]  }
0x1876   :  { %11224 = vmatprep.subr.bf16.mxu1 %v12120_v40  ;;  %11246 = vmatprep.subr.bf16.mxu0 %v12121_v41  ;;  %v12169_v32 = vld [vmem:[%s14680_s14 + $0x3e0] sm:$0xff]  }
0x1877   :  { %v12170_v40 = vld [vmem:[%s14680_s14 + $0x320] sm:$0xff]  }
0x1878   :  { %4968 = vmatmul.mubr.bf16.vlgmr.msra.gmra.mrb[56].mxu1 %v13348_v57  ;;  %5009 = vmatmul.mubr.bf16.vlgmr.msra.gmra.mrb[60].mxu0 %v13350_v9  ;;  %v12128_v57 = vld [vmem:[%s14680_s14 + $0x250] sm:$0xff]   ;;  %v12171_v41 = vld [vmem:[%s14680_s14 + $0x3a0] sm:$0xff]  }
0x1879   :  { %11225 = vmatpush3.bf16.msra.mxu1 %v12122_v42  ;;  %5049 = vmatprep.mubr.bf16.mxu1 %v13388_v45  ;;  %v12129_v9 = vld [vmem:[%s14680_s14 + $0x2d0] sm:$0xff]   ;;  %v12172_v42 = vld [vmem:[%s14680_s14 + $0x368] sm:$0xff]  }
0x187a   :  { %11247 = vmatpush3.bf16.msra.mxu0 %v12123_v43  ;;  %5090 = vmatprep.mubr.bf16.mxu0 %v13390_v47  ;;  %v12130_v45 = vld [vmem:[%s14680_s14 + $0x210] sm:$0xff]   ;;  %v12173_v43 = vld [vmem:[%s14680_s14 + $0x3e8] sm:$0xff]  }
0x187b   :  { %11226 = vmatprep.subr.bf16.mxu1 %v12124_v48  ;;  %11248 = vmatprep.subr.bf16.mxu0 %v12125_v49  ;;  %v12131_v47 = vld [vmem:[%s14680_s14 + $0x290] sm:$0xff]   ;;  %v12174_v48 = vld [vmem:[%s14680_s14 + $0x328] sm:$0xff]  }
0x187c   :  { %v12175_v49 = vld [vmem:[%s14680_s14 + $0x3a8] sm:$0xff]  }
0x187d   :  { %11227 = vmatpush3.bf16.msra.mxu1 %v12126_v50  ;;  %v12176_v50 = vld [vmem:[%s14680_s14 + $0x370] sm:$0xff]  }
0x187e   :  { %11249 = vmatpush3.bf16.msra.mxu0 %v12127_v52  ;;  %11228 = vmatprep.subr.bf16.mxu1 %v12128_v57  ;;  %v12177_v52 = vld [vmem:[%s14680_s14 + $0x3f0] sm:$0xff]  }
0x187f   :  { %11250 = vmatprep.subr.bf16.mxu0 %v12129_v9  ;;  %v12178_v57 = vld [vmem:[%s14680_s14 + $0x330] sm:$0xff]  }
0x1880   :  { %v12179_v9 = vld [vmem:[%s14680_s14 + $0x3b0] sm:$0xff]  }
0x1881   :  { %11229 = vmatpush3.bf16.msra.mxu1 %v12130_v45  ;;  %v12180_v45 = vld [vmem:[%s14680_s14 + $0x378] sm:$0xff]  }
0x1882   :  { %11251 = vmatpush3.bf16.msra.mxu0 %v12131_v47  ;;  %11230 = vmatprep.subr.bf16.mxu1 %v12132_v54  ;;  %v12181_v47 = vld [vmem:[%s14680_s14 + $0x3f8] sm:$0xff]  }
0x1883   :  { %11252 = vmatprep.subr.bf16.mxu0 %v12133_v56  ;;  %v12182_v54 = vld [vmem:[%s14680_s14 + $0x338] sm:$0xff]  }
0x1884   :  { %v12183_v56 = vld [vmem:[%s14680_s14 + $0x3b8] sm:$0xff]  }
0x1885   :  { %11231 = vmatpush3.bf16.msra.mxu1 %v12134_v39 }
0x1886   :  { %11253 = vmatpush3.bf16.msra.mxu0 %v12135_v36  ;;  %11232 = vmatprep.subr.bf16.mxu1 %v12136_v58  ;;  %v10396_v58 = vld [vmem:[%s14681_s15] ss:$0 sm:$0xff] }
0x1887   :  { %11254 = vmatprep.subr.bf16.mxu0 %v12137_v60 }
0x1889   :  { %11233 = vmatpush3.bf16.msra.mxu1 %v12138_v61 }
0x188a   :  { %11255 = vmatpush3.bf16.msra.mxu0 %v12139_v0  ;;  %11234 = vmatprep.subr.bf16.mxu1 %v12140_v2 }
0x188b   :  { %11256 = vmatprep.subr.bf16.mxu0 %v12141_v4 }
0x188d   :  { %11235 = vmatpush3.bf16.msra.mxu1 %v12142_v5 }
0x188e   :  { %11257 = vmatpush3.bf16.msra.mxu0 %v12143_v6  ;;  %11236 = vmatprep.subr.bf16.mxu1 %v12144_v62 }
0x188f   :  { %11258 = vmatprep.subr.bf16.mxu0 %v12145_v8 }
0x1891   :  { %11237 = vmatpush3.bf16.msra.mxu1 %v12146_v10 }
0x1892   :  { %11259 = vmatpush3.bf16.msra.mxu0 %v12147_v12  ;;  %11238 = vmatprep.subr.bf16.mxu1 %v12148_v15 }
0x1893   :  { %11260 = vmatprep.subr.bf16.mxu0 %v12149_v11 }
0x1895   :  { %11239 = vmatpush3.bf16.msra.mxu1 %v12150_v53 }
0x1896   :  { %11261 = vmatpush3.bf16.msra.mxu0 %v12151_v55  ;;  %11268 = vmatprep.subr.bf16.mxu1 %v12152_v19 }
0x1897   :  { %11290 = vmatprep.subr.bf16.mxu0 %v12153_v16 }
0x1898   :  { %5050 = vmatmul.mubr.bf16.vlgmr.msra.gmra.mrb[60].mxu1 %v13384_v44  ;;  %v12160_v44 = vld [vmem:[%s14680_s14 + $0x350] sm:$0xff]  }
0x1899   :  { %5091 = vmatmul.mubr.bf16.vlgmr.msra.gmra.mrb[64].mxu0 %v13386_v7  ;;  %11269 = vmatpush3.bf16.msra.mxu1 %v12154_v17  ;;  %v12161_v7 = vld [vmem:[%s14680_s14 + $0x3d0] sm:$0xff]  }
0x189a   :  { %5131 = vmatprep.mubr.bf16.mxu1 %v13420_v33  ;;  %11291 = vmatpush3.bf16.msra.mxu0 %v12155_v59  ;;  %v12162_v33 = vld [vmem:[%s14680_s14 + $0x310] sm:$0xff]  }
0x189b   :  { %5172 = vmatprep.mubr.bf16.mxu0 %v13422_v3  ;;  %11270 = vmatprep.subr.bf16.mxu1 %v12156_v23  ;;  %v12164_v3 = vld [vmem:[%s14680_s14 + $0x358] sm:$0xff]  }
0x189c   :  { %11292 = vmatprep.subr.bf16.mxu0 %v12157_v18 }
0x189d   :  { %11271 = vmatpush3.bf16.msra.mxu1 %v12158_v31 }
0x189e   :  { %11293 = vmatpush3.bf16.msra.mxu0 %v12159_v24  ;;  %11272 = vmatprep.subr.bf16.mxu1 %v12160_v44 }
0x189f   :  { %11294 = vmatprep.subr.bf16.mxu0 %v12161_v7 }
0x18a1   :  { %11273 = vmatpush3.bf16.msra.mxu1 %v12162_v33 }
0x18a2   :  { %11295 = vmatpush3.bf16.msra.mxu0 %v12163_v22  ;;  %11274 = vmatprep.subr.bf16.mxu1 %v12164_v3 }
0x18a3   :  { %11296 = vmatprep.subr.bf16.mxu0 %v12165_v25 }
0x18a5   :  { %11275 = vmatpush3.bf16.msra.mxu1 %v12166_v26 }
0x18a6   :  { %11297 = vmatpush3.bf16.msra.mxu0 %v12167_v27  ;;  %11276 = vmatprep.subr.bf16.mxu1 %v12168_v30 }
0x18a7   :  { %11298 = vmatprep.subr.bf16.mxu0 %v12169_v32 }
0x18a9   :  { %11277 = vmatpush3.bf16.msra.mxu1 %v12170_v40 }
0x18aa   :  { %11299 = vmatpush3.bf16.msra.mxu0 %v12171_v41  ;;  %11278 = vmatprep.subr.bf16.mxu1 %v12172_v42 }
0x18ab   :  { %11300 = vmatprep.subr.bf16.mxu0 %v12173_v43 }
0x18ad   :  { %11279 = vmatpush3.bf16.msra.mxu1 %v12174_v48 }
0x18ae   :  { %11301 = vmatpush3.bf16.msra.mxu0 %v12175_v49  ;;  %11280 = vmatprep.subr.bf16.mxu1 %v12176_v50 }
0x18af   :  { %11302 = vmatprep.subr.bf16.mxu0 %v12177_v52 }
0x18b1   :  { %11281 = vmatpush3.bf16.msra.mxu1 %v12178_v57 }
0x18b2   :  { %11303 = vmatpush3.bf16.msra.mxu0 %v12179_v9  ;;  %11282 = vmatprep.subr.bf16.mxu1 %v12180_v45 }
0x18b3   :  { %11304 = vmatprep.subr.bf16.mxu0 %v12181_v47 }
0x18b5   :  { %11283 = vmatpush3.bf16.msra.mxu1 %v12182_v54 }
0x18b6   :  { %11305 = vmatpush3.bf16.msra.mxu0 %v12183_v56  ;;  %11747 = vmatprep.subr.bf16.mxu1 %v12485_v38 }
0x18b7   :  { %11755 = vmatprep.subr.mxu0 %v12485_v38 }
0x18b8   :  { %5132 = vmatmul.mubr.bf16.vlgmr.msra.gmra.mrb[64].mxu1 %v13416_v35 }
0x18b9   :  { %5173 = vmatmul.mubr.bf16.vlgmr.msra.gmra.mrb[68].mxu0 %v13418_v63  ;;  %11751 = vmatprep.mubr.msk.bf16.mxu1 %vm12486_vm2, %v12485_v38 }
0x18ba   :  { %11757 = vmatprep.mubr.msk.f32.mxu0 %vm12486_vm2, %v12485_v38 }
0x192b   :  { %v11152_v39 = vpop.f32.mrb[52].mxu1  ;;  %v11174_v36 = vpop.f32.mrb[56].mxu0 }
0x192c   :  { %v11153_v60 = vpop.f32.mrb[53].mxu1  ;;  %v11175_v61 = vpop.f32.mrb[57].mxu0 }
0x192d   :  { %v11154_v0 = vadd.f32 %v11153_v60, %v11152_v39  ;;  %v11176_v2 = vadd.f32 %v11175_v61, %v11174_v36  ;;  %v11155_v4 = vpop.f32.mrb[54].mxu1  ;;  %v11177_v35 = vpop.f32.mrb[58].mxu0 }
0x192e   :  { %v11156_v5 = vpop.f32.mrb[55].mxu1  ;;  %v11178_v63 = vpop.f32.mrb[59].mxu0 }
0x192f   :  { %v4888_v6 = vadd.f32 %v11154_v0, %v10396_v58  ;;  %v11157_v62 = vadd.f32 %v11156_v5, %v11155_v4  ;;  %v11179_v8 = vadd.f32 %v11178_v63, %v11177_v35 }
0x1931   :  { %v4929_v10 = vadd.f32 %v11176_v2, %v4888_v6  ;;  %v4891_v12 = vadd.f32 %v11157_v62, %v10396_v58 }
0x1933   :  { %v4932_v15 = vadd.f32 %v11179_v8, %v4891_v12 }
0x194b   :  { %v11196_v11 = vpop.f32.mrb[56].mxu1  ;;  %v11218_v53 = vpop.f32.mrb[60].mxu0 }
0x194c   :  { %v11197_v55 = vpop.f32.mrb[57].mxu1  ;;  %v11219_v19 = vpop.f32.mrb[61].mxu0 }
0x194d   :  { %v11198_v16 = vadd.f32 %v11197_v55, %v11196_v11  ;;  %v11220_v17 = vadd.f32 %v11219_v19, %v11218_v53  ;;  %v11199_v59 = vpop.f32.mrb[58].mxu1  ;;  %v11221_v23 = vpop.f32.mrb[62].mxu0 }
0x194e   :  { %v11200_v18 = vpop.f32.mrb[59].mxu1  ;;  %v11222_v31 = vpop.f32.mrb[63].mxu0 }
0x194f   :  { %v4970_v24 = vadd.f32 %v11198_v16, %v4929_v10  ;;  %v11201_v44 = vadd.f32 %v11200_v18, %v11199_v59  ;;  %v11223_v7 = vadd.f32 %v11222_v31, %v11221_v23  ;;  %v12184_v18 = vld [vmem:[%s14672_s6 + $0x10] sm:$0xff]   ;;  %v12185_v31 = vld [vmem:[%s14672_s6 + $0x18] sm:$0xff]   ;;  %s14751_s6 = smov 36  }
0x1950   :  { %11748 = vmatpush3.bf16.msra.mxu1 %v12184_v18 }
0x1951   :  { %v5011_v33 = vadd.f32 %v11220_v17, %v4970_v24  ;;  %v4973_v22 = vadd.f32 %v11201_v44, %v4932_v15  ;;  %11749 = vmatprep.subr.bf16.mxu1 %v12485_v38 }
0x1953   :  { %v5014_v3 = vadd.f32 %v11223_v7, %v4973_v22 }
0x1954   :  { %11750 = vmatpush3.bf16.msra.mxu1 %v12185_v31 }
0x1955   :  { %11760 = vmatprep.subr.mxu1 %v12485_v38 }
0x196b   :  { %v11240_v25 = vpop.f32.mrb[60].mxu1 }
0x196c   :  { %v11262_v26 = vpop.f32.mrb[64].mxu0  ;;  %v11241_v27 = vpop.f32.mrb[61].mxu1 }
0x196d   :  { %v11242_v30 = vadd.f32 %v11241_v27, %v11240_v25  ;;  %v11263_v32 = vpop.f32.mrb[65].mxu0  ;;  %v11243_v40 = vpop.f32.mrb[62].mxu1 }
0x196e   :  { %v11264_v41 = vadd.f32 %v11263_v32, %v11262_v26  ;;  %v11265_v42 = vpop.f32.mrb[66].mxu0  ;;  %v11244_v43 = vpop.f32.mrb[63].mxu1  ;;  %v10527_v26 = vld [vmem:[%s14670_s4 + $0x1] ss:$0 sm:$0xff]  ;;  %s14735_s4 = smov 120  }
0x196f   :  { %v5052_v48 = vadd.f32 %v11242_v30, %v5011_v33  ;;  %v11245_v49 = vadd.f32 %v11244_v43, %v11243_v40  ;;  %v11266_v50 = vpop.f32.mrb[67].mxu0 }
0x1970   :  { %v11267_v52 = vadd.f32 %v11266_v50, %v11265_v42  ;;  %v10534_v50 = vld [vmem:[%s14673_s7 + $0x1] ss:$0 sm:$0xff]  ;;  %s14737_s7 = smov 84  }
0x1971   :  { %v5093_v57 = vadd.f32 %v11264_v41, %v5052_v48  ;;  %v5055_v9 = vadd.f32 %v11245_v49, %v5014_v3  ;;  %v10528_v41 = vld [vmem:[%s14671_s5 + $0x1] ss:$0 sm:$0xff]  ;;  %s14736_s5 = smov 56  }
0x1973   :  { %v5096_v45 = vadd.f32 %v11267_v52, %v5055_v9 }
0x198b   :  { %v11284_v47 = vpop.f32.mrb[64].mxu1 }
0x198c   :  { %v11306_v54 = vpop.f32.mrb[68].mxu0  ;;  %v11285_v56 = vpop.f32.mrb[65].mxu1 }
0x198d   :  { %v11286_v39 = vadd.f32 %v11285_v56, %v11284_v47  ;;  %v11307_v36 = vpop.f32.mrb[69].mxu0  ;;  %v11287_v58 = vpop.f32.mrb[66].mxu1 }
0x198e   :  { %v11308_v60 = vadd.f32 %v11307_v36, %v11306_v54  ;;  %v11309_v61 = vpop.f32.mrb[70].mxu0  ;;  %v11288_v0 = vpop.f32.mrb[67].mxu1 }
0x198f   :  { %v5134_v2 = vadd.f32 %v11286_v39, %v5093_v57  ;;  %v11289_v4 = vadd.f32 %v11288_v0, %v11287_v58  ;;  %v11310_v35 = vpop.f32.mrb[71].mxu0 }
0x1990   :  { %v11311_v5 = vadd.f32 %v11310_v35, %v11309_v61 }
0x1991   :  { %v5175_v63 = vadd.f32 %v11308_v60, %v5134_v2  ;;  %v5137_v6 = vadd.f32 %v11289_v4, %v5096_v45 }
0x1993   :  { %v13654_v62 = vadd.f32 %v5175_v63, %v13036_v51  ;;  %v5178_v8 = vadd.f32 %v11311_v5, %v5137_v6 }
0x1995   :  { %v13657_v10 = vadd.f32 %v5178_v8, %v13039_v14  ;;  %v5187_v12 = vsel %vm192_vm1, %v13654_v62, 0.0 }
0x1996   :  { %5188 = vadd.xlane.f32.xlu1 %v5187_v12 }
0x1997   :  { %v5190_v15 = vsel %vm192_vm1, %v13657_v10, 0.0 }
0x1998   :  { %5191 = vadd.xlane.f32.xlu0 %v5190_v15 }
0x1a23   :  { %v5189_v11 = vpop.xlane.xlu1 %5188 }
0x1a24   :  { %v5193_v53 = vmul.f32 0.03125, %v5189_v11 }
0x1a25   :  { %v5192_v55 = vpop.xlane.xlu0 %5191 }
0x1a26   :  { %v5195_v19 = vsub.f32 %v13654_v62, %v5193_v53  ;;  %v5194_v16 = vmul.f32 0.03125, %v5192_v55 }
0x1a28   :  { %v5196_v51 = vsub.f32 %v13657_v10, %v5194_v16  ;;  %v5197_v17 = vmul.f32 %v5195_v19, %v5195_v19 }
0x1a2a   :  { %v5199_v14 = vsel %vm192_vm1, %v5197_v17, 0.0  ;;  %v5198_v59 = vmul.f32 %v5196_v51, %v5196_v51 }
0x1a2b   :  { %5200 = vadd.xlane.f32.xlu1 %v5199_v14 }
0x1a2c   :  { %v5202_v23 = vsel %vm192_vm1, %v5198_v59, 0.0 }
0x1a2d   :  { %5203 = vadd.xlane.f32.xlu0 %v5202_v23 }
0x1ab8   :  { %v5201_v24 = vpop.xlane.xlu1 %5200 }
0x1ab9   :  { %v5205_v44 = vmul.f32 0.03125, %v5201_v24 }
0x1aba   :  { %v5204_v7 = vpop.xlane.xlu0 %5203 }
0x1abb   :  { %v5207_v33 = vadd.f32 1e-05, %v5205_v44  ;;  %v5206_v22 = vmul.f32 0.03125, %v5204_v7 }
0x1abd   :  { %12388 = vrsqrt.f32 %v5207_v33  ;;  %v5208_v3 = vadd.f32 1e-05, %v5206_v22 }
0x1abf   :  { %12390 = vrsqrt.f32 %v5208_v3 }
0x1ac7   :  { %v12389_v25 = vpop.eup %12388 }
0x1ac8   :  { %v5211_v27 = vmul.f32 %v12389_v25, %v5195_v19 }
0x1ac9   :  { %v12391_v30 = vpop.eup %12390 }
0x1aca   :  { %v5219_v32 = vmul.f32 %v10527_v26, %v5211_v27  ;;  %v5212_v40 = vmul.f32 %v12391_v30, %v5196_v51 }
0x1acc   :  { %v5220_v42 = vmul.f32 %v10527_v26, %v5212_v40  ;;  %v5227_v43 = vadd.f32 %v10528_v41, %v5219_v32 }
0x1ace   :  { %v5228_v48 = vadd.f32 %v10528_v41, %v5220_v42 }
0x1ad0   :  { %v5229_v49 = vpack.c.bf16 %v5228_v48, %v5227_v43 }
0x1ad2   :  { %11752 = vmatmul.mubr.msk.bf16.vlgmr.msra.gmra.mrb[68].mxu1 %vm192_vm1, %v5229_v49 }
0x1ad3   :  { %11762 = vmatprep.mubr.msk.f32.mxu1 %vm12486_vm2, %v12485_v38 }
0x1ba5   :  { %v5292_v52 = vpop.f32.mrb[68].mxu1 }
0x1ba6   :  { %v13687_v57 = vadd.f32 %v10534_v50, %v5292_v52  ;;  %v11753_v9 = vpop.f32.mrb[69].mxu1 }
0x1ba7   :  { %v5295_v45 = vpop.f32.mrb[70].mxu1 }
0x1ba8   :  { %v13689_v47 = vadd.f32 %v10534_v50, %v5295_v45  ;;  %5300 = vrot.lane.b32.xlu1 %v13687_v57, %s12487_s22  ;;  %v11754_v54 = vpop.f32.mrb[71].mxu1 }
0x1baa   :  { %5377 = vrot.lane.b32.xlu0 %v13689_v47, %s12487_s22  ;;  %s14738_s22 = smov 116  }
0x1c1a   :  { %v5301_v56 = vpop.permute.xlu1 %5300 }
0x1c1b   :  { %11756 = vmatpush3.xpose.msk.msra.mxu0 %vm307_vm3, %v5301_v56 }
0x1c1c   :  { %v5378_v39 = vpop.permute.xlu0 %5377  ;;  %11765 = vmatprep.subr.mxu0 %v12485_v38 }
0x1c1d   :  { %11761 = vmatpush3.xpose.msk.msra.mxu1 %vm307_vm3, %v5378_v39 }
0x1c1e   :  { %11758 = vmatmul.mubr.msk.f32.vlgmr.msra.gmra.mrb[72].mxu0 %vm307_vm3, %v13687_v57  ;;  %11770 = vmatprep.subr.mxu1 %v12485_v38 }
0x1c1f   :  { %11767 = vmatprep.mubr.msk.f32.mxu0 %vm12486_vm2, %v12485_v38 }
0x1c20   :  { %11763 = vmatmul.mubr.msk.f32.vlgmr.msra.gmra.mrb[34].mxu1 %vm307_vm3, %v13689_v47 }
0x1c21   :  { %11772 = vmatprep.mubr.msk.f32.mxu1 %vm12486_vm2, %v12485_v38 }
0x1cf1   :  { %v5372_v36 = vpop.f32.mrb[72].mxu0 }
0x1cf2   :  { %v5453_v58 = vmul.f32 0.5, %v5372_v36  ;;  %v11759_v60 = vpop.f32.mrb[73].mxu0 }
0x1cf3   :  { %v5449_v61 = vpop.f32.mrb[34].mxu1 }
0x1cf4   :  { %v5454_v0 = vmul.f32 0.5, %v5449_v61  ;;  %v11764_v2 = vpop.f32.mrb[35].mxu1  ;;  %v5455_v4 = vsel %vm461_vm4, %v5453_v58, -inf }
0x1cf5   :  { %5456 = vmax.xlane.f32.xlu1 %v5455_v4 }
0x1cf6   :  { %v5458_v35 = vsel %vm461_vm4, %v5454_v0, -inf }
0x1cf7   :  { %5459 = vmax.xlane.f32.xlu0 %v5458_v35 }
0x1d06   :  { %5477 = vrot.lane.b32.xlu1 %v13687_v57, %s12488_s2 }
0x1d0a   :  { %5631 = vrot.lane.b32.xlu1 %v13687_v57, %s12489_s23 }
0x1d0d   :  { %5553 = vrot.lane.b32.xlu0 %v13689_v47, %s12488_s2  ;;  %s14739_s2 = smov 52  }
0x1d0e   :  { %5709 = vrot.lane.b32.xlu1 %v13689_v47, %s12489_s23  ;;  %s14740_s23 = smov 80  }
0x1d82   :  { %v5457_v5 = vpop.xlane.xlu1 %5456 }
0x1d83   :  { %v5461_v63 = vsub.f32 %v5453_v58, %v5457_v5 }
0x1d84   :  { %v5460_v6 = vpop.xlane.xlu0 %5459 }
0x1d85   :  { %v5463_v8 = vmul.f32 1.442695, %v5461_v63  ;;  %v5462_v12 = vsub.f32 %v5454_v0, %v5460_v6 }
0x1d86   :  { %v5478_v15 = vpop.permute.xlu1 %5477 }
0x1d87   :  { %12392 = vpow2.f32 %v5463_v8  ;;  %v5465_v11 = vmul.f32 1.442695, %v5462_v12  ;;  %11766 = vmatpush3.msra.mxu0 %v5478_v15 }
0x1d88   :  { %v5554_v53 = vpop.permute.xlu0 %5553  ;;  %11775 = vmatprep.subr.mxu0 %v12485_v38 }
0x1d89   :  { %12394 = vpow2.f32 %v5465_v11  ;;  %11771 = vmatpush3.msra.mxu1 %v5554_v53 }
0x1d8a   :  { %11780 = vmatprep.subr.mxu1 %v12485_v38  ;;  %v5632_v17 = vpop.permute.xlu1 %5631 }
0x1d8e   :  { %v5710_v14 = vpop.permute.xlu1 %5709 }
0x1d91   :  { %v12393_v55 = vpop.eup %12392 }
0x1d92   :  { %v5467_v19 = vsel %vm461_vm4, %v12393_v55, 0.0 }
0x1d93   :  { %v12395_v16 = vpop.eup %12394  ;;  %5468 = vadd.xlane.f32.xlu1 %v5467_v19 }
0x1d94   :  { %v5470_v51 = vsel %vm461_vm4, %v12395_v16, 0.0 }
0x1d95   :  { %5471 = vadd.xlane.f32.xlu0 %v5470_v51 }
0x1da4   :  { %5629 = vrot.lane.b32.xlu1 %v13687_v57, %s12490_s24 }
0x1dab   :  { %5707 = vrot.lane.b32.xlu0 %v13689_v47, %s12490_s24  ;;  %s14741_s24 = smov 112  }
0x1e20   :  { %v5469_v59 = vpop.xlane.xlu1 %5468 }
0x1e21   :  { %12396 = vrcp.f32 %v5469_v59 }
0x1e22   :  { %v5472_v23 = vpop.xlane.xlu0 %5471 }
0x1e23   :  { %12398 = vrcp.f32 %v5472_v23 }
0x1e24   :  { %v5630_v7 = vpop.permute.xlu1 %5629 }
0x1e26   :  { %v5708_v33 = vpop.permute.xlu0 %5707 }
0x1e2b   :  { %v12397_v18 = vpop.eup %12396 }
0x1e2c   :  { %v5474_v31 = vmul.f32 %v12397_v18, %v12393_v55 }
0x1e2d   :  { %v12399_v24 = vpop.eup %12398 }
0x1e2e   :  { %v5476_v44 = vmul.f32 %v12399_v24, %v12395_v16  ;;  %11768 = vmatmul.mubr.msk.f32.vlgmr.msra.gmra.mrb[74].mxu0 %vm461_vm4, %v5474_v31 }
0x1e2f   :  { %11776 = vmatpush3.xpose.msk.msra.mxu0 %vm307_vm3, %v5632_v17  ;;  %11777 = vmatprep.mubr.msk.f32.mxu0 %vm12486_vm2, %v12485_v38 }
0x1e30   :  { %11773 = vmatmul.mubr.msk.f32.vlgmr.msra.gmra.mrb[72].mxu1 %vm461_vm4, %v5476_v44  ;;  %11785 = vmatprep.subr.mxu0 %v12485_v38 }
0x1e31   :  { %11781 = vmatpush3.xpose.msk.msra.mxu1 %vm307_vm3, %v5710_v14  ;;  %11782 = vmatprep.mubr.msk.f32.mxu1 %vm12486_vm2, %v12485_v38 }
0x1e32   :  { %11778 = vmatmul.mubr.msk.f32.vlgmr.msra.gmra.mrb[76].mxu0 %vm307_vm3, %v5630_v7  ;;  %11790 = vmatprep.subr.mxu1 %v12485_v38 }
0x1e33   :  { %11787 = vmatprep.mubr.msk.f32.mxu0 %vm12486_vm2, %v12485_v38 }
0x1e34   :  { %11783 = vmatmul.mubr.msk.f32.vlgmr.msra.gmra.mrb[74].mxu1 %vm307_vm3, %v5708_v33 }
0x1e35   :  { %11792 = vmatprep.mubr.msk.f32.mxu1 %vm12486_vm2, %v12485_v38 }
0x1f01   :  { %v13741_v22 = vpop.f32.mrb[74].mxu0 }
0x1f02   :  { %v11769_v3 = vpop.f32.mrb[75].mxu0 }
0x1f03   :  { %v13743_v25 = vpop.f32.mrb[72].mxu1 }
0x1f04   :  { %v11774_v26 = vpop.f32.mrb[73].mxu1 }
0x1f05   :  { %v5703_v27 = vpop.f32.mrb[76].mxu0 }
0x1f06   :  { %v5785_v30 = vmul.f32 0.5, %v5703_v27  ;;  %v11779_v32 = vpop.f32.mrb[77].mxu0 }
0x1f07   :  { %v5781_v40 = vpop.f32.mrb[74].mxu1 }
0x1f08   :  { %v5786_v41 = vmul.f32 0.5, %v5781_v40  ;;  %v11784_v42 = vpop.f32.mrb[75].mxu1  ;;  %v5787_v43 = vsel %vm461_vm4, %v5785_v30, -inf }
0x1f09   :  { %5788 = vmax.xlane.f32.xlu1 %v5787_v43 }
0x1f0a   :  { %v5790_v48 = vsel %vm461_vm4, %v5786_v41, -inf }
0x1f0b   :  { %5791 = vmax.xlane.f32.xlu0 %v5790_v48 }
0x1f1a   :  { %5809 = vrot.lane.b32.xlu1 %v13687_v57, %s12491_s25 }
0x1f1e   :  { %5963 = vrot.lane.b32.xlu1 %v13687_v57, %s12492_s26 }
0x1f21   :  { %5885 = vrot.lane.b32.xlu0 %v13689_v47, %s12491_s25  ;;  %s14742_s25 = smov 48  }
0x1f22   :  { %6041 = vrot.lane.b32.xlu1 %v13689_v47, %s12492_s26  ;;  %s14743_s26 = smov 76  }
0x1f26   :  { %5961 = vrot.lane.b32.xlu1 %v13687_v57, %s14735_s4 }
0x1f96   :  { %v5789_v49 = vpop.xlane.xlu1 %5788 }
0x1f97   :  { %v5793_v50 = vsub.f32 %v5785_v30, %v5789_v49 }
0x1f98   :  { %v5792_v52 = vpop.xlane.xlu0 %5791 }
0x1f99   :  { %v5795_v9 = vmul.f32 1.442695, %v5793_v50  ;;  %v5794_v45 = vsub.f32 %v5786_v41, %v5792_v52 }
0x1f9a   :  { %v5810_v54 = vpop.permute.xlu1 %5809 }
0x1f9b   :  { %12400 = vpow2.f32 %v5795_v9  ;;  %v5797_v56 = vmul.f32 1.442695, %v5794_v45  ;;  %11786 = vmatpush3.msra.mxu0 %v5810_v54 }
0x1f9c   :  { %v5886_v39 = vpop.permute.xlu0 %5885  ;;  %11795 = vmatprep.subr.mxu0 %v12485_v38 }
0x1f9d   :  { %12402 = vpow2.f32 %v5797_v56  ;;  %11791 = vmatpush3.msra.mxu1 %v5886_v39 }
0x1f9e   :  { %11800 = vmatprep.subr.mxu1 %v12485_v38  ;;  %v5964_v4 = vpop.permute.xlu1 %5963 }
0x1fa2   :  { %v6042_v5 = vpop.permute.xlu1 %6041 }
0x1fa5   :  { %v12401_v36 = vpop.eup %12400 }
0x1fa6   :  { %v5799_v58 = vsel %vm461_vm4, %v12401_v36, 0.0  ;;  %v5962_v12 = vpop.permute.xlu1 %5961 }
0x1fa7   :  { %v12403_v60 = vpop.eup %12402  ;;  %5800 = vadd.xlane.f32.xlu0 %v5799_v58 }
0x1fa8   :  { %v5802_v61 = vsel %vm461_vm4, %v12403_v60, 0.0 }
0x1fab   :  { %5803 = vadd.xlane.f32.xlu0 %v5802_v61 }
0x1fc1   :  { %6039 = vrot.lane.b32.xlu0 %v13689_v47, %s14735_s4  ;;  %s14755_s4 = smov 20  }
0x2034   :  { %v5801_v0 = vpop.xlane.xlu0 %5800 }
0x2035   :  { %12404 = vrcp.f32 %v5801_v0 }
0x2038   :  { %v5804_v2 = vpop.xlane.xlu0 %5803 }
0x2039   :  { %12406 = vrcp.f32 %v5804_v2 }
0x203c   :  { %v6040_v15 = vpop.permute.xlu0 %6039 }
0x203f   :  { %v12405_v35 = vpop.eup %12404 }
0x2040   :  { %v5806_v63 = vmul.f32 %v12405_v35, %v12401_v36 }
0x2042   :  { %11788 = vmatmul.mubr.msk.f32.vlgmr.msra.gmra.mrb[78].mxu0 %vm461_vm4, %v5806_v63 }
0x2043   :  { %v12407_v6 = vpop.eup %12406  ;;  %11796 = vmatpush3.xpose.msk.msra.mxu0 %vm307_vm3, %v5964_v4  ;;  %11797 = vmatprep.mubr.msk.f32.mxu0 %vm12486_vm2, %v12485_v38 }
0x2044   :  { %v5808_v8 = vmul.f32 %v12407_v6, %v12403_v60  ;;  %11805 = vmatprep.subr.mxu0 %v12485_v38 }
0x2046   :  { %11793 = vmatmul.mubr.msk.f32.vlgmr.msra.gmra.mrb[76].mxu1 %vm461_vm4, %v5808_v8  ;;  %11798 = vmatmul.mubr.msk.f32.vlgmr.msra.gmra.mrb[80].mxu0 %vm307_vm3, %v5962_v12 }
0x2047   :  { %11801 = vmatpush3.xpose.msk.msra.mxu1 %vm307_vm3, %v6042_v5  ;;  %11802 = vmatprep.mubr.msk.f32.mxu1 %vm12486_vm2, %v12485_v38 }
0x2048   :  { %11810 = vmatprep.subr.mxu1 %v12485_v38  ;;  %11807 = vmatprep.mubr.msk.f32.mxu0 %vm12486_vm2, %v12485_v38 }
0x204a   :  { %11803 = vmatmul.mubr.msk.f32.vlgmr.msra.gmra.mrb[78].mxu1 %vm307_vm3, %v6040_v15 }
0x204b   :  { %11812 = vmatprep.mubr.msk.f32.mxu1 %vm12486_vm2, %v12485_v38 }
0x2115   :  { %v13779_v11 = vpop.f32.mrb[78].mxu0 }
0x2116   :  { %v11789_v53 = vpop.f32.mrb[79].mxu0 }
0x2119   :  { %v13781_v55 = vpop.f32.mrb[76].mxu1  ;;  %v6035_v19 = vpop.f32.mrb[80].mxu0 }
0x211a   :  { %v12017_v16 = vpack.i.bf16 %v13781_v55, %v13779_v11  ;;  %v6117_v51 = vmul.f32 0.5, %v6035_v19  ;;  %v11794_v17 = vpop.f32.mrb[77].mxu1  ;;  %v11799_v14 = vpop.f32.mrb[81].mxu0 }
0x211c   :  { %v6119_v59 = vsel %vm461_vm4, %v6117_v51, -inf }
0x211d   :  { %6120 = vmax.xlane.f32.xlu1 %v6119_v59  ;;  %v6113_v23 = vpop.f32.mrb[78].mxu1 }
0x211e   :  { %v6118_v18 = vmul.f32 0.5, %v6113_v23  ;;  %v11804_v31 = vpop.f32.mrb[79].mxu1 }
0x2120   :  { %v6122_v24 = vsel %vm461_vm4, %v6118_v18, -inf }
0x2121   :  { %6123 = vmax.xlane.f32.xlu0 %v6122_v24 }
0x212e   :  { %6141 = vrot.lane.b32.xlu1 %v13687_v57, %s14736_s5 }
0x2132   :  { %6295 = vrot.lane.b32.xlu1 %v13687_v57, %s14737_s7 }
0x2136   :  { %6373 = vrot.lane.b32.xlu1 %v13689_v47, %s14737_s7  ;;  %s14757_s7 = smov 24  }
0x2137   :  { %6217 = vrot.lane.b32.xlu0 %v13689_v47, %s14736_s5  ;;  %s14756_s5 = smov 16  }
0x213a   :  { %6293 = vrot.lane.b32.xlu1 %v13687_v57, %s14738_s22 }
0x21aa   :  { %v6121_v44 = vpop.xlane.xlu1 %6120 }
0x21ab   :  { %v6125_v7 = vsub.f32 %v6117_v51, %v6121_v44 }
0x21ad   :  { %v6127_v33 = vmul.f32 1.442695, %v6125_v7 }
0x21ae   :  { %v6142_v3 = vpop.permute.xlu1 %6141  ;;  %v6124_v26 = vpop.xlane.xlu0 %6123 }
0x21af   :  { %12408 = vpow2.f32 %v6127_v33  ;;  %v6126_v27 = vsub.f32 %v6118_v18, %v6124_v26  ;;  %11806 = vmatpush3.msra.mxu0 %v6142_v3 }
0x21b0   :  { %11815 = vmatprep.subr.mxu0 %v12485_v38 }
0x21b1   :  { %v6129_v30 = vmul.f32 1.442695, %v6126_v27 }
0x21b2   :  { %v6218_v32 = vpop.permute.xlu0 %6217  ;;  %v6296_v50 = vpop.permute.xlu1 %6295 }
0x21b3   :  { %12410 = vpow2.f32 %v6129_v30  ;;  %11811 = vmatpush3.msra.mxu1 %v6218_v32 }
0x21b4   :  { %11820 = vmatprep.subr.mxu1 %v12485_v38 }
0x21b6   :  { %v6374_v9 = vpop.permute.xlu1 %6373 }
0x21b9   :  { %v12409_v40 = vpop.eup %12408 }
0x21ba   :  { %v6131_v41 = vsel %vm461_vm4, %v12409_v40, 0.0  ;;  %v6294_v39 = vpop.permute.xlu1 %6293 }
0x21bb   :  { %6132 = vadd.xlane.f32.xlu0 %v6131_v41 }
0x21bd   :  { %v12411_v42 = vpop.eup %12410 }
0x21be   :  { %v6134_v43 = vsel %vm461_vm4, %v12411_v42, 0.0 }
0x21bf   :  { %6135 = vadd.xlane.f32.xlu0 %v6134_v43 }
0x21d5   :  { %6371 = vrot.lane.b32.xlu0 %v13689_v47, %s14738_s22 }
0x2248   :  { %v6133_v48 = vpop.xlane.xlu0 %6132 }
0x2249   :  { %12412 = vrcp.f32 %v6133_v48 }
0x224c   :  { %v6136_v49 = vpop.xlane.xlu0 %6135 }
0x224d   :  { %12414 = vrcp.f32 %v6136_v49 }
0x2250   :  { %v6372_v36 = vpop.permute.xlu0 %6371 }
0x2253   :  { %v12413_v52 = vpop.eup %12412 }
0x2254   :  { %v6138_v45 = vmul.f32 %v12413_v52, %v12409_v40 }
0x2256   :  { %11808 = vmatmul.mubr.msk.f32.vlgmr.msra.gmra.mrb[82].mxu0 %vm461_vm4, %v6138_v45 }
0x2257   :  { %v12415_v54 = vpop.eup %12414  ;;  %11816 = vmatpush3.xpose.msk.msra.mxu0 %vm307_vm3, %v6296_v50  ;;  %11817 = vmatprep.mubr.msk.f32.mxu0 %vm12486_vm2, %v12485_v38 }
0x2258   :  { %v6140_v56 = vmul.f32 %v12415_v54, %v12411_v42  ;;  %11825 = vmatprep.subr.mxu0 %v12485_v38 }
0x225a   :  { %11813 = vmatmul.mubr.msk.f32.vlgmr.msra.gmra.mrb[80].mxu1 %vm461_vm4, %v6140_v56  ;;  %11818 = vmatmul.mubr.msk.f32.vlgmr.msra.gmra.mrb[84].mxu0 %vm307_vm3, %v6294_v39 }
0x225b   :  { %11821 = vmatpush3.xpose.msk.msra.mxu1 %vm307_vm3, %v6374_v9  ;;  %11822 = vmatprep.mubr.msk.f32.mxu1 %vm12486_vm2, %v12485_v38 }
0x225c   :  { %11830 = vmatprep.subr.mxu1 %v12485_v38  ;;  %11827 = vmatprep.mubr.msk.f32.mxu0 %vm12486_vm2, %v12485_v38 }
0x225e   :  { %11823 = vmatmul.mubr.msk.f32.vlgmr.msra.gmra.mrb[82].mxu1 %vm307_vm3, %v6372_v36 }
0x225f   :  { %11832 = vmatprep.mubr.msk.f32.mxu1 %vm12486_vm2, %v12485_v38 }
0x2329   :  { %v13819_v58 = vpop.f32.mrb[82].mxu0 }
0x232a   :  { %v11809_v60 = vpop.f32.mrb[83].mxu0 }
0x232d   :  { %v13821_v61 = vpop.f32.mrb[80].mxu1  ;;  %v6367_v0 = vpop.f32.mrb[84].mxu0 }
0x232e   :  { %v12022_v2 = vpack.i.bf16 %v13821_v61, %v13819_v58  ;;  %v6449_v4 = vmul.f32 0.5, %v6367_v0  ;;  %v11814_v35 = vpop.f32.mrb[81].mxu1  ;;  %v11819_v5 = vpop.f32.mrb[85].mxu0 }
0x2330   :  { %v6451_v63 = vsel %vm461_vm4, %v6449_v4, -inf }
0x2331   :  { %6452 = vmax.xlane.f32.xlu1 %v6451_v63  ;;  %v6445_v6 = vpop.f32.mrb[82].mxu1 }
0x2332   :  { %v6450_v8 = vmul.f32 0.5, %v6445_v6  ;;  %v11824_v12 = vpop.f32.mrb[83].mxu1 }
0x2334   :  { %v6454_v15 = vsel %vm461_vm4, %v6450_v8, -inf }
0x2335   :  { %6455 = vmax.xlane.f32.xlu0 %v6454_v15 }
0x2342   :  { %6473 = vrot.lane.b32.xlu1 %v13687_v57, %s14739_s2 }
0x2346   :  { %6627 = vrot.lane.b32.xlu1 %v13687_v57, %s14740_s23 }
0x234a   :  { %6705 = vrot.lane.b32.xlu1 %v13689_v47, %s14740_s23 }
0x234b   :  { %6549 = vrot.lane.b32.xlu0 %v13689_v47, %s14739_s2 }
0x234e   :  { %6625 = vrot.lane.b32.xlu1 %v13687_v57, %s14741_s24 }
0x23be   :  { %v6453_v53 = vpop.xlane.xlu1 %6452 }
0x23bf   :  { %v6457_v19 = vsub.f32 %v6449_v4, %v6453_v53 }
0x23c1   :  { %v6459_v51 = vmul.f32 1.442695, %v6457_v19 }
0x23c2   :  { %v6474_v17 = vpop.permute.xlu1 %6473  ;;  %v6456_v14 = vpop.xlane.xlu0 %6455 }
0x23c3   :  { %12416 = vpow2.f32 %v6459_v51  ;;  %v6458_v59 = vsub.f32 %v6450_v8, %v6456_v14  ;;  %11826 = vmatpush3.msra.mxu0 %v6474_v17 }
0x23c4   :  { %11835 = vmatprep.subr.mxu0 %v12485_v38 }
0x23c5   :  { %v6461_v23 = vmul.f32 1.442695, %v6458_v59 }
0x23c6   :  { %v6550_v18 = vpop.permute.xlu0 %6549  ;;  %v6628_v26 = vpop.permute.xlu1 %6627 }
0x23c7   :  { %12418 = vpow2.f32 %v6461_v23  ;;  %11831 = vmatpush3.msra.mxu1 %v6550_v18 }
0x23c8   :  { %11840 = vmatprep.subr.mxu1 %v12485_v38 }
0x23ca   :  { %v6706_v30 = vpop.permute.xlu1 %6705 }
0x23cd   :  { %v12417_v31 = vpop.eup %12416 }
0x23ce   :  { %v6463_v24 = vsel %vm461_vm4, %v12417_v31, 0.0  ;;  %v6626_v42 = vpop.permute.xlu1 %6625 }
0x23cf   :  { %6464 = vadd.xlane.f32.xlu0 %v6463_v24 }
0x23d1   :  { %v12419_v44 = vpop.eup %12418 }
0x23d2   :  { %v6466_v7 = vsel %vm461_vm4, %v12419_v44, 0.0 }
0x23d3   :  { %6467 = vadd.xlane.f32.xlu0 %v6466_v7 }
0x23e9   :  { %6703 = vrot.lane.b32.xlu0 %v13689_v47, %s14741_s24 }
0x245c   :  { %v6465_v33 = vpop.xlane.xlu0 %6464 }
0x245d   :  { %12420 = vrcp.f32 %v6465_v33 }
0x2460   :  { %v6468_v3 = vpop.xlane.xlu0 %6467 }
0x2461   :  { %12422 = vrcp.f32 %v6468_v3 }
0x2464   :  { %v6704_v43 = vpop.permute.xlu0 %6703 }
0x2467   :  { %v12421_v27 = vpop.eup %12420 }
0x2468   :  { %v6470_v32 = vmul.f32 %v12421_v27, %v12417_v31 }
0x246a   :  { %11828 = vmatmul.mubr.msk.f32.vlgmr.msra.gmra.mrb[86].mxu0 %vm461_vm4, %v6470_v32 }
0x246b   :  { %v12423_v40 = vpop.eup %12422  ;;  %11836 = vmatpush3.xpose.msk.msra.mxu0 %vm307_vm3, %v6628_v26  ;;  %11837 = vmatprep.mubr.msk.f32.mxu0 %vm12486_vm2, %v12485_v38 }
0x246c   :  { %v6472_v41 = vmul.f32 %v12423_v40, %v12419_v44  ;;  %11845 = vmatprep.subr.mxu0 %v12485_v38 }
0x246e   :  { %11833 = vmatmul.mubr.msk.f32.vlgmr.msra.gmra.mrb[84].mxu1 %vm461_vm4, %v6472_v41  ;;  %11838 = vmatmul.mubr.msk.f32.vlgmr.msra.gmra.mrb[88].mxu0 %vm307_vm3, %v6626_v42 }
0x246f   :  { %11841 = vmatpush3.xpose.msk.msra.mxu1 %vm307_vm3, %v6706_v30  ;;  %11842 = vmatprep.mubr.msk.f32.mxu1 %vm12486_vm2, %v12485_v38 }
0x2470   :  { %11850 = vmatprep.subr.mxu1 %v12485_v38  ;;  %11847 = vmatprep.mubr.msk.f32.mxu0 %vm12486_vm2, %v12485_v38 }
0x2472   :  { %11843 = vmatmul.mubr.msk.f32.vlgmr.msra.gmra.mrb[86].mxu1 %vm307_vm3, %v6704_v43 }
0x2473   :  { %11852 = vmatprep.mubr.msk.f32.mxu1 %vm12486_vm2, %v12485_v38 }
0x253d   :  { %v13859_v48 = vpop.f32.mrb[86].mxu0 }
0x253e   :  { %v11829_v49 = vpop.f32.mrb[87].mxu0 }
0x2541   :  { %v13861_v50 = vpop.f32.mrb[84].mxu1  ;;  %v6699_v52 = vpop.f32.mrb[88].mxu0 }
0x2542   :  { %v12027_v9 = vpack.i.bf16 %v13861_v50, %v13859_v48  ;;  %v6781_v45 = vmul.f32 0.5, %v6699_v52  ;;  %v11834_v54 = vpop.f32.mrb[85].mxu1  ;;  %v11839_v56 = vpop.f32.mrb[89].mxu0 }
0x2544   :  { %v6783_v39 = vsel %vm461_vm4, %v6781_v45, -inf }
0x2545   :  { %6784 = vmax.xlane.f32.xlu1 %v6783_v39  ;;  %v6777_v36 = vpop.f32.mrb[86].mxu1 }
0x2546   :  { %v6782_v60 = vmul.f32 0.5, %v6777_v36  ;;  %v11844_v0 = vpop.f32.mrb[87].mxu1 }
0x2548   :  { %v6786_v4 = vsel %vm461_vm4, %v6782_v60, -inf }
0x2549   :  { %6787 = vmax.xlane.f32.xlu0 %v6786_v4 }
0x2556   :  { %6805 = vrot.lane.b32.xlu1 %v13687_v57, %s14742_s25 }
0x255a   :  { %6959 = vrot.lane.b32.xlu1 %v13687_v57, %s14743_s26 }
0x255e   :  { %7037 = vrot.lane.b32.xlu1 %v13689_v47, %s14743_s26 }
0x255f   :  { %6881 = vrot.lane.b32.xlu0 %v13689_v47, %s14742_s25  ;;  %s14758_s25 = smov 28  }
0x2562   :  { %6957 = vrot.lane.b32.xlu1 %v13687_v57, %s14744_s21 }
0x25d2   :  { %v6785_v35 = vpop.xlane.xlu1 %6784 }
0x25d3   :  { %v6789_v5 = vsub.f32 %v6781_v45, %v6785_v35 }
0x25d5   :  { %v6791_v63 = vmul.f32 1.442695, %v6789_v5 }
0x25d6   :  { %v6806_v6 = vpop.permute.xlu1 %6805  ;;  %v6788_v8 = vpop.xlane.xlu0 %6787 }
0x25d7   :  { %12424 = vpow2.f32 %v6791_v63  ;;  %v6790_v12 = vsub.f32 %v6782_v60, %v6788_v8  ;;  %11846 = vmatpush3.msra.mxu0 %v6806_v6 }
0x25d8   :  { %11855 = vmatprep.subr.mxu0 %v12485_v38 }
0x25d9   :  { %v6793_v15 = vmul.f32 1.442695, %v6790_v12 }
0x25da   :  { %v6882_v53 = vpop.permute.xlu0 %6881  ;;  %v6960_v18 = vpop.permute.xlu1 %6959 }
0x25db   :  { %12426 = vpow2.f32 %v6793_v15  ;;  %11851 = vmatpush3.msra.mxu1 %v6882_v53 }
0x25dc   :  { %11860 = vmatprep.subr.mxu1 %v12485_v38 }
0x25de   :  { %v7038_v24 = vpop.permute.xlu1 %7037 }
0x25e1   :  { %v12425_v19 = vpop.eup %12424 }
0x25e2   :  { %v6795_v51 = vsel %vm461_vm4, %v12425_v19, 0.0  ;;  %v6958_v3 = vpop.permute.xlu1 %6957 }
0x25e3   :  { %6796 = vadd.xlane.f32.xlu0 %v6795_v51 }
0x25e5   :  { %v12427_v17 = vpop.eup %12426 }
0x25e6   :  { %v6798_v14 = vsel %vm461_vm4, %v12427_v17, 0.0 }
0x25e7   :  { %6799 = vadd.xlane.f32.xlu0 %v6798_v14 }
0x25fd   :  { %7035 = vrot.lane.b32.xlu0 %v13689_v47, %s14744_s21 }
0x2670   :  { %v6797_v59 = vpop.xlane.xlu0 %6796 }
0x2671   :  { %12428 = vrcp.f32 %v6797_v59 }
0x2674   :  { %v6800_v23 = vpop.xlane.xlu0 %6799 }
0x2675   :  { %12430 = vrcp.f32 %v6800_v23 }
0x2678   :  { %v7036_v26 = vpop.permute.xlu0 %7035 }
0x267b   :  { %v12429_v31 = vpop.eup %12428 }
0x267c   :  { %v6802_v44 = vmul.f32 %v12429_v31, %v12425_v19 }
0x267e   :  { %11848 = vmatmul.mubr.msk.f32.vlgmr.msra.gmra.mrb[90].mxu0 %vm461_vm4, %v6802_v44 }
0x267f   :  { %v12431_v7 = vpop.eup %12430  ;;  %11856 = vmatpush3.xpose.msk.msra.mxu0 %vm307_vm3, %v6960_v18  ;;  %11857 = vmatprep.mubr.msk.f32.mxu0 %vm12486_vm2, %v12485_v38 }
0x2680   :  { %v6804_v33 = vmul.f32 %v12431_v7, %v12427_v17  ;;  %11865 = vmatprep.subr.mxu0 %v12485_v38 }
0x2682   :  { %11853 = vmatmul.mubr.msk.f32.vlgmr.msra.gmra.mrb[88].mxu1 %vm461_vm4, %v6804_v33  ;;  %11858 = vmatmul.mubr.msk.f32.vlgmr.msra.gmra.mrb[92].mxu0 %vm307_vm3, %v6958_v3 }
0x2683   :  { %11861 = vmatpush3.xpose.msk.msra.mxu1 %vm307_vm3, %v7038_v24  ;;  %11862 = vmatprep.mubr.msk.f32.mxu1 %vm12486_vm2, %v12485_v38 }
0x2684   :  { %11870 = vmatprep.subr.mxu1 %v12485_v38  ;;  %11867 = vmatprep.mubr.msk.f32.mxu0 %vm12486_vm2, %v12485_v38 }
0x2686   :  { %11863 = vmatmul.mubr.msk.f32.vlgmr.msra.gmra.mrb[90].mxu1 %vm307_vm3, %v7036_v26 }
0x2687   :  { %11872 = vmatprep.mubr.msk.f32.mxu1 %vm12486_vm2, %v12485_v38 }
0x2751   :  { %v13899_v27 = vpop.f32.mrb[90].mxu0 }
0x2752   :  { %v11849_v30 = vpop.f32.mrb[91].mxu0 }
0x2755   :  { %v13901_v32 = vpop.f32.mrb[88].mxu1  ;;  %v7031_v40 = vpop.f32.mrb[92].mxu0 }
0x2756   :  { %v12032_v41 = vpack.i.bf16 %v13901_v32, %v13899_v27  ;;  %v7113_v42 = vmul.f32 0.5, %v7031_v40  ;;  %v11854_v43 = vpop.f32.mrb[89].mxu1  ;;  %v11859_v49 = vpop.f32.mrb[93].mxu0  ;;  %v12186_v27 = vld [vmem:[%s14674_s8 + $0x10] sm:$0xff]   ;;  %v12187_v32 = vld [vmem:[%s14674_s8 + $0x18] sm:$0xff]   ;;  %s12518_s8 = smov [#allocation2]  }
0x2757   :  { %s10281_s26 = sshll.u32 %s12518_s8, 4  ;;  %s10282_s26 = int_to_ptr.vmem [resolvable:$true] %s10281_s26 }
0x2758   :  { %v7115_v52 = vsel %vm461_vm4, %v7113_v42, -inf  ;;  %p12465_p1 = scmp.lt.s32.totalorder %s10282_s26, %s10282_s26 }
0x2759   :  { %7116 = vmax.xlane.f32.xlu1 %v7115_v52  ;;  %v7109_v45 = vpop.f32.mrb[90].mxu1 }
0x275a   :  { %v7114_v54 = vmul.f32 0.5, %v7109_v45  ;;  %v11864_v56 = vpop.f32.mrb[91].mxu1 }
0x275c   :  { %v7118_v39 = vsel %vm461_vm4, %v7114_v54, -inf }
0x275d   :  { %7119 = vmax.xlane.f32.xlu0 %v7118_v39 }
0x276a   :  { %7137 = vrot.lane.b32.xlu1 %v13687_v57, %s14745_s3 }
0x276e   :  { %7291 = vrot.lane.b32.xlu1 %v13687_v57, %s14746_s27 }
0x2772   :  { %7369 = vrot.lane.b32.xlu1 %v13689_v47, %s14746_s27 }
0x2773   :  { %7213 = vrot.lane.b32.xlu0 %v13689_v47, %s14745_s3 }
0x2776   :  { %7289 = vrot.lane.b32.xlu1 %v13687_v57, %s14747_s28 }
0x27e6   :  { %v7117_v36 = vpop.xlane.xlu1 %7116 }
0x27e7   :  { %v7121_v60 = vsub.f32 %v7113_v42, %v7117_v36 }
0x27e9   :  { %v7123_v0 = vmul.f32 1.442695, %v7121_v60 }
0x27ea   :  { %v7138_v4 = vpop.permute.xlu1 %7137  ;;  %v7120_v35 = vpop.xlane.xlu0 %7119 }
0x27eb   :  { %12432 = vpow2.f32 %v7123_v0  ;;  %v7122_v5 = vsub.f32 %v7114_v54, %v7120_v35  ;;  %11866 = vmatpush3.msra.mxu0 %v7138_v4 }
0x27ec   :  { %11875 = vmatprep.subr.mxu0 %v12485_v38 }
0x27ed   :  { %v7125_v63 = vmul.f32 1.442695, %v7122_v5 }
0x27ee   :  { %v7214_v6 = vpop.permute.xlu0 %7213  ;;  %v7292_v17 = vpop.permute.xlu1 %7291 }
0x27ef   :  { %12434 = vpow2.f32 %v7125_v63  ;;  %11871 = vmatpush3.msra.mxu1 %v7214_v6 }
0x27f0   :  { %11880 = vmatprep.subr.mxu1 %v12485_v38 }
0x27f2   :  { %v7370_v59 = vpop.permute.xlu1 %7369 }
0x27f5   :  { %v12433_v8 = vpop.eup %12432 }
0x27f6   :  { %v7127_v12 = vsel %vm461_vm4, %v12433_v8, 0.0  ;;  %v7290_v24 = vpop.permute.xlu1 %7289 }
0x27f7   :  { %7128 = vadd.xlane.f32.xlu0 %v7127_v12 }
0x27f9   :  { %v12435_v15 = vpop.eup %12434 }
0x27fa   :  { %v7130_v53 = vsel %vm461_vm4, %v12435_v15, 0.0 }
0x27fb   :  { %7131 = vadd.xlane.f32.xlu0 %v7130_v53 }
0x2811   :  { %7367 = vrot.lane.b32.xlu0 %v13689_v47, %s14747_s28 }
0x2884   :  { %v7129_v19 = vpop.xlane.xlu0 %7128 }
0x2885   :  { %12436 = vrcp.f32 %v7129_v19 }
0x2888   :  { %v7132_v51 = vpop.xlane.xlu0 %7131 }
0x2889   :  { %12438 = vrcp.f32 %v7132_v51 }
0x288c   :  { %v7368_v44 = vpop.permute.xlu0 %7367 }
0x288f   :  { %v12437_v14 = vpop.eup %12436 }
0x2890   :  { %v7134_v23 = vmul.f32 %v12437_v14, %v12433_v8 }
0x2892   :  { %11868 = vmatmul.mubr.msk.f32.vlgmr.msra.gmra.mrb[94].mxu0 %vm461_vm4, %v7134_v23 }
0x2893   :  { %v12439_v18 = vpop.eup %12438  ;;  %11876 = vmatpush3.xpose.msk.msra.mxu0 %vm307_vm3, %v7292_v17  ;;  %11877 = vmatprep.mubr.msk.f32.mxu0 %vm12486_vm2, %v12485_v38 }
0x2894   :  { %v7136_v31 = vmul.f32 %v12439_v18, %v12435_v15  ;;  %11885 = vmatprep.subr.mxu0 %v12485_v38 }
0x2896   :  { %11873 = vmatmul.mubr.msk.f32.vlgmr.msra.gmra.mrb[92].mxu1 %vm461_vm4, %v7136_v31  ;;  %11878 = vmatmul.mubr.msk.f32.vlgmr.msra.gmra.mrb[96].mxu0 %vm307_vm3, %v7290_v24 }
0x2897   :  { %11881 = vmatpush3.xpose.msk.msra.mxu1 %vm307_vm3, %v7370_v59  ;;  %11882 = vmatprep.mubr.msk.f32.mxu1 %vm12486_vm2, %v12485_v38 }
0x2898   :  { %11890 = vmatprep.subr.mxu1 %v12485_v38  ;;  %11887 = vmatprep.mubr.msk.f32.mxu0 %vm12486_vm2, %v12485_v38 }
0x289a   :  { %11883 = vmatmul.mubr.msk.f32.vlgmr.msra.gmra.mrb[94].mxu1 %vm307_vm3, %v7368_v44 }
0x289b   :  { %11892 = vmatprep.mubr.msk.f32.mxu1 %vm12486_vm2, %v12485_v38 }
0x2965   :  { %v13939_v7 = vpop.f32.mrb[94].mxu0 }
0x2966   :  { %v11869_v33 = vpop.f32.mrb[95].mxu0 }
0x2969   :  { %v13941_v3 = vpop.f32.mrb[92].mxu1  ;;  %v7363_v26 = vpop.f32.mrb[96].mxu0 }
0x296a   :  { %v12037_v30 = vpack.i.bf16 %v13941_v3, %v13939_v7  ;;  %v7445_v40 = vmul.f32 0.5, %v7363_v26  ;;  %v11874_v42 = vpop.f32.mrb[93].mxu1  ;;  %v11879_v43 = vpop.f32.mrb[97].mxu0 }
0x296c   :  { %v7447_v49 = vsel %vm461_vm4, %v7445_v40, -inf }
0x296d   :  { %7448 = vmax.xlane.f32.xlu1 %v7447_v49  ;;  %v7441_v52 = vpop.f32.mrb[94].mxu1 }
0x296e   :  { %v7446_v45 = vmul.f32 0.5, %v7441_v52  ;;  %v11884_v54 = vpop.f32.mrb[95].mxu1 }
0x2970   :  { %v7450_v56 = vsel %vm461_vm4, %v7446_v45, -inf }
0x2971   :  { %7451 = vmax.xlane.f32.xlu0 %v7450_v56 }
0x297e   :  { %7469 = vrot.lane.b32.xlu1 %v13687_v57, %s14748_s29 }
0x2982   :  { %7623 = vrot.lane.b32.xlu1 %v13687_v57, %s14749_s1 }
0x2986   :  { %7701 = vrot.lane.b32.xlu1 %v13689_v47, %s14749_s1 }
0x2987   :  { %7545 = vrot.lane.b32.xlu0 %v13689_v47, %s14748_s29 }
0x298a   :  { %7621 = vrot.lane.b32.xlu1 %v13687_v57, %s14750_s20 }
0x29fa   :  { %v7449_v39 = vpop.xlane.xlu1 %7448 }
0x29fb   :  { %v7453_v36 = vsub.f32 %v7445_v40, %v7449_v39 }
0x29fd   :  { %v7455_v60 = vmul.f32 1.442695, %v7453_v36 }
0x29fe   :  { %v7470_v0 = vpop.permute.xlu1 %7469  ;;  %v7452_v4 = vpop.xlane.xlu0 %7451 }
0x29ff   :  { %12440 = vpow2.f32 %v7455_v60  ;;  %v7454_v35 = vsub.f32 %v7446_v45, %v7452_v4  ;;  %11886 = vmatpush3.msra.mxu0 %v7470_v0 }
0x2a00   :  { %11895 = vmatprep.subr.mxu0 %v12485_v38 }
0x2a01   :  { %v7457_v5 = vmul.f32 1.442695, %v7454_v35 }
0x2a02   :  { %v7546_v63 = vpop.permute.xlu0 %7545  ;;  %v7624_v51 = vpop.permute.xlu1 %7623 }
0x2a03   :  { %12442 = vpow2.f32 %v7457_v5  ;;  %11891 = vmatpush3.msra.mxu1 %v7546_v63 }
0x2a04   :  { %11900 = vmatprep.subr.mxu1 %v12485_v38 }
0x2a06   :  { %v7702_v14 = vpop.permute.xlu1 %7701 }
0x2a09   :  { %v12441_v6 = vpop.eup %12440 }
0x2a0a   :  { %v7459_v8 = vsel %vm461_vm4, %v12441_v6, 0.0  ;;  %v7622_v31 = vpop.permute.xlu1 %7621 }
0x2a0b   :  { %7460 = vadd.xlane.f32.xlu0 %v7459_v8 }
0x2a0d   :  { %v12443_v12 = vpop.eup %12442 }
0x2a0e   :  { %v7462_v15 = vsel %vm461_vm4, %v12443_v12, 0.0 }
0x2a0f   :  { %7463 = vadd.xlane.f32.xlu0 %v7462_v15 }
0x2a25   :  { %7699 = vrot.lane.b32.xlu0 %v13689_v47, %s14750_s20 }
0x2a98   :  { %v7461_v53 = vpop.xlane.xlu0 %7460 }
0x2a99   :  { %12444 = vrcp.f32 %v7461_v53 }
0x2a9c   :  { %v7464_v19 = vpop.xlane.xlu0 %7463 }
0x2a9d   :  { %12446 = vrcp.f32 %v7464_v19 }
0x2aa0   :  { %v7700_v24 = vpop.permute.xlu0 %7699 }
0x2aa3   :  { %v12445_v17 = vpop.eup %12444 }
0x2aa4   :  { %v7466_v59 = vmul.f32 %v12445_v17, %v12441_v6 }
0x2aa6   :  { %11888 = vmatmul.mubr.msk.f32.vlgmr.msra.gmra.mrb[98].mxu0 %vm461_vm4, %v7466_v59 }
0x2aa7   :  { %v12447_v23 = vpop.eup %12446  ;;  %11896 = vmatpush3.xpose.msk.msra.mxu0 %vm307_vm3, %v7624_v51  ;;  %11897 = vmatprep.mubr.msk.f32.mxu0 %vm12486_vm2, %v12485_v38 }
0x2aa8   :  { %v7468_v18 = vmul.f32 %v12447_v23, %v12443_v12  ;;  %11905 = vmatprep.subr.mxu0 %v12485_v38 }
0x2aaa   :  { %11893 = vmatmul.mubr.msk.f32.vlgmr.msra.gmra.mrb[96].mxu1 %vm461_vm4, %v7468_v18  ;;  %11898 = vmatmul.mubr.msk.f32.vlgmr.msra.gmra.mrb[100].mxu0 %vm307_vm3, %v7622_v31 }
0x2aab   :  { %11901 = vmatpush3.xpose.msk.msra.mxu1 %vm307_vm3, %v7702_v14  ;;  %11902 = vmatprep.mubr.msk.f32.mxu1 %vm12486_vm2, %v12485_v38 }
0x2aac   :  { %11910 = vmatprep.subr.mxu1 %v12485_v38  ;;  %11907 = vmatprep.mubr.msk.f32.mxu0 %vm12486_vm2, %v12485_v38 }
0x2aae   :  { %11903 = vmatmul.mubr.msk.f32.vlgmr.msra.gmra.mrb[98].mxu1 %vm307_vm3, %v7700_v24 }
0x2aaf   :  { %11912 = vmatprep.mubr.msk.f32.mxu1 %vm12486_vm2, %v12485_v38 }
0x2b79   :  { %v7541_v44 = vpop.f32.mrb[98].mxu0 }
0x2b7a   :  { %v11889_v33 = vpop.f32.mrb[99].mxu0 }
0x2b7d   :  { %v7617_v26 = vpop.f32.mrb[96].mxu1  ;;  %v7695_v40 = vpop.f32.mrb[100].mxu0 }
0x2b7e   :  { %v12042_v42 = vpack.i.bf16 %v7617_v26, %v7541_v44  ;;  %v7777_v43 = vmul.f32 0.5, %v7695_v40  ;;  %v11894_v49 = vpop.f32.mrb[97].mxu1  ;;  %v11899_v52 = vpop.f32.mrb[101].mxu0 }
0x2b80   :  { %v7779_v45 = vsel %vm461_vm4, %v7777_v43, -inf }
0x2b81   :  { %7780 = vmax.xlane.f32.xlu1 %v7779_v45  ;;  %v7773_v54 = vpop.f32.mrb[98].mxu1 }
0x2b82   :  { %v7778_v56 = vmul.f32 0.5, %v7773_v54  ;;  %v11904_v39 = vpop.f32.mrb[99].mxu1 }
0x2b84   :  { %v7782_v36 = vsel %vm461_vm4, %v7778_v56, -inf }
0x2b85   :  { %7783 = vmax.xlane.f32.xlu0 %v7782_v36 }
0x2b92   :  { %7801 = vrot.lane.b32.xlu1 %v13687_v57, %s14751_s6 }
0x2b96   :  { %12018 = vrot.lane.b32.xlu1 %v12017_v16, %s14752_s0 }
0x2b9a   :  { %12023 = vrot.lane.b32.xlu1 %v12022_v2, %s14753_s19 }
0x2b9e   :  { %12028 = vrot.lane.b32.xlu1 %v12027_v9, %s14754_s30 }
0x2ba2   :  { %12038 = vrot.lane.b32.xlu1 %v12037_v30, %s14755_s4 }
0x2c0e   :  { %v7781_v57 = vpop.xlane.xlu1 %7780 }
0x2c0f   :  { %v7785_v60 = vsub.f32 %v7777_v43, %v7781_v57 }
0x2c11   :  { %v7787_v0 = vmul.f32 1.442695, %v7785_v60 }
0x2c12   :  { %v7802_v11 = vpop.permute.xlu1 %7801  ;;  %v7784_v55 = vpop.xlane.xlu0 %7783 }
0x2c13   :  { %12448 = vpow2.f32 %v7787_v0  ;;  %v7786_v16 = vsub.f32 %v7778_v56, %v7784_v55  ;;  %11906 = vmatpush3.msra.mxu0 %v7802_v11 }
0x2c14   :  { %11915 = vmatprep.subr.bf16.mxu0 %v12485_v38 }
0x2c15   :  { %v7789_v58 = vmul.f32 1.442695, %v7786_v16 }
0x2c16   :  { %v12019_v12 = vpop.permute.xlu1 %12018 }
0x2c17   :  { %12450 = vpow2.f32 %v7789_v58  ;;  %v12021_v51 = vunpack.i.h.bf16 %v12019_v12  ;;  %v12020_v17 = vunpack.i.l.bf16 %v12019_v12 }
0x2c19   :  { %v8010_v24 = vsel %vm307_vm3, %v13743_v25, %v12021_v51  ;;  %v8009_v44 = vsel %vm307_vm3, %v13741_v22, %v12020_v17  ;;  %v10600_v51 = vld [vmem:[%s14678_s12 + $0x108] sm:$0xff] }
0x2c1a   :  { %v12024_v15 = vpop.permute.xlu1 %12023 }
0x2c1b   :  { %v12026_v14 = vunpack.i.h.bf16 %v12024_v15 }
0x2c1d   :  { %v12449_v61 = vpop.eup %12448  ;;  %v8012_v40 = vsel %vm461_vm4, %v8010_v24, %v12026_v14  ;;  %v10608_v14 = vld [vmem:[%s14678_s12 + $0x148] sm:$0xff] }
0x2c1e   :  { %v7791_v2 = vsel %vm461_vm4, %v12449_v61, 0.0  ;;  %v12029_v19 = vpop.permute.xlu1 %12028  ;;  %v10616_v24 = vld [vmem:[%s14678_s12 + $0x188] sm:$0xff] }
0x2c1f   :  { %7792 = vadd.xlane.f32.xlu0 %v7791_v2  ;;  %v12031_v59 = vunpack.i.h.bf16 %v12029_v19  ;;  %v12030_v23 = vunpack.i.l.bf16 %v12029_v19  ;;  %v10607_v19 = vld [vmem:[%s14678_s12 + $0x140] sm:$0xff] }
0x2c21   :  { %v12451_v48 = vpop.eup %12450  ;;  %v8014_v49 = vsel %vm3020_vm5, %v8012_v40, %v12031_v59  ;;  %v10635_v59 = vcombine.low %v10600_v51, %v10608_v14 }
0x2c22   :  { %v7794_v50 = vsel %vm461_vm4, %v12451_v48, 0.0 }
0x2c23   :  { %7795 = vadd.xlane.f32.xlu0 %v7794_v50 }
0x2c39   :  { %7877 = vrot.lane.b32.xlu0 %v13689_v47, %s14751_s6 }
0x2c3d   :  { %12033 = vrot.lane.b32.xlu0 %v12032_v41, %s14756_s5 }
0x2c41   :  { %12043 = vrot.lane.b32.xlu0 %v12042_v42, %s14757_s7  ;;  %v12039_v42 = vpop.permute.xlu1 %12038 }
0x2c42   :  { %v12041_v25 = vunpack.i.h.bf16 %v12039_v42  ;;  %v12040_v39 = vunpack.i.l.bf16 %v12039_v42 }
0x2cac   :  { %v7793_v9 = vpop.xlane.xlu0 %7792 }
0x2cad   :  { %12452 = vrcp.f32 %v7793_v9 }
0x2cb0   :  { %v7796_v7 = vpop.xlane.xlu0 %7795 }
0x2cb1   :  { %12454 = vrcp.f32 %v7796_v7 }
0x2cb4   :  { %v7878_v3 = vpop.permute.xlu0 %7877 }
0x2cb5   :  { %11911 = vmatpush3.msra.mxu1 %v7878_v3 }
0x2cb7   :  { %v12453_v30 = vpop.eup %12452 }
0x2cb8   :  { %v7798_v4 = vmul.f32 %v12453_v30, %v12449_v61  ;;  %v12034_v53 = vpop.permute.xlu0 %12033 }
0x2cb9   :  { %v12036_v18 = vunpack.i.h.bf16 %v12034_v53  ;;  %v12035_v31 = vunpack.i.l.bf16 %v12034_v53  ;;  %v10599_v53 = vld [vmem:[%s14678_s12 + $0x100] sm:$0xff] }
0x2cba   :  { %11908 = vmatmul.mubr.msk.f32.vlgmr.msra.gmra.mrb[102].mxu0 %vm461_vm4, %v7798_v4  ;;  %v10634_v17 = vcombine.high %v10599_v53, %v10607_v19 }
0x2cbb   :  { %v12455_v35 = vpop.eup %12454  ;;  %11919 = vmatprep.mubr.msk.bf16.mxu0 %vm12486_vm2, %v12485_v38  ;;  %11916 = vmatpush3.bf16.msra.mxu0 %v12186_v27  ;;  %v8016_v52 = vsel %vm72_vm0, %v8014_v49, %v12036_v18  ;;  %v10615_v18 = vld [vmem:[%s14678_s12 + $0x180] sm:$0xff]  ;;  %v10609_v49 = vld [vmem:[%s14678_s12 + $0x150] sm:$0xff] }
0x2cbc   :  { %v7800_v47 = vmul.f32 %v12455_v35, %v12451_v48  ;;  %11917 = vmatprep.subr.bf16.mxu0 %v12485_v38  ;;  %v12025_v38 = vunpack.i.l.bf16 %v12024_v15  ;;  %v12044_v33 = vpop.permute.xlu0 %12043  ;;  %v8018_v57 = vsel %vm3025_vm6, %v8016_v52, %v12041_v25  ;;  %v10594_v48 = vld [vmem:[%s14675_s9 + $0x1] ss:$0 sm:$0xff]  ;;  %8425 = vmatprep.subr.bf16.mxu1 %v10634_v17  ;;  %v10602_v52 = vld [vmem:[%s14678_s12 + $0x118] sm:$0xff]  ;;  %s12460_s9 = scalar_lea.vmem %s10282_s26, 256 }
0x2cbd   :  { %v12046_v54 = vunpack.i.h.bf16 %v12044_v33  ;;  %v12045_v56 = vunpack.i.l.bf16 %v12044_v33  ;;  %v10624_v33 = vld [vmem:[%s14678_s12 + $0x1c8] sm:$0xff]  ;;  %v10627_v17 = vld [vmem:[%s14678_s12 + $0x1e0] sm:$0xff]  ;;  %p12461_p0 = scmp.ne.s32.totalorder %s10282_s26, %s12460_s9  ;;  %p12466_p2 = scmp.lt.s32.totalorder %s12460_s9, %s12460_s9 }
0x2cbe   :  { %11913 = vmatmul.mubr.msk.f32.vlgmr.msra.gmra.mrb[100].mxu1 %vm461_vm4, %v7800_v47  ;;  %v8011_v26 = vsel %vm461_vm4, %v8009_v44, %v12025_v38  ;;  %v10633_v38 = vcombine.low %v10599_v53, %v10607_v19  ;;  %v10651_v40 = vcombine.low %v10616_v24, %v10624_v33  ;;  %v10652_v42 = vcombine.high %v10616_v24, %v10624_v33  ;;  %v10605_v24 = vld [vmem:[%s14678_s12 + $0x130] sm:$0xff]  ;;  %v10606_v33 = vld [vmem:[%s14678_s12 + $0x138] sm:$0xff] }
0x2cbf   :  { %8457 = vmatprep.mubr.bf16.mxu1 %v12517_v46  ;;  %11918 = vmatpush3.bf16.msra.mxu0 %v12187_v32  ;;  %v8013_v43 = vsel %vm3020_vm5, %v8011_v26, %v12030_v23  ;;  %v8020_v55 = vsel %vm3028_vm7, %v8018_v57, %v12046_v54  ;;  %v10636_v23 = vcombine.high %v10600_v51, %v10608_v14  ;;  %v10619_v51 = vld [vmem:[%s14678_s12 + $0x1a0] sm:$0xff]  ;;  %v10620_v14 = vld [vmem:[%s14678_s12 + $0x1a8] sm:$0xff]  ;;  %p12467_p3 = por %p12466_p2, %p12465_p1 }
0x2cc0   :  { %v8015_v45 = vsel %vm72_vm0, %v8013_v43, %v12035_v31  ;;  %8426 = vmatpush1.bf16.msra.mxu1 %v10633_v38  ;;  %v10623_v31 = vld [vmem:[%s14678_s12 + $0x1c0] sm:$0xff]  ;;  %v10601_v43 = vld [vmem:[%s14678_s12 + $0x110] sm:$0xff]  ;;  %v10628_v38 = vld [vmem:[%s14678_s12 + $0x1e8] sm:$0xff] }
0x2cc1   :  { %v8017_v22 = vsel %vm3025_vm6, %v8015_v45, %v12040_v39  ;;  %8468 = vmatprep.subr.bf16.mxu0 %v10636_v23  ;;  %v10650_v44 = vcombine.high %v10615_v18, %v10623_v31  ;;  %v10649_v26 = vcombine.low %v10615_v18, %v10623_v31  ;;  %v10637_v45 = vcombine.low %v10601_v43, %v10609_v49  ;;  %p12468_p4 = pnand %p12467_p3, %p12461_p0 }
0x2cc2   :  { %v8019_v11 = vsel %vm3028_vm7, %v8017_v22, %v12045_v56  ;;  %v10638_v54 = vcombine.high %v10601_v43, %v10609_v49  ;;  %v10610_v56 = vld [vmem:[%s14678_s12 + $0x158] sm:$0xff]  ;;  %v10658_v18 = vcombine.high %v10619_v51, %v10627_v17  ;;  %v10660_v31 = vcombine.high %v10620_v14, %v10628_v38 }
0x2cc3   :  { %8427 = vmatprep.subr.bf16.mxu1 %v10650_v44  ;;  %v10639_v25 = vcombine.low %v10602_v52, %v10610_v56  ;;  %v10640_v39 = vcombine.high %v10602_v52, %v10610_v56  ;;  %v10613_v44 = vld [vmem:[%s14678_s12 + $0x170] sm:$0xff]  ;;  %v10630_v56 = vld [vmem:[%s14678_s12 + $0x1f8] sm:$0xff] }
0x2cc4   :  { %8428 = vmatpush1.bf16.msra.mxu1 %v10649_v26  ;;  %v10614_v26 = vld [vmem:[%s14678_s12 + $0x178] sm:$0xff]  ;;  %v10646_v43 = vcombine.high %v10605_v24, %v10613_v44  ;;  %v10621_v52 = vld [vmem:[%s14678_s12 + $0x1b0] sm:$0xff] }
0x2cc5   :  { %8511 = vmatprep.subr.bf16.mxu1 %v10638_v54  ;;  %v10648_v49 = vcombine.high %v10606_v33, %v10614_v26  ;;  %v10622_v54 = vld [vmem:[%s14678_s12 + $0x1b8] sm:$0xff] }
0x2d8d   :  { %v7873_v41 = vpop.f32.mrb[102].mxu0 }
0x2d8e   :  { %v11909_v5 = vpop.f32.mrb[103].mxu0 }
0x2d91   :  { %v7949_v63 = vpop.f32.mrb[100].mxu1 }
0x2d92   :  { %v12047_v6 = vpack.i.bf16 %v7949_v63, %v7873_v41  ;;  %v11914_v8 = vpop.f32.mrb[101].mxu1 }
0x2d94   :  { %12048 = vrot.lane.b32.xlu1 %v12047_v6, %s14758_s25 }
0x2e06   :  { %v12049_v36 = vpop.permute.xlu1 %12048 }
0x2e07   :  { %v12051_v60 = vunpack.i.h.bf16 %v12049_v36  ;;  %v12050_v0 = vunpack.i.l.bf16 %v12049_v36 }
0x2e09   :  { %v8022_v16 = vsel %vm3031_vm8, %v8020_v55, %v12051_v60  ;;  %v8021_v58 = vsel %vm3031_vm8, %v8019_v11, %v12050_v0 }
0x2e0a   :  { %v8023_v61 = vpack.c.bf16 %v8022_v16, %v8021_v58  ;;  %v10597_v58 = vld [vmem:[%s14676_s10 + $0x1] ss:$0 sm:$0xff] }
0x2e0c   :  { %11920 = vmatmul.mubr.msk.bf16.vlgmr.msra.gmra.mrb[104].mxu0 %vm192_vm1, %v8023_v61 }
0x2e0d   :  { %8500 = vmatprep.mubr.bf16.mxu0 %v12517_v46  ;;  %8469 = vmatpush1.bf16.msra.mxu0 %v10635_v59 }
0x2e0e   :  { %8470 = vmatprep.subr.bf16.mxu0 %v10652_v42  ;;  %v10659_v42 = vcombine.low %v10620_v14, %v10628_v38  ;;  %v12218_v14 = vld [vmem:[%s14680_s14 + $0x438] sm:$0xff]  }
0x2e0f   :  { %v12219_v38 = vld [vmem:[%s14680_s14 + $0x4b8] sm:$0xff]  }
0x2e11   :  { %8471 = vmatpush1.bf16.msra.mxu0 %v10651_v40  ;;  %v10657_v40 = vcombine.low %v10619_v51, %v10627_v17  ;;  %v12216_v51 = vld [vmem:[%s14680_s14 + $0x478] sm:$0xff]  }
0x2e12   :  { %8554 = vmatprep.subr.bf16.mxu0 %v10640_v39  ;;  %v10647_v39 = vcombine.low %v10606_v33, %v10614_v26  ;;  %v12217_v17 = vld [vmem:[%s14680_s14 + $0x4f8] sm:$0xff]  }
0x2edf   :  { %v8078_v2 = vpop.f32.mrb[104].mxu0 }
0x2ee0   :  { %v8085_v50 = vadd.f32 %v8078_v2, %v13654_v62  ;;  %v11921_v9 = vpop.f32.mrb[105].mxu0 }
0x2ee1   :  { %v8081_v7 = vpop.f32.mrb[106].mxu0 }
0x2ee2   :  { %v14044_v3 = vadd.f32 %v10594_v48, %v8085_v50  ;;  %v8086_v30 = vadd.f32 %v8081_v7, %v13657_v10  ;;  %v11922_v4 = vpop.f32.mrb[107].mxu0  ;;  %v10598_v50 = vld [vmem:[%s14677_s11 + $0x1] ss:$0 sm:$0xff]  ;;  %v10617_v7 = vld [vmem:[%s14678_s12 + $0x190] sm:$0xff] }
0x2ee3   :  { %v10618_v4 = vld [vmem:[%s14678_s12 + $0x198] sm:$0xff] }
0x2ee4   :  { %v14047_v35 = vadd.f32 %v10594_v48, %v8086_v30  ;;  %v8101_v47 = vsel %vm192_vm1, %v14044_v3, 0.0  ;;  %v10625_v30 = vld [vmem:[%s14678_s12 + $0x1d0] sm:$0xff] }
0x2ee5   :  { %8102 = vadd.xlane.f32.xlu0 %v8101_v47  ;;  %v10626_v47 = vld [vmem:[%s14678_s12 + $0x1d8] sm:$0xff] }
0x2ee6   :  { %v8104_v27 = vsel %vm192_vm1, %v14047_v35, 0.0 }
0x2ee7   :  { %8105 = vadd.xlane.f32.xlu1 %v8104_v27 }
0x2f72   :  { %v8103_v32 = vpop.xlane.xlu0 %8102 }
0x2f73   :  { %v8107_v41 = vmul.f32 0.03125, %v8103_v32 }
0x2f74   :  { %v8106_v62 = vpop.xlane.xlu1 %8105 }
0x2f75   :  { %v8109_v5 = vsub.f32 %v14044_v3, %v8107_v41  ;;  %v8108_v63 = vmul.f32 0.03125, %v8106_v62  ;;  %v10654_v62 = vcombine.high %v10617_v7, %v10625_v30 }
0x2f77   :  { %v8110_v6 = vsub.f32 %v14047_v35, %v8108_v63  ;;  %v8111_v10 = vmul.f32 %v8109_v5, %v8109_v5  ;;  %v10603_v63 = vld [vmem:[%s14678_s12 + $0x120] sm:$0xff] }
0x2f79   :  { %v8113_v8 = vsel %vm192_vm1, %v8111_v10, 0.0  ;;  %v8112_v12 = vmul.f32 %v8110_v6, %v8110_v6  ;;  %v10604_v10 = vld [vmem:[%s14678_s12 + $0x128] sm:$0xff] }
0x2f7a   :  { %8114 = vadd.xlane.f32.xlu0 %v8113_v8  ;;  %v10612_v8 = vld [vmem:[%s14678_s12 + $0x168] sm:$0xff] }
0x2f7b   :  { %v8116_v15 = vsel %vm192_vm1, %v8112_v12, 0.0  ;;  %v10653_v12 = vcombine.low %v10617_v7, %v10625_v30  ;;  %v10644_v19 = vcombine.high %v10604_v10, %v10612_v8  ;;  %v10643_v23 = vcombine.low %v10604_v10, %v10612_v8  ;;  %v12199_v7 = vld [vmem:[%s14680_s14 + $0x490] sm:$0xff]   ;;  %v12200_v30 = vld [vmem:[%s14680_s14 + $0x458] sm:$0xff]   ;;  %v12210_v10 = vld [vmem:[%s14680_s14 + $0x428] sm:$0xff]  }
0x2f7c   :  { %v12211_v8 = vld [vmem:[%s14680_s14 + $0x4a8] sm:$0xff]  }
0x2f7e   :  { %8117 = vadd.xlane.f32.xlu0 %v8116_v15  ;;  %v10655_v15 = vcombine.low %v10618_v4, %v10626_v47 }
0x3007   :  { %v8115_v36 = vpop.xlane.xlu0 %8114 }
0x3008   :  { %v8119_v22 = vmul.f32 0.03125, %v8115_v36 }
0x300a   :  { %v8121_v57 = vadd.f32 1e-05, %v8119_v22  ;;  %v10664_v22 = vcombine.high %v10622_v54, %v10630_v56 }
0x300b   :  { %v8118_v60 = vpop.xlane.xlu0 %8117 }
0x300c   :  { %12456 = vrsqrt.f32 %v8121_v57  ;;  %v8120_v0 = vmul.f32 0.03125, %v8118_v60  ;;  %v10663_v60 = vcombine.low %v10622_v54, %v10630_v56 }
0x300e   :  { %v8122_v11 = vadd.f32 1e-05, %v8120_v0  ;;  %v12188_v0 = vld [vmem:[%s14680_s14 + $0x440] sm:$0xff]  }
0x3010   :  { %12458 = vrsqrt.f32 %v8122_v11  ;;  %v12189_v11 = vld [vmem:[%s14680_s14 + $0x4c0] sm:$0xff]  }
0x3016   :  { %v12457_v55 = vpop.eup %12456 }
0x3017   :  { %v8125_v16 = vmul.f32 %v12457_v55, %v8109_v5  ;;  %v10656_v5 = vcombine.high %v10618_v4, %v10626_v47  ;;  %v12190_v55 = vld [vmem:[%s14680_s14 + $0x400] sm:$0xff]   ;;  %v12201_v4 = vld [vmem:[%s14680_s14 + $0x4d8] sm:$0xff]  }
0x3018   :  { %v12202_v47 = vld [vmem:[%s14680_s14 + $0x418] sm:$0xff]  }
0x3019   :  { %v8133_v2 = vmul.f32 %v10597_v58, %v8125_v16  ;;  %v12191_v16 = vld [vmem:[%s14680_s14 + $0x480] sm:$0xff]  }
0x301a   :  { %v12459_v61 = vpop.eup %12458 }
0x301b   :  { %v8126_v48 = vmul.f32 %v12459_v61, %v8110_v6  ;;  %v8141_v27 = vadd.f32 %v10598_v50, %v8133_v2  ;;  %v10611_v6 = vld [vmem:[%s14678_s12 + $0x160] sm:$0xff]  ;;  %v12194_v61 = vld [vmem:[%s14680_s14 + $0x408] sm:$0xff]  }
0x301c   :  { %v10642_v53 = vcombine.high %v10603_v63, %v10611_v6  ;;  %v10641_v59 = vcombine.low %v10603_v63, %v10611_v6  ;;  %v12195_v2 = vld [vmem:[%s14680_s14 + $0x488] sm:$0xff]  }
0x301d   :  { %v8134_v9 = vmul.f32 %v10597_v58, %v8126_v48  ;;  %v12192_v58 = vld [vmem:[%s14680_s14 + $0x448] sm:$0xff]   ;;  %v12196_v48 = vld [vmem:[%s14680_s14 + $0x450] sm:$0xff]  }
0x301e   :  { %v12208_v63 = vld [vmem:[%s14680_s14 + $0x468] sm:$0xff]  }
0x301f   :  { %v8142_v32 = vadd.f32 %v10598_v50, %v8134_v9  ;;  %v12197_v50 = vld [vmem:[%s14680_s14 + $0x4d0] sm:$0xff]   ;;  %v12209_v6 = vld [vmem:[%s14680_s14 + $0x4e8] sm:$0xff]  }
0x3020   :  { %v12198_v9 = vld [vmem:[%s14680_s14 + $0x410] sm:$0xff]  }
0x3021   :  { %v14111_v41 = vpack.c.bf16 %v8142_v32, %v8141_v27  ;;  %v12203_v27 = vld [vmem:[%s14680_s14 + $0x498] sm:$0xff]   ;;  %v12204_v32 = vld [vmem:[%s14680_s14 + $0x460] sm:$0xff]  }
0x3023   :  { %10665 = vmatmul.mubr.msk.bf16.vlgmr.msra.gmra.mrb[104].mxu1 %vm192_vm1, %v14111_v41  ;;  %10666 = vmatmul.mubr.msk.bf16.vlgmr.msra.gmra.mrb[108].mxu0 %vm192_vm1, %v14111_v41 }
0x3024   :  { %8512 = vmatpush1.bf16.msra.mxu1 %v10637_v45  ;;  %8555 = vmatpush1.bf16.msra.mxu0 %v10639_v25  ;;  %v10629_v45 = vld [vmem:[%s14678_s12 + $0x1f0] sm:$0xff]  ;;  %v10645_v25 = vcombine.low %v10605_v24, %v10613_v44 }
0x3025   :  { %8513 = vmatprep.subr.bf16.mxu1 %v10654_v62  ;;  %8556 = vmatprep.subr.bf16.mxu0 %v10656_v5  ;;  %v10662_v36 = vcombine.high %v10621_v52, %v10629_v45  ;;  %v10661_v57 = vcombine.low %v10621_v52, %v10629_v45  ;;  %v12206_v62 = vld [vmem:[%s14680_s14 + $0x420] sm:$0xff]  }
0x3026   :  { %8543 = vmatprep.mubr.bf16.mxu1 %v12517_v46  ;;  %8586 = vmatprep.mubr.bf16.mxu0 %v12517_v46  ;;  %v12207_v5 = vld [vmem:[%s14680_s14 + $0x4a0] sm:$0xff]  }
0x3028   :  { %8514 = vmatpush1.bf16.msra.mxu1 %v10653_v12  ;;  %8557 = vmatpush1.bf16.msra.mxu0 %v10655_v15  ;;  %v12212_v12 = vld [vmem:[%s14680_s14 + $0x470] sm:$0xff]  }
0x3029   :  { %8597 = vmatprep.subr.bf16.mxu1 %v10642_v53  ;;  %8640 = vmatprep.subr.bf16.mxu0 %v10644_v19  ;;  %v12213_v15 = vld [vmem:[%s14680_s14 + $0x4f0] sm:$0xff]  }
0x302a   :  { %v12214_v53 = vld [vmem:[%s14680_s14 + $0x430] sm:$0xff]  }
0x302b   :  { %10667 = vmatmul.mubr.msk.bf16.vlgmr.msra.gmra.mrb[108].mxu1 %vm192_vm1, %v14111_v41  ;;  %10668 = vmatmul.mubr.msk.bf16.vlgmr.msra.gmra.mrb[112].mxu0 %vm192_vm1, %v14111_v41  ;;  %v12215_v19 = vld [vmem:[%s14680_s14 + $0x4b0] sm:$0xff]  }
0x302c   :  { %8598 = vmatpush1.bf16.msra.mxu1 %v10641_v59  ;;  %8641 = vmatpush1.bf16.msra.mxu0 %v10643_v23  ;;  %v12220_v59 = vld [vmem:[%s14680_s14 + $0x540] sm:$0xff]  }
0x302d   :  { %8599 = vmatprep.subr.bf16.mxu1 %v10658_v18  ;;  %8642 = vmatprep.subr.bf16.mxu0 %v10660_v31  ;;  %v12221_v23 = vld [vmem:[%s14680_s14 + $0x5c0] sm:$0xff]   ;;  %v10631_v18 = vld [vmem:[%s14679_s13 + $0x10] sm:$0xff] }
0x302e   :  { %8629 = vmatprep.mubr.bf16.mxu1 %v12517_v46  ;;  %8672 = vmatprep.mubr.bf16.mxu0 %v12517_v46  ;;  %v8185_v31 = vrot.slane %v10631_v18, %v12636_v13  ;;  %v8193_v24 = vrot.slane %v10631_v18, %v13280_v1  ;;  %v8189_v44 = vrot.slane %v10631_v18, %v13286_v20 }
0x302f   :  { %v8197_v33 = vrot.slane %v10631_v18, %v13289_v21 }
0x3030   :  { %8600 = vmatpush1.bf16.msra.mxu1 %v10657_v40  ;;  %8643 = vmatpush1.bf16.msra.mxu0 %v10659_v42 }
0x3031   :  { %8683 = vmatprep.subr.bf16.mxu1 %v10646_v43  ;;  %8726 = vmatprep.subr.bf16.mxu0 %v10648_v49 }
0x3033   :  { %10669 = vmatmul.mubr.msk.bf16.vlgmr.msra.gmra.mrb[112].mxu1 %vm192_vm1, %v14111_v41  ;;  %10670 = vmatmul.mubr.msk.bf16.vlgmr.msra.gmra.mrb[116].mxu0 %vm192_vm1, %v14111_v41 }
0x3034   :  { %8684 = vmatpush1.bf16.msra.mxu1 %v10645_v25  ;;  %8727 = vmatpush1.bf16.msra.mxu0 %v10647_v39 }
0x3035   :  { %8685 = vmatprep.subr.bf16.mxu1 %v10662_v36  ;;  %8728 = vmatprep.subr.bf16.mxu0 %v10664_v22 }
0x3036   :  { %8715 = vmatprep.mubr.bf16.mxu1 %v12517_v46  ;;  %8758 = vmatprep.mubr.bf16.mxu0 %v12517_v46  ;;  %v12193_v46 = vld [vmem:[%s14680_s14 + $0x4c8] sm:$0xff]  }
0x3038   :  { %8686 = vmatpush1.bf16.msra.mxu1 %v10661_v57  ;;  %8729 = vmatpush1.bf16.msra.mxu0 %v10663_v60  ;;  %v8201_v60 = vrot.slane %v10631_v18, %v13296_v28 }
0x3039   :  { %11382 = vmatprep.subr.bf16.mxu1 %v12188_v0  ;;  %11404 = vmatprep.subr.bf16.mxu0 %v12189_v11  ;;  %v8209_v0 = vrot.slane %v10631_v18, %v13299_v29 }
0x303b   :  { %10671 = vmatmul.mubr.msk.bf16.vlgmr.msra.gmra.mrb[116].mxu1 %vm192_vm1, %v14111_v41  ;;  %10672 = vmatmul.mubr.msk.bf16.vlgmr.msra.gmra.mrb[120].mxu0 %vm192_vm1, %v14111_v41  ;;  %v12205_v41 = vld [vmem:[%s14680_s14 + $0x4e0] sm:$0xff]  }
0x303c   :  { %11383 = vmatpush3.bf16.msra.mxu1 %v12190_v55  ;;  %11405 = vmatpush3.bf16.msra.mxu0 %v12191_v16  ;;  %v8205_v16 = vrot.slane %v10631_v18, %v13302_v34 }
0x303d   :  { %11384 = vmatprep.subr.bf16.mxu1 %v12192_v58  ;;  %11406 = vmatprep.subr.bf16.mxu0 %v12193_v46  ;;  %v8213_v58 = vrot.slane %v10631_v18, %v13305_v37 }
0x3040   :  { %11385 = vmatpush3.bf16.msra.mxu1 %v12194_v61  ;;  %11407 = vmatpush3.bf16.msra.mxu0 %v12195_v2 }
0x3041   :  { %11386 = vmatprep.subr.bf16.mxu1 %v12196_v48  ;;  %11408 = vmatprep.subr.bf16.mxu0 %v12197_v50 }
0x3044   :  { %11387 = vmatpush3.bf16.msra.mxu1 %v12198_v9  ;;  %11409 = vmatpush3.bf16.msra.mxu0 %v12199_v7 }
0x3045   :  { %11388 = vmatprep.subr.bf16.mxu1 %v12200_v30  ;;  %11410 = vmatprep.subr.bf16.mxu0 %v12201_v4  ;;  %v14299_v4 = vld [vmem:[%s14679_s13 + $0x18] sm:$0xff] }
0x3048   :  { %11389 = vmatpush3.bf16.msra.mxu1 %v12202_v47  ;;  %11411 = vmatpush3.bf16.msra.mxu0 %v12203_v27 }
0x3049   :  { %11390 = vmatprep.subr.bf16.mxu1 %v12204_v32  ;;  %11412 = vmatprep.subr.bf16.mxu0 %v12205_v41 }
0x304c   :  { %11391 = vmatpush3.bf16.msra.mxu1 %v12206_v62  ;;  %11413 = vmatpush3.bf16.msra.mxu0 %v12207_v5 }
0x304d   :  { %11392 = vmatprep.subr.bf16.mxu1 %v12208_v63  ;;  %11414 = vmatprep.subr.bf16.mxu0 %v12209_v6  ;;  %v12222_v63 = vld [vmem:[%s14680_s14 + $0x500] sm:$0xff]  }
0x304e   :  { %v12223_v6 = vld [vmem:[%s14680_s14 + $0x580] sm:$0xff]  }
0x3050   :  { %11393 = vmatpush3.bf16.msra.mxu1 %v12210_v10  ;;  %11415 = vmatpush3.bf16.msra.mxu0 %v12211_v8 }
0x3051   :  { %11394 = vmatprep.subr.bf16.mxu1 %v12212_v12  ;;  %11416 = vmatprep.subr.bf16.mxu0 %v12213_v15 }
0x3054   :  { %11395 = vmatpush3.bf16.msra.mxu1 %v12214_v53  ;;  %11417 = vmatpush3.bf16.msra.mxu0 %v12215_v19  ;;  %v12224_v53 = vld [vmem:[%s14680_s14 + $0x548] sm:$0xff]  }
0x3055   :  { %11396 = vmatprep.subr.bf16.mxu1 %v12216_v51  ;;  %11418 = vmatprep.subr.bf16.mxu0 %v12217_v17  ;;  %v12225_v19 = vld [vmem:[%s14680_s14 + $0x5c8] sm:$0xff]   ;;  %v8217_v51 = vrot.slane %v14299_v4, %v12636_v13 }
0x3058   :  { %11397 = vmatpush3.bf16.msra.mxu1 %v12218_v14  ;;  %11419 = vmatpush3.bf16.msra.mxu0 %v12219_v38 }
0x3059   :  { %11426 = vmatprep.subr.bf16.mxu1 %v12220_v59  ;;  %11448 = vmatprep.subr.bf16.mxu0 %v12221_v23  ;;  %v8225_v23 = vrot.slane %v14299_v4, %v13280_v1  ;;  %v12227_v1 = vld [vmem:[%s14680_s14 + $0x588] sm:$0xff]  }
0x30f6   :  { %v8459_v26 = vpop.f32.mrb[104].mxu1  ;;  %v8502_v40 = vpop.f32.mrb[108].mxu0 }
0x30f7   :  { %v8460_v42 = vadd.f32 %v8459_v26, %v8185_v31  ;;  %v8503_v43 = vadd.f32 %v8502_v40, %v8193_v24  ;;  %v8461_v49 = vpop.f32.mrb[105].mxu1  ;;  %v8504_v52 = vpop.f32.mrb[109].mxu0  ;;  %v12226_v40 = vld [vmem:[%s14680_s14 + $0x508] sm:$0xff]  }
0x30f8   :  { %v8462_v45 = vadd.f32 %v8461_v49, %v8189_v44  ;;  %v8505_v54 = vadd.f32 %v8504_v52, %v8197_v33  ;;  %v8463_v56 = vpop.f32.mrb[106].mxu1  ;;  %v8506_v25 = vpop.f32.mrb[110].mxu0 }
0x30f9   :  { %v8464_v39 = vadd.f32 %v8463_v56, %v8185_v31  ;;  %v8507_v36 = vadd.f32 %v8506_v25, %v8193_v24  ;;  %v8465_v22 = vpop.f32.mrb[107].mxu1  ;;  %v8508_v57 = vpop.f32.mrb[111].mxu0  ;;  %v8769_v46 = vmax.f32 %v8460_v42, 0.0  ;;  %v8771_v61 = vmax.f32 %v8503_v43, 0.0 }
0x30fa   :  { %v8466_v11 = vadd.f32 %v8465_v22, %v8189_v44  ;;  %v8509_v55 = vadd.f32 %v8508_v57, %v8197_v33  ;;  %v8770_v50 = vmax.f32 %v8462_v45, 0.0  ;;  %v8772_v9 = vmax.f32 %v8505_v54, 0.0  ;;  %v12229_v54 = vld [vmem:[%s14680_s14 + $0x5d0] sm:$0xff]  }
0x30fb   :  { %v8785_v2 = vmax.f32 %v8464_v39, 0.0  ;;  %v8787_v48 = vmax.f32 %v8507_v36, 0.0  ;;  %v8221_v33 = vrot.slane %v14299_v4, %v13286_v20  ;;  %v8229_v42 = vrot.slane %v14299_v4, %v13289_v21  ;;  %v12228_v20 = vld [vmem:[%s14680_s14 + $0x550] sm:$0xff]  }
0x30fc   :  { %v8786_v7 = vmax.f32 %v8466_v11, 0.0  ;;  %v8788_v30 = vmax.f32 %v8509_v55, 0.0  ;;  %v12230_v55 = vld [vmem:[%s14680_s14 + $0x510] sm:$0xff]  }
0x30fd   :  { %v8801_v47 = vpack.c.bf16 %v8785_v2, %v8769_v46  ;;  %v8803_v27 = vpack.c.bf16 %v8787_v48, %v8771_v61  ;;  %v12232_v48 = vld [vmem:[%s14680_s14 + $0x558] sm:$0xff]  }
0x30fe   :  { %v8802_v32 = vpack.c.bf16 %v8786_v7, %v8770_v50  ;;  %v8804_v41 = vpack.c.bf16 %v8788_v30, %v8772_v9  ;;  %v8545_v62 = vpop.f32.mrb[108].mxu1  ;;  %v8588_v5 = vpop.f32.mrb[112].mxu0  ;;  %v12233_v50 = vld [vmem:[%s14680_s14 + $0x5d8] sm:$0xff]  }
0x30ff   :  { %v8546_v10 = vadd.f32 %v8545_v62, %v8201_v60  ;;  %v8589_v8 = vadd.f32 %v8588_v5, %v8209_v0  ;;  %v8547_v12 = vpop.f32.mrb[109].mxu1  ;;  %v8590_v15 = vpop.f32.mrb[113].mxu0 }
0x3100   :  { %v8548_v17 = vadd.f32 %v8547_v12, %v8205_v16  ;;  %v8591_v14 = vadd.f32 %v8590_v15, %v8213_v58  ;;  %v8549_v38 = vpop.f32.mrb[110].mxu1  ;;  %v8592_v59 = vpop.f32.mrb[114].mxu0  ;;  %9882 = vmatprep.mubr.bf16.mxu1 %v8802_v32  ;;  %9923 = vmatprep.mubr.bf16.mxu0 %v8804_v41  ;;  %v12234_v12 = vld [vmem:[%s14680_s14 + $0x518] sm:$0xff]   ;;  %v8245_v15 = vrot.slane %v14299_v4, %v13305_v37 }
0x3101   :  { %v8550_v18 = vadd.f32 %v8549_v38, %v8201_v60  ;;  %v8593_v31 = vadd.f32 %v8592_v59, %v8209_v0  ;;  %v8551_v24 = vpop.f32.mrb[111].mxu1  ;;  %v8594_v44 = vpop.f32.mrb[115].mxu0  ;;  %9883 = vmatmul.mubr.bf16.vlgmr.msra.gmra.mrb[120].mxu1 %v8801_v47  ;;  %9924 = vmatmul.mubr.bf16.vlgmr.msra.gmra.mrb[124].mxu0 %v8803_v27  ;;  %v8773_v43 = vmax.f32 %v8546_v10, 0.0  ;;  %v8775_v49 = vmax.f32 %v8589_v8, 0.0 }
0x3102   :  { %v8552_v26 = vadd.f32 %v8551_v24, %v8205_v16  ;;  %v8595_v13 = vadd.f32 %v8594_v44, %v8213_v58  ;;  %11427 = vmatpush3.bf16.msra.mxu1 %v12222_v63  ;;  %11449 = vmatpush3.bf16.msra.mxu0 %v12223_v6  ;;  %v8774_v56 = vmax.f32 %v8548_v17, 0.0  ;;  %v8776_v25 = vmax.f32 %v8591_v14, 0.0  ;;  %v12231_v16 = vld [vmem:[%s14680_s14 + $0x590] sm:$0xff]   ;;  %v12237_v17 = vld [vmem:[%s14680_s14 + $0x5e0] sm:$0xff]  }
0x3103   :  { %v8789_v52 = vmax.f32 %v8550_v18, 0.0  ;;  %v8791_v45 = vmax.f32 %v8593_v31, 0.0  ;;  %11428 = vmatprep.subr.bf16.mxu1 %v12224_v53  ;;  %11450 = vmatprep.subr.bf16.mxu0 %v12225_v19  ;;  %v8233_v27 = vrot.slane %v14299_v4, %v13296_v28  ;;  %v8241_v63 = vrot.slane %v14299_v4, %v13299_v29  ;;  %v12235_v28 = vld [vmem:[%s14680_s14 + $0x598] sm:$0xff]  }
0x3104   :  { %v8790_v39 = vmax.f32 %v8552_v26, 0.0  ;;  %v8792_v36 = vmax.f32 %v8595_v13, 0.0  ;;  %v8237_v6 = vrot.slane %v14299_v4, %v13302_v34  ;;  %v12236_v34 = vld [vmem:[%s14680_s14 + $0x560] sm:$0xff]  }
0x3105   :  { %v14333_v22 = vpack.c.bf16 %v8789_v52, %v8773_v43  ;;  %v14335_v21 = vpack.c.bf16 %v8791_v45, %v8775_v49  ;;  %v12239_v26 = vld [vmem:[%s14680_s14 + $0x5a0] sm:$0xff]   ;;  %v12240_v43 = vld [vmem:[%s14680_s14 + $0x568] sm:$0xff]  }
0x3106   :  { %v8806_v57 = vpack.c.bf16 %v8790_v39, %v8774_v56  ;;  %v8808_v60 = vpack.c.bf16 %v8792_v36, %v8776_v25  ;;  %11429 = vmatpush3.bf16.msra.mxu1 %v12226_v40  ;;  %11451 = vmatpush3.bf16.msra.mxu0 %v12227_v1  ;;  %v8631_v0 = vpop.f32.mrb[112].mxu1  ;;  %v8674_v11 = vpop.f32.mrb[116].mxu0  ;;  %v12241_v49 = vld [vmem:[%s14680_s14 + $0x5e8] sm:$0xff]  }
0x3107   :  { %v8632_v58 = vadd.f32 %v8631_v0, %v8217_v51  ;;  %v8675_v46 = vadd.f32 %v8674_v11, %v8225_v23  ;;  %v8633_v61 = vpop.f32.mrb[113].mxu1  ;;  %v8676_v2 = vpop.f32.mrb[117].mxu0  ;;  %11430 = vmatprep.subr.bf16.mxu1 %v12228_v20  ;;  %11452 = vmatprep.subr.bf16.mxu0 %v12229_v54  ;;  %v12242_v0 = vld [vmem:[%s14680_s14 + $0x528] sm:$0xff]  }
0x3108   :  { %v8634_v9 = vadd.f32 %v8633_v61, %v8221_v33  ;;  %v8677_v7 = vadd.f32 %v8676_v2, %v8229_v42  ;;  %v8635_v30 = vpop.f32.mrb[114].mxu1  ;;  %v8678_v47 = vpop.f32.mrb[118].mxu0  ;;  %9964 = vmatprep.mubr.bf16.mxu1 %v8806_v57  ;;  %10005 = vmatprep.mubr.bf16.mxu0 %v8808_v60  ;;  %v12243_v11 = vld [vmem:[%s14680_s14 + $0x5a8] sm:$0xff]   ;;  %v12244_v61 = vld [vmem:[%s14680_s14 + $0x570] sm:$0xff]  }
0x3109   :  { %v8636_v32 = vadd.f32 %v8635_v30, %v8217_v51  ;;  %v8679_v41 = vadd.f32 %v8678_v47, %v8225_v23  ;;  %v8637_v62 = vpop.f32.mrb[115].mxu1  ;;  %v8680_v5 = vpop.f32.mrb[119].mxu0  ;;  %v8777_v53 = vmax.f32 %v8632_v58, 0.0  ;;  %v8779_v29 = vmax.f32 %v8675_v46, 0.0  ;;  %v12245_v2 = vld [vmem:[%s14680_s14 + $0x5f0] sm:$0xff]  }
0x310a   :  { %v8638_v10 = vadd.f32 %v8637_v62, %v8221_v33  ;;  %v8681_v8 = vadd.f32 %v8680_v5, %v8229_v42  ;;  %11431 = vmatpush3.bf16.msra.mxu1 %v12230_v55  ;;  %11453 = vmatpush3.bf16.msra.mxu0 %v12231_v16  ;;  %v8778_v14 = vmax.f32 %v8634_v9, 0.0  ;;  %v8780_v38 = vmax.f32 %v8677_v7, 0.0  ;;  %v12238_v33 = vld [vmem:[%s14680_s14 + $0x520] sm:$0xff]   ;;  %v12247_v62 = vld [vmem:[%s14680_s14 + $0x5b0] sm:$0xff]   ;;  %v12248_v5 = vld [vmem:[%s14680_s14 + $0x578] sm:$0xff]  }
0x310b   :  { %v8793_v19 = vmax.f32 %v8636_v32, 0.0  ;;  %v8795_v51 = vmax.f32 %v8679_v41, 0.0  ;;  %11432 = vmatprep.subr.bf16.mxu1 %v12232_v48  ;;  %11454 = vmatprep.subr.bf16.mxu0 %v12233_v50  ;;  %v12246_v41 = vld [vmem:[%s14680_s14 + $0x530] sm:$0xff]  }
0x310c   :  { %v8794_v59 = vmax.f32 %v8638_v10, 0.0  ;;  %v8796_v23 = vmax.f32 %v8681_v8, 0.0  ;;  %v12251_v10 = vld [vmem:[%s14680_s14 + $0x5b8] sm:$0xff]   ;;  %v12252_v8 = vld [vmem:[%s14680_s14 + $0x640] sm:$0xff]  }
0x310d   :  { %v14369_v18 = vpack.c.bf16 %v8793_v19, %v8777_v53  ;;  %v14371_v37 = vpack.c.bf16 %v8795_v51, %v8779_v29  ;;  %v12256_v53 = vld [vmem:[%s14680_s14 + $0x648] sm:$0xff]  }
0x310e   :  { %v14373_v4 = vpack.c.bf16 %v8794_v59, %v8778_v14  ;;  %v14375_v31 = vpack.c.bf16 %v8796_v23, %v8780_v38  ;;  %11433 = vmatpush3.bf16.msra.mxu1 %v12234_v12  ;;  %11455 = vmatpush3.bf16.msra.mxu0 %v12235_v28  ;;  %v8717_v24 = vpop.f32.mrb[116].mxu1  ;;  %v8760_v44 = vpop.f32.mrb[120].mxu0  ;;  %v12253_v12 = vld [vmem:[%s14680_s14 + $0x6c0] sm:$0xff]   ;;  %v12257_v29 = vld [vmem:[%s14680_s14 + $0x6c8] sm:$0xff]   ;;  %v12264_v14 = vld [vmem:[%s14680_s14 + $0x658] sm:$0xff]  }
0x310f   :  { %v8718_v13 = vadd.f32 %v8717_v24, %v8233_v27  ;;  %v8761_v40 = vadd.f32 %v8760_v44, %v8241_v63  ;;  %v8719_v1 = vpop.f32.mrb[117].mxu1  ;;  %v8762_v42 = vpop.f32.mrb[121].mxu0  ;;  %11434 = vmatprep.subr.bf16.mxu1 %v12236_v34  ;;  %11456 = vmatprep.subr.bf16.mxu0 %v12237_v17  ;;  %v12254_v28 = vld [vmem:[%s14680_s14 + $0x600] sm:$0xff]   ;;  %v12258_v19 = vld [vmem:[%s14680_s14 + $0x608] sm:$0xff]   ;;  %v12262_v34 = vld [vmem:[%s14680_s14 + $0x610] sm:$0xff]  }
0x3110   :  { %v8720_v52 = vadd.f32 %v8719_v1, %v8237_v6  ;;  %v8763_v45 = vadd.f32 %v8762_v42, %v8245_v15  ;;  %v8721_v20 = vpop.f32.mrb[118].mxu1  ;;  %v8764_v54 = vpop.f32.mrb[122].mxu0  ;;  %v12259_v51 = vld [vmem:[%s14680_s14 + $0x688] sm:$0xff]   ;;  %v12263_v17 = vld [vmem:[%s14680_s14 + $0x690] sm:$0xff]   ;;  %v12265_v38 = vld [vmem:[%s14680_s14 + $0x6d8] sm:$0xff]  }
0x3111   :  { %v8722_v56 = vadd.f32 %v8721_v20, %v8233_v27  ;;  %v8765_v25 = vadd.f32 %v8764_v54, %v8241_v63  ;;  %v8723_v39 = vpop.f32.mrb[119].mxu1  ;;  %v8766_v36 = vpop.f32.mrb[123].mxu0  ;;  %v8781_v55 = vmax.f32 %v8718_v13, 0.0  ;;  %v8783_v16 = vmax.f32 %v8761_v40, 0.0  ;;  %v12249_v63 = vld [vmem:[%s14680_s14 + $0x5f8] sm:$0xff]   ;;  %v12270_v24 = vld [vmem:[%s14680_s14 + $0x620] sm:$0xff]  }
0x3112   :  { %v8724_v57 = vadd.f32 %v8723_v39, %v8237_v6  ;;  %v8767_v60 = vadd.f32 %v8766_v36, %v8245_v15  ;;  %11435 = vmatpush3.bf16.msra.mxu1 %v12238_v33  ;;  %11457 = vmatpush3.bf16.msra.mxu0 %v12239_v26  ;;  %v8782_v48 = vmax.f32 %v8720_v52, 0.0  ;;  %v8784_v50 = vmax.f32 %v8763_v45, 0.0  ;;  %v12250_v6 = vld [vmem:[%s14680_s14 + $0x538] sm:$0xff]   ;;  %v12255_v15 = vld [vmem:[%s14680_s14 + $0x680] sm:$0xff]   ;;  %v12272_v33 = vld [vmem:[%s14680_s14 + $0x668] sm:$0xff]  }
0x3113   :  { %v8797_v58 = vmax.f32 %v8722_v56, 0.0  ;;  %v8799_v46 = vmax.f32 %v8765_v25, 0.0  ;;  %11436 = vmatprep.subr.bf16.mxu1 %v12240_v43  ;;  %11458 = vmatprep.subr.bf16.mxu0 %v12241_v49  ;;  %v12266_v59 = vld [vmem:[%s14680_s14 + $0x618] sm:$0xff]   ;;  %v12271_v44 = vld [vmem:[%s14680_s14 + $0x6a0] sm:$0xff]   ;;  %v12273_v26 = vld [vmem:[%s14680_s14 + $0x6e8] sm:$0xff]  }
0x3114   :  { %v8798_v9 = vmax.f32 %v8724_v57, 0.0  ;;  %v8800_v7 = vmax.f32 %v8767_v60, 0.0  ;;  %v12267_v23 = vld [vmem:[%s14680_s14 + $0x698] sm:$0xff]   ;;  %v12274_v13 = vld [vmem:[%s14680_s14 + $0x628] sm:$0xff]   ;;  %v12276_v1 = vld [vmem:[%s14680_s14 + $0x670] sm:$0xff]  }
0x3115   :  { %v14401_v30 = vpack.c.bf16 %v8797_v58, %v8781_v55  ;;  %v14403_v47 = vpack.c.bf16 %v8799_v46, %v8783_v16  ;;  %v12275_v40 = vld [vmem:[%s14680_s14 + $0x6a8] sm:$0xff]   ;;  %v12277_v42 = vld [vmem:[%s14680_s14 + $0x6f0] sm:$0xff]   ;;  %v12280_v52 = vld [vmem:[%s14680_s14 + $0x678] sm:$0xff]  }
0x3116   :  { %v14405_v27 = vpack.c.bf16 %v8798_v9, %v8782_v48  ;;  %v14407_v32 = vpack.c.bf16 %v8800_v7, %v8784_v50  ;;  %11437 = vmatpush3.bf16.msra.mxu1 %v12242_v0  ;;  %11459 = vmatpush3.bf16.msra.mxu0 %v12243_v11  ;;  %v12278_v43 = vld [vmem:[%s14680_s14 + $0x630] sm:$0xff]   ;;  %v12281_v45 = vld [vmem:[%s14680_s14 + $0x6f8] sm:$0xff]   ;;  %v12284_v56 = vld [vmem:[%s14680_s14 + $0x740] sm:$0xff]  }
0x3117   :  { %11438 = vmatprep.subr.bf16.mxu1 %v12244_v61  ;;  %11460 = vmatprep.subr.bf16.mxu0 %v12245_v2  ;;  %v12279_v49 = vld [vmem:[%s14680_s14 + $0x6b0] sm:$0xff]   ;;  %v12282_v20 = vld [vmem:[%s14680_s14 + $0x638] sm:$0xff]   ;;  %v12285_v25 = vld [vmem:[%s14680_s14 + $0x7c0] sm:$0xff]  }
0x3118   :  { %v12283_v54 = vld [vmem:[%s14680_s14 + $0x6b8] sm:$0xff]   ;;  %v12286_v39 = vld [vmem:[%s14680_s14 + $0x700] sm:$0xff]   ;;  %v12288_v57 = vld [vmem:[%s14680_s14 + $0x748] sm:$0xff]  }
0x3119   :  { %v12287_v36 = vld [vmem:[%s14680_s14 + $0x780] sm:$0xff]   ;;  %v12289_v60 = vld [vmem:[%s14680_s14 + $0x7c8] sm:$0xff]   ;;  %v12294_v55 = vld [vmem:[%s14680_s14 + $0x710] sm:$0xff]  }
0x311a   :  { %11439 = vmatpush3.bf16.msra.mxu1 %v12246_v41  ;;  %11461 = vmatpush3.bf16.msra.mxu0 %v12247_v62  ;;  %v12290_v0 = vld [vmem:[%s14680_s14 + $0x708] sm:$0xff]   ;;  %v12295_v16 = vld [vmem:[%s14680_s14 + $0x790] sm:$0xff]   ;;  %v12296_v58 = vld [vmem:[%s14680_s14 + $0x758] sm:$0xff]  }
0x311b   :  { %11440 = vmatprep.subr.bf16.mxu1 %v12248_v5  ;;  %11462 = vmatprep.subr.bf16.mxu0 %v12249_v63  ;;  %v12291_v11 = vld [vmem:[%s14680_s14 + $0x788] sm:$0xff]   ;;  %v12297_v46 = vld [vmem:[%s14680_s14 + $0x7d8] sm:$0xff]   ;;  %v12300_v48 = vld [vmem:[%s14680_s14 + $0x760] sm:$0xff]  }
0x311c   :  { %v12298_v61 = vld [vmem:[%s14680_s14 + $0x718] sm:$0xff]   ;;  %v12301_v50 = vld [vmem:[%s14680_s14 + $0x7e0] sm:$0xff]   ;;  %v12306_v41 = vld [vmem:[%s14680_s14 + $0x728] sm:$0xff]  }
0x311d   :  { %v12299_v2 = vld [vmem:[%s14680_s14 + $0x798] sm:$0xff]   ;;  %v12302_v9 = vld [vmem:[%s14680_s14 + $0x720] sm:$0xff]   ;;  %v12307_v62 = vld [vmem:[%s14680_s14 + $0x7a8] sm:$0xff]  }
0x311e   :  { %11441 = vmatpush3.bf16.msra.mxu1 %v12250_v6  ;;  %11463 = vmatpush3.bf16.msra.mxu0 %v12251_v10  ;;  %v12303_v7 = vld [vmem:[%s14680_s14 + $0x7a0] sm:$0xff]   ;;  %v12308_v5 = vld [vmem:[%s14680_s14 + $0x770] sm:$0xff]  }
0x311f   :  { %11470 = vmatprep.subr.bf16.mxu1 %v12252_v8  ;;  %11492 = vmatprep.subr.bf16.mxu0 %v12253_v12  ;;  %v12309_v63 = vld [vmem:[%s14680_s14 + $0x7f0] sm:$0xff]   ;;  %v12312_v8 = vld [vmem:[%s14680_s14 + $0x778] sm:$0xff]  }
0x3120   :  { %v12310_v6 = vld [vmem:[%s14680_s14 + $0x730] sm:$0xff]   ;;  %v12313_v12 = vld [vmem:[%s14680_s14 + $0x7f8] sm:$0xff]  }
0x3121   :  { %9965 = vmatmul.mubr.bf16.vlgmr.msra.gmra.mrb[124].mxu1 %v14333_v22  ;;  %10006 = vmatmul.mubr.bf16.vlgmr.msra.gmra.mrb[128].mxu0 %v14335_v21  ;;  %v12260_v22 = vld [vmem:[%s14680_s14 + $0x650] sm:$0xff]  }
0x3122   :  { %11471 = vmatpush3.bf16.msra.mxu1 %v12254_v28  ;;  %10046 = vmatprep.mubr.bf16.mxu1 %v14373_v4  ;;  %v12261_v21 = vld [vmem:[%s14680_s14 + $0x6d0] sm:$0xff]   ;;  %v12268_v4 = vld [vmem:[%s14680_s14 + $0x660] sm:$0xff]   ;;  %v12314_v28 = vld [vmem:[%s14680_s14 + $0x738] sm:$0xff]  }
0x3123   :  { %11493 = vmatpush3.bf16.msra.mxu0 %v12255_v15  ;;  %10087 = vmatprep.mubr.bf16.mxu0 %v14375_v31  ;;  %v12269_v31 = vld [vmem:[%s14680_s14 + $0x6e0] sm:$0xff]   ;;  %v12311_v10 = vld [vmem:[%s14680_s14 + $0x7b0] sm:$0xff]   ;;  %v12315_v15 = vld [vmem:[%s14680_s14 + $0x7b8] sm:$0xff]  }
0x3124   :  { %11472 = vmatprep.subr.bf16.mxu1 %v12256_v53  ;;  %11494 = vmatprep.subr.bf16.mxu0 %v12257_v29  ;;  %v10180_v53 = vld [vmem:[%s14682_s16] sm:$0xff]  ;;  %v10181_v29 = vld [vmem:[%s14682_s16 + $0x8] sm:$0xff] }
0x3126   :  { %11473 = vmatpush3.bf16.msra.mxu1 %v12258_v19  ;;  %v11938_v19 = vpack.c.bf16 %v10181_v29, %v10180_v53 }
0x3127   :  { %11495 = vmatpush3.bf16.msra.mxu0 %v12259_v51  ;;  %11474 = vmatprep.subr.bf16.mxu1 %v12260_v22  ;;  %v10182_v51 = vld [vmem:[%s14682_s16 + $0x10] sm:$0xff] }
0x3128   :  { %11496 = vmatprep.subr.bf16.mxu0 %v12261_v21 }
0x312a   :  { %11475 = vmatpush3.bf16.msra.mxu1 %v12262_v34  ;;  %v10930_v34 = vld [vmem:[%s14681_s15 + $0x1] ss:$0 sm:$0xff] }
0x312b   :  { %11497 = vmatpush3.bf16.msra.mxu0 %v12263_v17  ;;  %11476 = vmatprep.subr.bf16.mxu1 %v12264_v14 }
0x312c   :  { %11498 = vmatprep.subr.bf16.mxu0 %v12265_v38 }
0x312e   :  { %11477 = vmatpush3.bf16.msra.mxu1 %v12266_v59 }
0x312f   :  { %11499 = vmatpush3.bf16.msra.mxu0 %v12267_v23  ;;  %11478 = vmatprep.subr.bf16.mxu1 %v12268_v4 }
0x3130   :  { %11500 = vmatprep.subr.bf16.mxu0 %v12269_v31 }
0x3132   :  { %11479 = vmatpush3.bf16.msra.mxu1 %v12270_v24 }
0x3133   :  { %11501 = vmatpush3.bf16.msra.mxu0 %v12271_v44  ;;  %11480 = vmatprep.subr.bf16.mxu1 %v12272_v33 }
0x3134   :  { %11502 = vmatprep.subr.bf16.mxu0 %v12273_v26 }
0x3136   :  { %11481 = vmatpush3.bf16.msra.mxu1 %v12274_v13 }
0x3137   :  { %11503 = vmatpush3.bf16.msra.mxu0 %v12275_v40  ;;  %11482 = vmatprep.subr.bf16.mxu1 %v12276_v1 }
0x3138   :  { %11504 = vmatprep.subr.bf16.mxu0 %v12277_v42 }
0x313a   :  { %11483 = vmatpush3.bf16.msra.mxu1 %v12278_v43 }
0x313b   :  { %11505 = vmatpush3.bf16.msra.mxu0 %v12279_v49  ;;  %11484 = vmatprep.subr.bf16.mxu1 %v12280_v52 }
0x313c   :  { %11506 = vmatprep.subr.bf16.mxu0 %v12281_v45 }
0x313e   :  { %11485 = vmatpush3.bf16.msra.mxu1 %v12282_v20 }
0x313f   :  { %11507 = vmatpush3.bf16.msra.mxu0 %v12283_v54  ;;  %11514 = vmatprep.subr.bf16.mxu1 %v12284_v56 }
0x3140   :  { %11536 = vmatprep.subr.bf16.mxu0 %v12285_v25 }
0x3141   :  { %10047 = vmatmul.mubr.bf16.vlgmr.msra.gmra.mrb[128].mxu1 %v14369_v18  ;;  %v12292_v18 = vld [vmem:[%s14680_s14 + $0x750] sm:$0xff]  }
0x3142   :  { %10088 = vmatmul.mubr.bf16.vlgmr.msra.gmra.mrb[132].mxu0 %v14371_v37  ;;  %11515 = vmatpush3.bf16.msra.mxu1 %v12286_v39  ;;  %v12293_v37 = vld [vmem:[%s14680_s14 + $0x7d0] sm:$0xff]  }
0x3143   :  { %10128 = vmatprep.mubr.bf16.mxu1 %v14405_v27  ;;  %11537 = vmatpush3.bf16.msra.mxu0 %v12287_v36  ;;  %v12304_v27 = vld [vmem:[%s14680_s14 + $0x768] sm:$0xff]  }
0x3144   :  { %10169 = vmatprep.mubr.bf16.mxu0 %v14407_v32  ;;  %11516 = vmatprep.subr.bf16.mxu1 %v12288_v57  ;;  %v12305_v32 = vld [vmem:[%s14680_s14 + $0x7e8] sm:$0xff]  }
0x3145   :  { %11538 = vmatprep.subr.bf16.mxu0 %v12289_v60 }
0x3146   :  { %11517 = vmatpush3.bf16.msra.mxu1 %v12290_v0 }
0x3147   :  { %11539 = vmatpush3.bf16.msra.mxu0 %v12291_v11  ;;  %11518 = vmatprep.subr.bf16.mxu1 %v12292_v18 }
0x3148   :  { %11540 = vmatprep.subr.bf16.mxu0 %v12293_v37 }
0x314a   :  { %11519 = vmatpush3.bf16.msra.mxu1 %v12294_v55 }
0x314b   :  { %11541 = vmatpush3.bf16.msra.mxu0 %v12295_v16  ;;  %11520 = vmatprep.subr.bf16.mxu1 %v12296_v58 }
0x314c   :  { %11542 = vmatprep.subr.bf16.mxu0 %v12297_v46 }
0x314e   :  { %11521 = vmatpush3.bf16.msra.mxu1 %v12298_v61 }
0x314f   :  { %11543 = vmatpush3.bf16.msra.mxu0 %v12299_v2  ;;  %11522 = vmatprep.subr.bf16.mxu1 %v12300_v48 }
0x3150   :  { %11544 = vmatprep.subr.bf16.mxu0 %v12301_v50 }
0x3152   :  { %11523 = vmatpush3.bf16.msra.mxu1 %v12302_v9 }
0x3153   :  { %11545 = vmatpush3.bf16.msra.mxu0 %v12303_v7  ;;  %11524 = vmatprep.subr.bf16.mxu1 %v12304_v27 }
0x3154   :  { %11546 = vmatprep.subr.bf16.mxu0 %v12305_v32 }
0x3156   :  { %11525 = vmatpush3.bf16.msra.mxu1 %v12306_v41 }
0x3157   :  { %11547 = vmatpush3.bf16.msra.mxu0 %v12307_v62  ;;  %11526 = vmatprep.subr.bf16.mxu1 %v12308_v5 }
0x3158   :  { %11548 = vmatprep.subr.bf16.mxu0 %v12309_v63 }
0x315a   :  { %11527 = vmatpush3.bf16.msra.mxu1 %v12310_v6 }
0x315b   :  { %11549 = vmatpush3.bf16.msra.mxu0 %v12311_v10  ;;  %11528 = vmatprep.subr.bf16.mxu1 %v12312_v8 }
0x315c   :  { %11550 = vmatprep.subr.bf16.mxu0 %v12313_v12 }
0x315e   :  { %11529 = vmatpush3.bf16.msra.mxu1 %v12314_v28 }
0x315f   :  { %11551 = vmatpush3.bf16.msra.mxu0 %v12315_v15  ;;  %11939 = vmatprep.subr.bf16.mxu1 %v11938_v19 }
0x3161   :  { %10129 = vmatmul.mubr.bf16.vlgmr.msra.gmra.mrb[132].mxu1 %v14401_v30  ;;  %v10183_v30 = vld [vmem:[%s14682_s16 + $0x18] sm:$0xff] }
0x3162   :  { %10170 = vmatmul.mubr.bf16.vlgmr.msra.gmra.mrb[136].mxu0 %v14403_v47  ;;  %11941 = vmatpush3.bf16.msra.mxu1 %v11938_v19  ;;  %v11942_v47 = vpack.c.bf16 %v10183_v30, %v10182_v51 }
0x3164   :  { %11943 = vmatprep.subr.bf16.mxu1 %v11942_v47 }
0x3166   :  { %11945 = vmatpush3.bf16.msra.mxu1 %v11942_v47 }
0x31d4   :  { %v11398_v22 = vpop.f32.mrb[120].mxu1  ;;  %v11420_v21 = vpop.f32.mrb[124].mxu0 }
0x31d5   :  { %v11399_v17 = vpop.f32.mrb[121].mxu1  ;;  %v11421_v14 = vpop.f32.mrb[125].mxu0 }
0x31d6   :  { %v11400_v38 = vadd.f32 %v11399_v17, %v11398_v22  ;;  %v11422_v59 = vadd.f32 %v11421_v14, %v11420_v21  ;;  %v11401_v23 = vpop.f32.mrb[122].mxu1  ;;  %v11423_v4 = vpop.f32.mrb[126].mxu0 }
0x31d7   :  { %v11402_v31 = vpop.f32.mrb[123].mxu1  ;;  %v11424_v24 = vpop.f32.mrb[127].mxu0 }
0x31d8   :  { %v9885_v44 = vadd.f32 %v11400_v38, %v10930_v34  ;;  %v11403_v33 = vadd.f32 %v11402_v31, %v11401_v23  ;;  %v11425_v26 = vadd.f32 %v11424_v24, %v11423_v4  ;;  %v11059_v38 = vld [vmem:[%s14683_s17] ss:$0 sm:$0xff] }
0x31da   :  { %v9926_v13 = vadd.f32 %v11422_v59, %v9885_v44  ;;  %v9888_v40 = vadd.f32 %v11403_v33, %v10930_v34 }
0x31dc   :  { %v9929_v1 = vadd.f32 %v11425_v26, %v9888_v40 }
0x31f4   :  { %v11442_v42 = vpop.f32.mrb[124].mxu1  ;;  %v11464_v43 = vpop.f32.mrb[128].mxu0 }
0x31f5   :  { %v11443_v49 = vpop.f32.mrb[125].mxu1  ;;  %v11465_v52 = vpop.f32.mrb[129].mxu0 }
0x31f6   :  { %v11444_v45 = vadd.f32 %v11443_v49, %v11442_v42  ;;  %v11466_v20 = vadd.f32 %v11465_v52, %v11464_v43  ;;  %v11445_v54 = vpop.f32.mrb[126].mxu1  ;;  %v11467_v56 = vpop.f32.mrb[130].mxu0 }
0x31f7   :  { %v11446_v25 = vpop.f32.mrb[127].mxu1  ;;  %v11468_v39 = vpop.f32.mrb[131].mxu0 }
0x31f8   :  { %v9967_v36 = vadd.f32 %v11444_v45, %v9926_v13  ;;  %v11447_v57 = vadd.f32 %v11446_v25, %v11445_v54  ;;  %v11469_v60 = vadd.f32 %v11468_v39, %v11467_v56 }
0x31fa   :  { %v10008_v0 = vadd.f32 %v11466_v20, %v9967_v36  ;;  %v9970_v11 = vadd.f32 %v11447_v57, %v9929_v1 }
0x31fc   :  { %v10011_v18 = vadd.f32 %v11469_v60, %v9970_v11 }
0x3214   :  { %v11486_v37 = vpop.f32.mrb[128].mxu1 }
0x3215   :  { %v11508_v55 = vpop.f32.mrb[132].mxu0  ;;  %v11487_v16 = vpop.f32.mrb[129].mxu1 }
0x3216   :  { %v11488_v58 = vadd.f32 %v11487_v16, %v11486_v37  ;;  %v11509_v46 = vpop.f32.mrb[133].mxu0  ;;  %v11489_v61 = vpop.f32.mrb[130].mxu1 }
0x3217   :  { %v11510_v2 = vadd.f32 %v11509_v46, %v11508_v55  ;;  %v11511_v48 = vpop.f32.mrb[134].mxu0  ;;  %v11490_v50 = vpop.f32.mrb[131].mxu1 }
0x3218   :  { %v10049_v9 = vadd.f32 %v11488_v58, %v10008_v0  ;;  %v11491_v7 = vadd.f32 %v11490_v50, %v11489_v61  ;;  %v11512_v27 = vpop.f32.mrb[135].mxu0 }
0x3219   :  { %v11513_v32 = vadd.f32 %v11512_v27, %v11511_v48 }
0x321a   :  { %v10090_v41 = vadd.f32 %v11510_v2, %v10049_v9  ;;  %v10052_v62 = vadd.f32 %v11491_v7, %v10011_v18 }
0x321c   :  { %v10093_v5 = vadd.f32 %v11513_v32, %v10052_v62 }
0x3234   :  { %v11530_v63 = vpop.f32.mrb[132].mxu1 }
0x3235   :  { %v11552_v6 = vpop.f32.mrb[136].mxu0  ;;  %v11531_v10 = vpop.f32.mrb[133].mxu1 }
0x3236   :  { %v11532_v8 = vadd.f32 %v11531_v10, %v11530_v63  ;;  %v11553_v12 = vpop.f32.mrb[137].mxu0  ;;  %v11533_v28 = vpop.f32.mrb[134].mxu1 }
0x3237   :  { %v11554_v15 = vadd.f32 %v11553_v12, %v11552_v6  ;;  %v11555_v53 = vpop.f32.mrb[138].mxu0  ;;  %v11534_v29 = vpop.f32.mrb[135].mxu1 }
0x3238   :  { %v10131_v19 = vadd.f32 %v11532_v8, %v10090_v41  ;;  %v11535_v51 = vadd.f32 %v11534_v29, %v11533_v28  ;;  %v11556_v30 = vpop.f32.mrb[139].mxu0 }
0x3239   :  { %v11557_v47 = vadd.f32 %v11556_v30, %v11555_v53 }
0x323a   :  { %v10172_v22 = vadd.f32 %v11554_v15, %v10131_v19  ;;  %v10134_v21 = vadd.f32 %v11535_v51, %v10093_v5 }
0x323c   :  { %v10178_v34 = vadd.f32 %v10172_v22, %v14044_v3  ;;  %v10175_v17 = vadd.f32 %v11557_v47, %v10134_v21 }
0x323e   :  { %v10179_v14 = vadd.f32 %v10175_v17, %v14047_v35  ;;  %11931 = vmatprep.mubr.msk.f32.mxu1 %vm192_vm1, %v10178_v34 }
0x3240   :  { %11932 = vmatmul.mubr.msk.f32.vlgmr.msra.gmra.mrb[102].mxu1 %vm192_vm1, %v10179_v14 }
0x3313   :  { %v11933_v59 = vpop.f32.mrb[102].mxu1 }
0x3314   :  { %v10269_v23 = vadd.f32 %v11933_v59, %v11059_v38  ;;  %v10263_v4 = vpop.f32.mrb[103].mxu1 }
0x3315   :  { %v10264_v31 = vadd.f32 %v11059_v38, %v10263_v4 }
0x3316   :  { %v10273_v24 = vmax.f32 %v10269_v23, 0.0 }
0x3317   :  { %v10272_v44 = vmax.f32 %v10264_v31, 0.0 }
0x3318   :  { %10275 = vst.msk [vmem:[#allocation2 + $0x8] sm:$0xff] %vm72_vm0, %v10273_v24 }
0x3319   :  { %10274 = vst.msk [vmem:[#allocation2] sm:$0xff] %vm72_vm0, %v10272_v44 }
0x331a   :  { %12471 = shalt.err (!%p12468_p4)
}
0x331b   :  { %s12472_s21 = scalar_lea.hbm %s14684_s18, 256 }
0x331c   :  { %p12473_p5 = scmp.ne.s32.totalorder %s14684_s18, %s12472_s21  ;;  %p12476_p6 = scmp.lt.u32.totalorder %s12472_s21, %s14684_s18 }
0x331e   :  { %p12478_p7 = pnand %p12476_p6, %p12473_p5 }
0x3320   :  { %12481 = shalt.err (!%p12478_p7)
}
0x3321   :  { %s12519_s29 = smov 128  }
0x3322   :  { %10287 = dma.vmem_to_hbm [thread:$0]  %s10282_s26, 256, %s14684_s18, [#allocation3], %s12519_s29, %s12519_s29, %s14753_s19  }
0x3323   :  { %12482 = dma.done.wait [#allocation3], 256  }
0x3324   :  { %12483 = vsyncadd [#allocation3], 4294967040 }
0x3325   :  { %10291 = vsyncpa [#allocation3], 1 }

</bundles_post_ra>
